<compile_context>
chip_gen: v5e
topology: v5e:2x2
jax: 0.10.0
libtpu: 0.0.40
codegen_flags: <defaults>
</compile_context>

<pallas_src>
import functools

import jax
import jax.numpy as jnp
from jax.experimental import pallas as pl
from jax.experimental.pallas import tpu as pltpu

_EPS = 1e-5  # nn.BatchNorm2d default eps


# ----------------------------------------------------------------------------
# Kernel 1: fused cv1 + cv2  (two 1x1 conv + folded BN + SiLU sharing input x)
# ----------------------------------------------------------------------------
def _cv1_cv2_kernel(x_ref, wa_ref, wb_ref, ba_ref, bb_ref, oa_ref, ob_ref):
    x = x_ref[...].astype(jnp.float32)                                  # (tm, Cin)
    ya = jnp.dot(x, wa_ref[...].astype(jnp.float32),
                 preferred_element_type=jnp.float32) + ba_ref[...]
    ya = ya * jax.nn.sigmoid(ya)                                        # SiLU
    oa_ref[...] = ya.astype(oa_ref.dtype)
    yb = jnp.dot(x, wb_ref[...].astype(jnp.float32),
                 preferred_element_type=jnp.float32) + bb_ref[...]
    yb = yb * jax.nn.sigmoid(yb)
    ob_ref[...] = yb.astype(ob_ref.dtype)


def cv1_cv2_fused(x2d, wa, ba, wb, bb, *, tm=512):
    M, cin = x2d.shape
    ca, cb = wa.shape[1], wb.shape[1]
    tm = min(tm, M)
    grid = (pl.cdiv(M, tm),)
    return pl.pallas_call(
        _cv1_cv2_kernel,
        out_shape=(jax.ShapeDtypeStruct((M, ca), x2d.dtype),
                   jax.ShapeDtypeStruct((M, cb), x2d.dtype)),
        grid_spec=pltpu.PrefetchScalarGridSpec(
            num_scalar_prefetch=0,
            grid=grid,
            in_specs=[
                pl.BlockSpec((tm, cin), lambda i: (i, 0)),
                pl.BlockSpec((cin, ca), lambda i: (0, 0)),
                pl.BlockSpec((cin, cb), lambda i: (0, 0)),
                pl.BlockSpec((1, ca), lambda i: (0, 0)),
                pl.BlockSpec((1, cb), lambda i: (0, 0)),
            ],
            out_specs=[pl.BlockSpec((tm, ca), lambda i: (i, 0)),
                       pl.BlockSpec((tm, cb), lambda i: (i, 0))],
        ),
        compiler_params=pltpu.CompilerParams(dimension_semantics=("parallel",)),
    )(x2d, wa, wb, ba, bb)


# ----------------------------------------------------------------------------
# Kernel 2: fused RepNBottleneck
#   RepConvN (3x3+1x1 folded) conv+BN+SiLU  ->  3x3 conv+BN+SiLU  ->  (+ residual)
#
# Input AND output use a zero-padded, row-flattened layout of shape
# ((H+3)*(W+2), C): valid pixel (y, x) sits at flat row (y+1)*(W+2) + (x+1); pad
# rows/cols are zero. In this layout, conv output row o = y*(W+2)+x for tap (dy,dx)
# reads flat row o + dy*(W+2) + dx -> one contiguous slice per tap, one MXU matmul.
# The "junk" columns (x >= W) are masked to zero so they double as the zero padding
# for the next 3x3 conv, which lets bottlenecks chain with no XLA re-layout.
# ----------------------------------------------------------------------------
def _repn_bottleneck_kernel(x_ref, w1_ref, b1_ref, w2_ref, b2_ref, o_ref, r_scr,
                            *, H, W, add):
    Wp = W + 2
    PB = H * Wp                      # flattened output rows (incl. junk cols)
    c = o_ref.shape[-1]
    f32 = jnp.float32

    col = jax.lax.broadcasted_iota(jnp.int32, (PB, 1), 0) % Wp
    valid = col < W                  # False on the 2 junk columns per image row

    def conv3x3(load_tap, w_ref):
        acc = jnp.zeros((PB, c), f32)
        for dy in range(3):
            for dx in range(3):
                xs = load_tap(dy * Wp + dx)                       # (PB, Cin)
                acc = acc + jnp.dot(xs, w_ref[dy * 3 + dx].astype(f32),
                                    preferred_element_type=f32)
        return acc

    # ---- RepConvN: (3x3 conv + 1x1 conv folded) + BN bias + SiLU ----
    r = conv3x3(lambda s: x_ref[0, pl.ds(s, PB), :].astype(f32), w1_ref)
    r = r + b1_ref[...]
    r = r * jax.nn.sigmoid(r)                                      # SiLU

    # Re-pad r inside VMEM: zero the pad regions, store masked r into the interior.
    r_scr[pl.ds(0, Wp + 1), :] = jnp.zeros((Wp + 1, c), f32)
    r_scr[pl.ds(Wp + 1 + PB, 2 * Wp - 1), :] = jnp.zeros((2 * Wp - 1, c), f32)
    r_scr[pl.ds(Wp + 1, PB), :] = jnp.where(valid, r, 0.0)

    # ---- bottleneck cv2: 3x3 conv + BN bias + SiLU, then residual add ----
    y = conv3x3(lambda s: r_scr[pl.ds(s, PB), :], w2_ref)
    y = y + b2_ref[...]
    y = y * jax.nn.sigmoid(y)                                      # SiLU
    if add:
        y = y + x_ref[0, pl.ds(Wp + 1, PB), :].astype(f32)         # residual (valid rows)

    y = jnp.where(valid, y, 0.0).astype(o_ref.dtype)
    # Emit output in the same padded layout so the next bottleneck consumes it directly.
    o_ref[0, pl.ds(0, Wp + 1), :] = jnp.zeros((Wp + 1, c), o_ref.dtype)
    o_ref[0, pl.ds(Wp + 1, PB), :] = y
    o_ref[0, pl.ds(Wp + 1 + PB, 2 * Wp - 1), :] = jnp.zeros((2 * Wp - 1, c), o_ref.dtype)


def repn_bottleneck(x_pad_flat, w_rep, b_rep, w_cv2, b_cv2, *, add, H, W):
    """One fused RepNBottleneck over a padded-flattened NHWC image."""
    N, PBin, c = x_pad_flat.shape
    Wp = W + 2
    assert PBin == (H + 3) * Wp
    return pl.pallas_call(
        functools.partial(_repn_bottleneck_kernel, H=H, W=W, add=add),
        out_shape=jax.ShapeDtypeStruct((N, PBin, c), x_pad_flat.dtype),
        grid_spec=pltpu.PrefetchScalarGridSpec(
            num_scalar_prefetch=0,
            grid=(N,),
            in_specs=[
                pl.BlockSpec((1, PBin, c), lambda n: (n, 0, 0)),
                pl.BlockSpec((9, c, c), lambda n: (0, 0, 0)),
                pl.BlockSpec((1, c), lambda n: (0, 0)),
                pl.BlockSpec((9, c, c), lambda n: (0, 0, 0)),
                pl.BlockSpec((1, c), lambda n: (0, 0)),
            ],
            out_specs=pl.BlockSpec((1, PBin, c), lambda n: (n, 0, 0)),
            scratch_shapes=[pltpu.VMEM((PBin, c), jnp.float32)],
        ),
        compiler_params=pltpu.CompilerParams(dimension_semantics=("parallel",)),
    )(x_pad_flat, w_rep, b_rep, w_cv2, b_cv2)


# ----------------------------------------------------------------------------
# Kernel 3: cv3 with the channel concat fused away (two accumulated matmuls)
# ----------------------------------------------------------------------------
def _cv3_kernel(m_ref, b_ref, wa_ref, wb_ref, bias_ref, o_ref):
    y = jnp.dot(m_ref[...].astype(jnp.float32), wa_ref[...].astype(jnp.float32),
                preferred_element_type=jnp.float32)
    y = y + jnp.dot(b_ref[...].astype(jnp.float32), wb_ref[...].astype(jnp.float32),
                    preferred_element_type=jnp.float32)
    y = y + bias_ref[...]
    y = y * jax.nn.sigmoid(y)                                   # SiLU
    o_ref[...] = y.astype(o_ref.dtype)


def cv3_fused(m2d, b2d, wa, wb, bias, *, tm=512):
    M, c_ = m2d.shape
    cout = wa.shape[1]
    tm = min(tm, M)
    grid = (pl.cdiv(M, tm),)
    return pl.pallas_call(
        _cv3_kernel,
        out_shape=jax.ShapeDtypeStruct((M, cout), m2d.dtype),
        grid_spec=pltpu.PrefetchScalarGridSpec(
            num_scalar_prefetch=0,
            grid=grid,
            in_specs=[
                pl.BlockSpec((tm, c_), lambda i: (i, 0)),
                pl.BlockSpec((tm, c_), lambda i: (i, 0)),
                pl.BlockSpec((c_, cout), lambda i: (0, 0)),
                pl.BlockSpec((c_, cout), lambda i: (0, 0)),
                pl.BlockSpec((1, cout), lambda i: (0, 0)),
            ],
            out_specs=pl.BlockSpec((tm, cout), lambda i: (i, 0)),
        ),
        compiler_params=pltpu.CompilerParams(dimension_semantics=("parallel",)),
    )(m2d, b2d, wa, wb, bias)


# ----------------------------------------------------------------------------
# RepNCSP forward (Pallas path; NCHW in/out like the PyTorch module)
# ----------------------------------------------------------------------------
def repncsp_forward(x_nchw, fused):
    N, C1, H, W = x_nchw.shape
    c_ = fused["c_"]
    Wp = W + 2
    x_nhwc = jnp.transpose(x_nchw, (0, 2, 3, 1))
    x2d = x_nhwc.reshape(N * H * W, C1)

    # cv1(x) and cv2(x) in one pass over x
    a2d, b2d = cv1_cv2_fused(x2d, fused["w_cv1"], fused["b_cv1"],
                             fused["w_cv2"], fused["b_cv2"])

    # Pad cv1 output ONCE into the flattened padded layout used by all bottlenecks.
    a_nhwc = a2d.reshape(N, H, W, c_)
    t_pad = jnp.pad(a_nhwc, ((0, 0), (1, 2), (1, 1), (0, 0))).reshape(N, (H + 3) * Wp, c_)

    # RepNBottleneck chain m(.) -- each block is one fused pallas_call, and blocks
    # chain in the padded layout with no intermediate XLA crops / re-pads.
    for blk in fused["m"]:
        t_pad = repn_bottleneck(t_pad, blk["w_rep"], blk["b_rep"],
                                blk["w_cv2"], blk["b_cv2"],
                                add=blk["add"], H=H, W=W)

    # Crop back to valid pixels once, after the whole chain.
    t = t_pad.reshape(N, H + 3, Wp, c_)[:, 1:H + 1, 1:W + 1, :]

    # cv3 over concat(m_out, cv2_out) -- concat never materialised
    m2d = t.reshape(N * H * W, c_)
    out2d = cv3_fused(m2d, b2d, fused["w_cv3_a"], fused["w_cv3_b"], fused["b_cv3"])

    c2 = fused["w_cv3_a"].shape[1]
    return out2d.reshape(N, H, W, c2).transpose(0, 3, 1, 2)


# ----------------------------------------------------------------------------
# Parameters (mirror the PyTorch module), BN folding, and a pure-JAX reference
# ----------------------------------------------------------------------------
def _conv_params(key, cin, cout, k):
    kw, kg, kb, km, kv = jax.random.split(key, 5)
    if k == 1:
        w = jax.random.normal(kw, (cin, cout), jnp.float32) / jnp.sqrt(cin * 1.0)
    else:
        w = jax.random.normal(kw, (k, k, cin, cout), jnp.float32) / jnp.sqrt(cin * k * k * 1.0)
    return dict(
        w=w,
        gamma=jax.random.uniform(kg, (cout,), jnp.float32, 0.5, 1.5),
        beta=jax.random.normal(kb, (cout,), jnp.float32) * 0.1,
        mean=jax.random.normal(km, (cout,), jnp.float32) * 0.1,
        var=jax.random.uniform(kv, (cout,), jnp.float32, 0.5, 1.5),
    )


def make_params(key, c1, c2, n=1, shortcut=True, e=0.5):
    c_ = int(c2 * e)
    keys = jax.random.split(key, 3 + 3 * n)
    params = dict(
        cv1=_conv_params(keys[0], c1, c_, 1),
        cv2=_conv_params(keys[1], c1, c_, 1),
        cv3=_conv_params(keys[2], 2 * c_, c2, 1),
        m=[], c_=c_, c2=c2,
    )
    for i in range(n):
        params["m"].append(dict(
            rep3=_conv_params(keys[3 + 3 * i], c_, c_, 3),   # RepConvN conv1 (3x3)
            rep1=_conv_params(keys[4 + 3 * i], c_, c_, 1),   # RepConvN conv2 (1x1)
            cv2=_conv_params(keys[5 + 3 * i], c_, c_, 3),    # bottleneck cv2 (3x3)
            add=bool(shortcut),                              # c1 == c2 == c_ here
        ))
    return params


def _fold_bn(p):
    scale = p["gamma"] / jnp.sqrt(p["var"] + _EPS)
    bias = p["beta"] - p["mean"] * scale
    return p["w"] * scale, bias                 # scale broadcasts over Cout (last axis)


def prepare_fused(params):
    c_ = params["c_"]
    w1, b1 = _fold_bn(params["cv1"])
    w2, b2 = _fold_bn(params["cv2"])
    w3, b3 = _fold_bn(params["cv3"])
    blocks = []
    for blk in params["m"]:
        w3x3, b3x3 = _fold_bn(blk["rep3"])
        w1x1, b1x1 = _fold_bn(blk["rep1"])
        w_rep = w3x3.at[1, 1].add(w1x1)         # fold 1x1 branch into the centre tap
        b_rep = b3x3 + b1x1
        wb2, bb2 = _fold_bn(blk["cv2"])
        blocks.append(dict(
            w_rep=w_rep.reshape(9, c_, c_), b_rep=b_rep.reshape(1, c_),
            w_cv2=wb2.reshape(9, c_, c_), b_cv2=bb2.reshape(1, c_),
            add=blk["add"],
        ))
    return dict(
        w_cv1=w1, b_cv1=b1.reshape(1, -1),
        w_cv2=w2, b_cv2=b2.reshape(1, -1),
        w_cv3_a=w3[:c_], w_cv3_b=w3[c_:], b_cv3=b3.reshape(1, -1),
        m=blocks, c_=c_,
    )


def _bn_eval(y, p):
    scale = p["gamma"] / jnp.sqrt(p["var"] + _EPS)
    return y * scale + (p["beta"] - p["mean"] * scale)


def _silu(y):
    return y * jax.nn.sigmoid(y)


def _conv1x1_ref(x, w):          # x NHWC, w (Cin, Cout)
    return jnp.tensordot(x, w, axes=([3], [0]))


def _conv3x3_ref(x, w):          # x NHWC, w HWIO
    return jax.lax.conv_general_dilated(
        x, w, window_strides=(1, 1), padding="SAME",
        dimension_numbers=("NHWC", "HWIO", "NHWC"))


def repncsp_reference(x_nchw, params):
    x = jnp.transpose(x_nchw, (0, 2, 3, 1))
    a = _silu(_bn_eval(_conv1x1_ref(x, params["cv1"]["w"]), params["cv1"]))
    b = _silu(_bn_eval(_conv1x1_ref(x, params["cv2"]["w"]), params["cv2"]))
    t = a
    for blk in params["m"]:
        r = _silu(_bn_eval(_conv3x3_ref(t, blk["rep3"]["w"]), blk["rep3"])
                  + _bn_eval(_conv1x1_ref(t, blk["rep1"]["w"]), blk["rep1"]))
        s = _silu(_bn_eval(_conv3x3_ref(r, blk["cv2"]["w"]), blk["cv2"]))
        t = t + s if blk["add"] else s
    cat = jnp.concatenate([t, b], axis=-1)
    out = _silu(_bn_eval(_conv1x1_ref(cat, params["cv3"]["w"]), params["cv3"]))
    return jnp.transpose(out, (0, 3, 1, 2))


# ----------------------------------------------------------------------------
if __name__ == "__main__":
    N, C1, C2, H, W = 2, 8, 8, 16, 16          # c_ = C2 // 2 = 4, n = 2 bottlenecks
    root = jax.random.PRNGKey(0)
    kp, kx = jax.random.split(root)
    params = make_params(kp, C1, C2, n=2, shortcut=True, e=0.5)
    fused = prepare_fused(params)
    x = jax.random.normal(kx, (N, C1, H, W), jnp.float32)

    out = repncsp_forward(x, fused)
    out = jax.block_until_ready(out)

    ref = repncsp_reference(x, params)
    assert out.shape == (N, C2, H, W), out.shape
    max_err = float(jnp.max(jnp.abs(out - ref)))
    assert jnp.allclose(out, ref, atol=2e-3, rtol=2e-3), f"max abs err = {max_err}"

    print("KERNEL_OK")
</pallas_src>

<mosaic_0001>
module attributes {stable_mosaic.version = 11 : i64} {
  func.func @_cv1_cv2_kernel(%arg0: i32, %arg1: memref<512x8xf32, #tpu.memory_space<vmem>>, %arg2: memref<8x4xf32, #tpu.memory_space<vmem>>, %arg3: memref<8x4xf32, #tpu.memory_space<vmem>>, %arg4: memref<1x4xf32, #tpu.memory_space<vmem>>, %arg5: memref<1x4xf32, #tpu.memory_space<vmem>>, %arg6: memref<512x4xf32, #tpu.memory_space<vmem>>, %arg7: memref<512x4xf32, #tpu.memory_space<vmem>>) attributes {dimension_semantics = [#tpu.dimension_semantics<parallel>], iteration_bounds = array<i64: 1>, scalar_prefetch = 0 : i64, scratch_operands = 0 : i64, tpu.core_type = #tpu.core_type<tc>, window_params = [{transform_indices = @transform_0, window_bounds = array<i64: 512, 8>}, {pipeline_mode = #tpu.pipeline_mode<synchronous>, transform_indices = @transform_1, window_bounds = array<i64: 8, 4>}, {pipeline_mode = #tpu.pipeline_mode<synchronous>, transform_indices = @transform_2, window_bounds = array<i64: 8, 4>}, {pipeline_mode = #tpu.pipeline_mode<synchronous>, transform_indices = @transform_3, window_bounds = array<i64: 1, 4>}, {pipeline_mode = #tpu.pipeline_mode<synchronous>, transform_indices = @transform_4, window_bounds = array<i64: 1, 4>}, {transform_indices = @transform_5, window_bounds = array<i64: 512, 4>}, {transform_indices = @transform_6, window_bounds = array<i64: 512, 4>}]} {
    %c0 = arith.constant 0 : index
    %c0_0 = arith.constant 0 : index
    %0 = vector.load %arg1[%c0, %c0_0] : memref<512x8xf32, #tpu.memory_space<vmem>>, vector<512x8xf32>
    %c0_1 = arith.constant 0 : index
    %c0_2 = arith.constant 0 : index
    %1 = vector.load %arg2[%c0_1, %c0_2] : memref<8x4xf32, #tpu.memory_space<vmem>>, vector<8x4xf32>
    %cst = arith.constant dense<0.000000e+00> : vector<512x4xf32>
    %2 = tpu.matmul %0, %1, %cst {dimension_numbers = #tpu.dot_dimension_numbers<[1], [0], [0], [1], [0, 0, 1, 1], [], []>} : vector<512x8xf32>, vector<8x4xf32>, vector<512x4xf32> -> vector<512x4xf32>
    %c0_3 = arith.constant 0 : index
    %c0_4 = arith.constant 0 : index
    %3 = vector.load %arg4[%c0_3, %c0_4] : memref<1x4xf32, #tpu.memory_space<vmem>>, vector<1x4xf32>
    %4 = vector.broadcast %3 : vector<1x4xf32> to vector<512x4xf32>
    %5 = arith.addf %2, %4 : vector<512x4xf32>
    %6 = arith.negf %5 : vector<512x4xf32>
    %7 = math.exp %6 : vector<512x4xf32>
    %cst_5 = arith.constant 1.000000e+00 : f32
    %8 = vector.broadcast %cst_5 : f32 to vector<512x4xf32>
    %9 = arith.addf %8, %7 : vector<512x4xf32>
    %10 = arith.divf %8, %9 : vector<512x4xf32>
    %11 = arith.mulf %5, %10 : vector<512x4xf32>
    %c0_6 = arith.constant 0 : index
    %c0_7 = arith.constant 0 : index
    %12 = vector.load %arg6[%c0_6, %c0_7] : memref<512x4xf32, #tpu.memory_space<vmem>>, vector<512x4xf32>
    tpu.vector_store %arg6[%c0_6, %c0_7], %11 {strides = array<i32>} : memref<512x4xf32, #tpu.memory_space<vmem>>, vector<512x4xf32>,
    %c0_8 = arith.constant 0 : index
    %c0_9 = arith.constant 0 : index
    %13 = vector.load %arg3[%c0_8, %c0_9] : memref<8x4xf32, #tpu.memory_space<vmem>>, vector<8x4xf32>
    %cst_10 = arith.constant dense<0.000000e+00> : vector<512x4xf32>
    %14 = tpu.matmul %0, %13, %cst_10 {dimension_numbers = #tpu.dot_dimension_numbers<[1], [0], [0], [1], [0, 0, 1, 1], [], []>} : vector<512x8xf32>, vector<8x4xf32>, vector<512x4xf32> -> vector<512x4xf32>
    %c0_11 = arith.constant 0 : index
    %c0_12 = arith.constant 0 : index
    %15 = vector.load %arg5[%c0_11, %c0_12] : memref<1x4xf32, #tpu.memory_space<vmem>>, vector<1x4xf32>
    %16 = vector.broadcast %15 : vector<1x4xf32> to vector<512x4xf32>
    %17 = arith.addf %14, %16 : vector<512x4xf32>
    %18 = arith.negf %17 : vector<512x4xf32>
    %19 = math.exp %18 : vector<512x4xf32>
    %cst_13 = arith.constant 1.000000e+00 : f32
    %20 = vector.broadcast %cst_13 : f32 to vector<512x4xf32>
    %21 = arith.addf %20, %19 : vector<512x4xf32>
    %22 = arith.divf %20, %21 : vector<512x4xf32>
    %23 = arith.mulf %17, %22 : vector<512x4xf32>
    %c0_14 = arith.constant 0 : index
    %c0_15 = arith.constant 0 : index
    %24 = vector.load %arg7[%c0_14, %c0_15] : memref<512x4xf32, #tpu.memory_space<vmem>>, vector<512x4xf32>
    tpu.vector_store %arg7[%c0_14, %c0_15], %23 {strides = array<i32>} : memref<512x4xf32, #tpu.memory_space<vmem>>, vector<512x4xf32>,
    return
  }
  func.func @transform_0(%arg0: i32) -> (i32, i32) {
    %c0_i32 = arith.constant 0 : i32
    %c0_i32_0 = arith.constant 0 : i32
    return %arg0, %c0_i32 : i32, i32
  }
  func.func @transform_1(%arg0: i32) -> (i32, i32) {
    %c0_i32 = arith.constant 0 : i32
    %c0_i32_0 = arith.constant 0 : i32
    %c0_i32_1 = arith.constant 0 : i32
    return %c0_i32, %c0_i32_0 : i32, i32
  }
  func.func @transform_2(%arg0: i32) -> (i32, i32) {
    %c0_i32 = arith.constant 0 : i32
    %c0_i32_0 = arith.constant 0 : i32
    %c0_i32_1 = arith.constant 0 : i32
    return %c0_i32, %c0_i32_0 : i32, i32
  }
  func.func @transform_3(%arg0: i32) -> (i32, i32) {
    %c0_i32 = arith.constant 0 : i32
    %c0_i32_0 = arith.constant 0 : i32
    %c0_i32_1 = arith.constant 0 : i32
    return %c0_i32, %c0_i32_0 : i32, i32
  }
  func.func @transform_4(%arg0: i32) -> (i32, i32) {
    %c0_i32 = arith.constant 0 : i32
    %c0_i32_0 = arith.constant 0 : i32
    %c0_i32_1 = arith.constant 0 : i32
    return %c0_i32, %c0_i32_0 : i32, i32
  }
  func.func @transform_5(%arg0: i32) -> (i32, i32) {
    %c0_i32 = arith.constant 0 : i32
    %c0_i32_0 = arith.constant 0 : i32
    return %arg0, %c0_i32 : i32, i32
  }
  func.func @transform_6(%arg0: i32) -> (i32, i32) {
    %c0_i32 = arith.constant 0 : i32
    %c0_i32_0 = arith.constant 0 : i32
    return %arg0, %c0_i32 : i32, i32
  }
}

</mosaic_0001>

<bundles_post_ra>
// kernel: tpu_custom_call.1
= control target key start
LH: loop header
LB: loop body
LE: loop exit
PB: predicated region body
PF: predicated region fallthrough
CT: control target
= control target key end

     0   :  { %vm7764_vm0 = vcmask 64512   ;;  %vm1773_vm4 = vcmask 31744   ;;  %s7757_s1 = inlined_call_operand.vmem [shape: f32[8,4], index: 1, kind: input, shape index: {}]   ;;  %s7758_s2 = inlined_call_operand.vmem [shape: f32[8,4], index: 2, kind: input, shape index: {}]   ;;  %s7759_s0 = inlined_call_operand.vmem [shape: f32[512,8], index: 0, kind: input, shape index: {}]   ;;  %s7760_s3 = inlined_call_operand.vmem [shape: f32[1,4], index: 3, kind: input, shape index: {}]   ;;  %s7761_s4 = inlined_call_operand.vmem [shape: f32[1,4], index: 4, kind: input, shape index: {}]   ;;  %s7762_s5 = inlined_call_operand.vmem [shape: f32[512,4], index: 5, kind: output, shape index: {0}]   ;;  %s7763_s6 = inlined_call_operand.vmem [shape: f32[512,4], index: 6, kind: output, shape index: {1}]  }
   0x1   :  { %v86_v0 = vld [vmem:[%s7757_s1] sm:$0xff]  ;;  %v23_v4 = vld [vmem:[%s7759_s0 + $0x8] sm:$0xff]  ;;  %v24_v6 = vld [vmem:[%s7759_s0 + $0x10] sm:$0xff] }
   0x2   :  { %v1838_v1 = vld [vmem:[%s7758_s2] sm:$0xff]  ;;  %299 = vmatpush.msra.mxu0 %v86_v0  ;;  %3660 = vmatpush.msra.mxu2 %v86_v0  ;;  %v55_v5 = vld [vmem:[%s7759_s0 + $0x108] sm:$0xff]  ;;  %v56_v7 = vld [vmem:[%s7759_s0 + $0x110] sm:$0xff] }
   0x3   :  { %v22_v2 = vld [vmem:[%s7759_s0] sm:$0xff]  ;;  %1858 = vmatpush.msra.mxu1 %v1838_v1  ;;  %3661 = vmatpush.msra.mxu3 %v1838_v1  ;;  %v25_v8 = vld [vmem:[%s7759_s0 + $0x18] sm:$0xff]  ;;  %v27_v12 = vld [vmem:[%s7759_s0 + $0x28] sm:$0xff] }
   0x4   :  { %v54_v3 = vld [vmem:[%s7759_s0 + $0x100] sm:$0xff]  ;;  %3404 = vmatmul.msk.f32.vlgmr.msra.gmra.mxu0 %vm7764_vm0, %v22_v2  ;;  %3532 = vmatmul.msk.f32.vlgmr.msra.gmra.mxu1 %vm7764_vm0, %v22_v2  ;;  %v57_v9 = vld [vmem:[%s7759_s0 + $0x118] sm:$0xff]  ;;  %v59_v13 = vld [vmem:[%s7759_s0 + $0x128] sm:$0xff] }
   0x5   :  { %3436 = vmatmul.msk.f32.vlgmr.msra.gmra.mxu2 %vm7764_vm0, %v54_v3  ;;  %3564 = vmatmul.msk.f32.vlgmr.msra.gmra.mxu3 %vm7764_vm0, %v54_v3  ;;  %v26_v10 = vld [vmem:[%s7759_s0 + $0x20] sm:$0xff]  ;;  %v28_v14 = vld [vmem:[%s7759_s0 + $0x30] sm:$0xff]  ;;  %v29_v16 = vld [vmem:[%s7759_s0 + $0x38] sm:$0xff] }
   0x6   :  { %v58_v11 = vld [vmem:[%s7759_s0 + $0x120] sm:$0xff]  ;;  %v60_v15 = vld [vmem:[%s7759_s0 + $0x130] sm:$0xff]  ;;  %v61_v17 = vld [vmem:[%s7759_s0 + $0x138] sm:$0xff] }
   0x7   :  { %v30_v18 = vld [vmem:[%s7759_s0 + $0x40] sm:$0xff]  ;;  %v31_v20 = vld [vmem:[%s7759_s0 + $0x48] sm:$0xff]  ;;  %v32_v22 = vld [vmem:[%s7759_s0 + $0x50] sm:$0xff] }
   0x8   :  { %v62_v19 = vld [vmem:[%s7759_s0 + $0x140] sm:$0xff]  ;;  %v63_v21 = vld [vmem:[%s7759_s0 + $0x148] sm:$0xff]  ;;  %v64_v23 = vld [vmem:[%s7759_s0 + $0x150] sm:$0xff] }
   0x9   :  { %v33_v24 = vld [vmem:[%s7759_s0 + $0x58] sm:$0xff]  ;;  %v34_v26 = vld [vmem:[%s7759_s0 + $0x60] sm:$0xff]  ;;  %v35_v28 = vld [vmem:[%s7759_s0 + $0x68] sm:$0xff] }
   0xa   :  { %v65_v25 = vld [vmem:[%s7759_s0 + $0x158] sm:$0xff]  ;;  %v66_v27 = vld [vmem:[%s7759_s0 + $0x160] sm:$0xff]  ;;  %v67_v29 = vld [vmem:[%s7759_s0 + $0x168] sm:$0xff] }
   0xb   :  { %v36_v30 = vld [vmem:[%s7759_s0 + $0x70] sm:$0xff]  ;;  %v37_v32 = vld [vmem:[%s7759_s0 + $0x78] sm:$0xff]  ;;  %v4390_v34 = vld [vmem:[%s7760_s3] ss:$0 sm:$0xff] }
   0xc   :  { %3405 = vmatmul.msk.f32.gmra.mxu0 %vm7764_vm0, %v23_v4  ;;  %3533 = vmatmul.msk.f32.gmra.mxu1 %vm7764_vm0, %v23_v4  ;;  %v68_v31 = vld [vmem:[%s7759_s0 + $0x170] sm:$0xff]  ;;  %v69_v33 = vld [vmem:[%s7759_s0 + $0x178] sm:$0xff]  ;;  %v4395_v35 = vld [vmem:[%s7761_s4] ss:$0 sm:$0xff] }
   0xd   :  { %3437 = vmatmul.msk.f32.gmra.mxu2 %vm7764_vm0, %v55_v5  ;;  %3565 = vmatmul.msk.f32.gmra.mxu3 %vm7764_vm0, %v55_v5  ;;  %v38_v37 = vld [vmem:[%s7759_s0 + $0x80] sm:$0xff]  ;;  %v39_v49 = vld [vmem:[%s7759_s0 + $0x88] sm:$0xff]  ;;  %v40_v3 = vld [vmem:[%s7759_s0 + $0x90] sm:$0xff] }
   0xe   :  { %v70_v38 = vld [vmem:[%s7759_s0 + $0x180] sm:$0xff]  ;;  %v71_v50 = vld [vmem:[%s7759_s0 + $0x188] sm:$0xff]  ;;  %v72_v4 = vld [vmem:[%s7759_s0 + $0x190] sm:$0xff] }
  0x14   :  { %3406 = vmatmul.msk.f32.gmra.mxu0 %vm7764_vm0, %v24_v6  ;;  %3534 = vmatmul.msk.f32.gmra.mxu1 %vm7764_vm0, %v24_v6 }
  0x15   :  { %3438 = vmatmul.msk.f32.gmra.mxu2 %vm7764_vm0, %v56_v7  ;;  %3566 = vmatmul.msk.f32.gmra.mxu3 %vm7764_vm0, %v56_v7 }
  0x1c   :  { %3407 = vmatmul.msk.f32.gmra.mxu0 %vm7764_vm0, %v25_v8  ;;  %3535 = vmatmul.msk.f32.gmra.mxu1 %vm7764_vm0, %v25_v8 }
  0x1d   :  { %3439 = vmatmul.msk.f32.gmra.mxu2 %vm7764_vm0, %v57_v9  ;;  %3567 = vmatmul.msk.f32.gmra.mxu3 %vm7764_vm0, %v57_v9 }
  0x24   :  { %3408 = vmatmul.msk.f32.gmra.mxu0 %vm7764_vm0, %v26_v10  ;;  %3536 = vmatmul.msk.f32.gmra.mxu1 %vm7764_vm0, %v26_v10 }
  0x25   :  { %3440 = vmatmul.msk.f32.gmra.mxu2 %vm7764_vm0, %v58_v11  ;;  %3568 = vmatmul.msk.f32.gmra.mxu3 %vm7764_vm0, %v58_v11 }
  0x2c   :  { %3409 = vmatmul.msk.f32.gmra.mxu0 %vm7764_vm0, %v27_v12  ;;  %3537 = vmatmul.msk.f32.gmra.mxu1 %vm7764_vm0, %v27_v12 }
  0x2d   :  { %3441 = vmatmul.msk.f32.gmra.mxu2 %vm7764_vm0, %v59_v13  ;;  %3569 = vmatmul.msk.f32.gmra.mxu3 %vm7764_vm0, %v59_v13 }
  0x34   :  { %3410 = vmatmul.msk.f32.gmra.mxu0 %vm7764_vm0, %v28_v14  ;;  %3538 = vmatmul.msk.f32.gmra.mxu1 %vm7764_vm0, %v28_v14 }
  0x35   :  { %3442 = vmatmul.msk.f32.gmra.mxu2 %vm7764_vm0, %v60_v15  ;;  %3570 = vmatmul.msk.f32.gmra.mxu3 %vm7764_vm0, %v60_v15 }
  0x3c   :  { %3411 = vmatmul.msk.f32.gmra.mxu0 %vm7764_vm0, %v29_v16  ;;  %3539 = vmatmul.msk.f32.gmra.mxu1 %vm7764_vm0, %v29_v16 }
  0x3d   :  { %3443 = vmatmul.msk.f32.gmra.mxu2 %vm7764_vm0, %v61_v17  ;;  %3571 = vmatmul.msk.f32.gmra.mxu3 %vm7764_vm0, %v61_v17 }
  0x44   :  { %3412 = vmatmul.msk.f32.gmra.mxu0 %vm7764_vm0, %v30_v18  ;;  %3540 = vmatmul.msk.f32.gmra.mxu1 %vm7764_vm0, %v30_v18 }
  0x45   :  { %3444 = vmatmul.msk.f32.gmra.mxu2 %vm7764_vm0, %v62_v19  ;;  %3572 = vmatmul.msk.f32.gmra.mxu3 %vm7764_vm0, %v62_v19 }
  0x4c   :  { %3413 = vmatmul.msk.f32.gmra.mxu0 %vm7764_vm0, %v31_v20  ;;  %3541 = vmatmul.msk.f32.gmra.mxu1 %vm7764_vm0, %v31_v20 }
  0x4d   :  { %3445 = vmatmul.msk.f32.gmra.mxu2 %vm7764_vm0, %v63_v21  ;;  %3573 = vmatmul.msk.f32.gmra.mxu3 %vm7764_vm0, %v63_v21 }
  0x54   :  { %3414 = vmatmul.msk.f32.gmra.mxu0 %vm7764_vm0, %v32_v22  ;;  %3542 = vmatmul.msk.f32.gmra.mxu1 %vm7764_vm0, %v32_v22 }
  0x55   :  { %3446 = vmatmul.msk.f32.gmra.mxu2 %vm7764_vm0, %v64_v23  ;;  %3574 = vmatmul.msk.f32.gmra.mxu3 %vm7764_vm0, %v64_v23 }
  0x5c   :  { %3415 = vmatmul.msk.f32.gmra.mxu0 %vm7764_vm0, %v33_v24  ;;  %3543 = vmatmul.msk.f32.gmra.mxu1 %vm7764_vm0, %v33_v24 }
  0x5d   :  { %3447 = vmatmul.msk.f32.gmra.mxu2 %vm7764_vm0, %v65_v25  ;;  %3575 = vmatmul.msk.f32.gmra.mxu3 %vm7764_vm0, %v65_v25 }
  0x64   :  { %3416 = vmatmul.msk.f32.gmra.mxu0 %vm7764_vm0, %v34_v26  ;;  %3544 = vmatmul.msk.f32.gmra.mxu1 %vm7764_vm0, %v34_v26 }
  0x65   :  { %3448 = vmatmul.msk.f32.gmra.mxu2 %vm7764_vm0, %v66_v27  ;;  %3576 = vmatmul.msk.f32.gmra.mxu3 %vm7764_vm0, %v66_v27 }
  0x6c   :  { %3417 = vmatmul.msk.f32.gmra.mxu0 %vm7764_vm0, %v35_v28  ;;  %3545 = vmatmul.msk.f32.gmra.mxu1 %vm7764_vm0, %v35_v28 }
  0x6d   :  { %3449 = vmatmul.msk.f32.gmra.mxu2 %vm7764_vm0, %v67_v29  ;;  %3577 = vmatmul.msk.f32.gmra.mxu3 %vm7764_vm0, %v67_v29 }
  0x74   :  { %3418 = vmatmul.msk.f32.gmra.mxu0 %vm7764_vm0, %v36_v30  ;;  %3546 = vmatmul.msk.f32.gmra.mxu1 %vm7764_vm0, %v36_v30 }
  0x75   :  { %3450 = vmatmul.msk.f32.gmra.mxu2 %vm7764_vm0, %v68_v31  ;;  %3578 = vmatmul.msk.f32.gmra.mxu3 %vm7764_vm0, %v68_v31 }
  0x7c   :  { %3419 = vmatmul.msk.f32.gmra.mxu0 %vm7764_vm0, %v37_v32  ;;  %3547 = vmatmul.msk.f32.gmra.mxu1 %vm7764_vm0, %v37_v32 }
  0x7d   :  { %3451 = vmatmul.msk.f32.gmra.mxu2 %vm7764_vm0, %v69_v33  ;;  %3579 = vmatmul.msk.f32.gmra.mxu3 %vm7764_vm0, %v69_v33 }
  0x81   :  { %v301_v36 = vpop.f32.mrf.mxu0  ;;  %v1860_v40 = vpop.f32.mrf.mxu1 }
  0x82   :  { %v4404_v39 = vadd.f32 %v4390_v34, %v301_v36  ;;  %v4407_v41 = vadd.f32 %v4395_v35, %v1860_v40  ;;  %v41_v40 = vld [vmem:[%s7759_s0 + $0x98] sm:$0xff] }
  0x84   :  { %v3468_v42 = vmul.f32 -1.442695, %v4404_v39  ;;  %3420 = vmatmul.msk.f32.gmra.mxu0 %vm7764_vm0, %v38_v37  ;;  %v3596_v43 = vmul.f32 -1.442695, %v4407_v41  ;;  %3548 = vmatmul.msk.f32.gmra.mxu1 %vm7764_vm0, %v38_v37 }
  0x85   :  { %3452 = vmatmul.msk.f32.gmra.mxu2 %vm7764_vm0, %v70_v38  ;;  %3580 = vmatmul.msk.f32.gmra.mxu3 %vm7764_vm0, %v70_v38 }
  0x86   :  { %3664 = vpow2.f32 %v3468_v42  ;;  %v73_v42 = vld [vmem:[%s7759_s0 + $0x198] sm:$0xff] }
  0x87   :  { %3666 = vpow2.f32 %v3596_v43 }
  0x88   :  { %v397_v44 = vpop.f32.mrf.mxu2  ;;  %v1956_v46 = vpop.f32.mrf.mxu3 }
  0x89   :  { %v4416_v45 = vadd.f32 %v4390_v34, %v397_v44  ;;  %v4419_v47 = vadd.f32 %v4395_v35, %v1956_v46  ;;  %v304_v48 = vpop.f32.mrf.mxu0  ;;  %v1863_v53 = vpop.f32.mrf.mxu1 }
  0x8a   :  { %v4429_v52 = vadd.f32 %v4390_v34, %v304_v48  ;;  %v4433_v55 = vadd.f32 %v4395_v35, %v1863_v53 }
  0x8b   :  { %v3500_v51 = vmul.f32 -1.442695, %v4416_v45  ;;  %v3628_v54 = vmul.f32 -1.442695, %v4419_v47 }
  0x8c   :  { %v3665_v56 = vpop.eup %3664  ;;  %v3469_v57 = vmul.f32 -1.442695, %v4429_v52  ;;  %3421 = vmatmul.msk.f32.gmra.mxu0 %vm7764_vm0, %v39_v49  ;;  %v3597_v60 = vmul.f32 -1.442695, %v4433_v55  ;;  %3549 = vmatmul.msk.f32.gmra.mxu1 %vm7764_vm0, %v39_v49 }
  0x8d   :  { %3668 = vpow2.f32 %v3500_v51  ;;  %3453 = vmatmul.msk.f32.gmra.mxu2 %vm7764_vm0, %v71_v50  ;;  %v3667_v58 = vpop.eup %3666  ;;  %v4438_v59 = vadd.f32 1.0, %v3665_v56  ;;  %3581 = vmatmul.msk.f32.gmra.mxu3 %vm7764_vm0, %v71_v50 }
  0x8e   :  { %3670 = vpow2.f32 %v3628_v54  ;;  %v4443_v61 = vadd.f32 1.0, %v3667_v58 }
  0x8f   :  { %3672 = vpow2.f32 %v3469_v57  ;;  %v760_v0 = vand.u32 2147483648, %v4438_v59  ;;  %v758_v6 = vand.u32 2147483647, %v4438_v59  ;;  %vm754_vm1 = vweird.f32 %v4438_v59 }
  0x90   :  { %3674 = vrcp.f32 %v4438_v59  ;;  %v400_v62 = vpop.f32.mrf.mxu2  ;;  %v1959_v63 = vpop.f32.mrf.mxu3  ;;  %v2319_v7 = vand.u32 2147483648, %v4443_v61  ;;  %v2317_v9 = vand.u32 2147483647, %v4443_v61  ;;  %vm2313_vm2 = vweird.f32 %v4443_v61 }
  0x91   :  { %3676 = vrcp.f32 %v4443_v61  ;;  %v4449_v1 = vadd.f32 %v4390_v34, %v400_v62  ;;  %v307_v2 = vpop.f32.mrf.mxu0  ;;  %v4463_v11 = vadd.f32 %v4395_v35, %v1959_v63  ;;  %v1866_v13 = vpop.f32.mrf.mxu1  ;;  %v761_v17 = vor.u32 1.1754944e-38, %v760_v0 }
  0x92   :  { %3678 = vpow2.f32 %v3597_v60  ;;  %v4466_v12 = vadd.f32 %v4390_v34, %v307_v2  ;;  %vm4484_vm3 = vcmp.eq.f32.partialorder %v758_v6, 8.507059e+37  ;;  %v2320_v22 = vor.u32 1.1754944e-38, %v2319_v7 }
  0x93   :  { %v3669_v5 = vpop.eup %3668  ;;  %v3501_v18 = vmul.f32 -1.442695, %v4449_v1  ;;  %v4490_v23 = vadd.f32 %v4395_v35, %v1866_v13  ;;  %vm4494_vm5 = vcmp.eq.f32.partialorder %v2317_v9, 8.507059e+37  ;;  %v4500_v28 = vmul.f32 -1.442695, %v4463_v11 }
  0x94   :  { %v3671_v8 = vpop.eup %3670  ;;  %v4460_v10 = vadd.f32 1.0, %v3669_v5  ;;  %3422 = vmatmul.msk.f32.gmra.mxu0 %vm7764_vm0, %v40_v3  ;;  %3550 = vmatmul.msk.f32.gmra.mxu1 %vm7764_vm0, %v40_v3  ;;  %v4503_v29 = vmul.f32 -1.442695, %v4466_v12 }
  0x95   :  { %v3673_v14 = vpop.eup %3672  ;;  %v4469_v15 = vadd.f32 1.0, %v3671_v8  ;;  %3454 = vmatmul.msk.f32.gmra.mxu2 %vm7764_vm0, %v72_v4  ;;  %3582 = vmatmul.msk.f32.gmra.mxu3 %vm7764_vm0, %v72_v4  ;;  %v4533_v54 = vmul.f32 -1.442695, %v4490_v23 }
  0x96   :  { %v4473_v16 = vpop.eup %3674  ;;  %3680 = vrcp.f32 %v4460_v10  ;;  %v1240_v27 = vand.u32 2147483648, %v4460_v10  ;;  %v1238_v31 = vand.u32 2147483647, %v4460_v10  ;;  %v4507_v33 = vadd.f32 1.0, %v3673_v14 }
  0x97   :  { %v4480_v19 = vpop.eup %3676  ;;  %v750_v20 = vmul.f32 %v4473_v16, %v4438_v59  ;;  %3682 = vrcp.f32 %v4469_v15  ;;  %v2797_v32 = vand.u32 2147483647, %v4469_v15  ;;  %v2799_v37 = vand.u32 2147483648, %v4469_v15 }
  0x98   :  { %v3679_v24 = vpop.eup %3678  ;;  %v2309_v25 = vmul.f32 %v4480_v19, %v4443_v61  ;;  %3684 = vpow2.f32 %v3501_v18  ;;  %vm755_vm6 = vweird.f32 %v4473_v16  ;;  %vm1234_vm7 = vweird.f32 %v4460_v10 }
  0x99   :  { %v751_v30 = vsub.f32 1.0, %v750_v20  ;;  %v4510_v38 = vadd.f32 1.0, %v3679_v24  ;;  %3686 = vrcp.f32 %v4507_v33  ;;  %vm2314_vm8 = vweird.f32 %v4480_v19  ;;  %vm756_vm11 = vmor %vm754_vm1, %vm755_vm6 }
  0x9a   :  { %v2310_v36 = vsub.f32 1.0, %v2309_v25  ;;  %v1241_v48 = vor.u32 1.1754944e-38, %v1240_v27  ;;  %vm2793_vm9 = vweird.f32 %v4469_v15  ;;  %vm4527_vm10 = vcmp.eq.f32.partialorder %v1238_v31, 8.507059e+37  ;;  %vm2315_vm13 = vmor %vm2313_vm2, %vm2314_vm8  ;;  %v1962_v31 = vpop.f32.mrf.mxu3 }
  0x9b   :  { %v752_v43 = vmul.f32 %v4473_v16, %v751_v30  ;;  %3688 = vrcp.f32 %v4510_v38  ;;  %vm4543_vm12 = vcmp.eq.f32.partialorder %v2797_v32, 8.507059e+37  ;;  %v2800_v60 = vor.u32 1.1754944e-38, %v2799_v37  ;;  %v310_v37 = vpop.f32.mrf.mxu0 }
  0x9c   :  { %v3681_v44 = vpop.eup %3680  ;;  %v2311_v46 = vmul.f32 %v4480_v19, %v2310_v36  ;;  %3423 = vmatmul.msk.f32.gmra.mxu0 %vm7764_vm0, %v41_v40  ;;  %3551 = vmatmul.msk.f32.gmra.mxu1 %vm7764_vm0, %v41_v40  ;;  %v773_v63 = vand.u32 2147483647, %v4507_v33  ;;  %v775_v0 = vand.u32 2147483648, %v4507_v33  ;;  %vm769_vm14 = vweird.f32 %v4507_v33 }
  0x9d   :  { %v3683_v49 = vpop.eup %3682  ;;  %v753_v50 = vadd.f32 %v4473_v16, %v752_v43  ;;  %v1230_v51 = vmul.f32 %v3681_v44, %v4460_v10  ;;  %3455 = vmatmul.msk.f32.gmra.mxu2 %vm7764_vm0, %v73_v42  ;;  %3583 = vmatmul.msk.f32.gmra.mxu3 %vm7764_vm0, %v73_v42  ;;  %vm1235_vm15 = vweird.f32 %v3681_v44  ;;  %v2334_v25 = vand.u32 2147483648, %v4510_v38 }
  0x9e   :  { %v2312_v56 = vadd.f32 %v4480_v19, %v2311_v46  ;;  %v2789_v57 = vmul.f32 %v3683_v49, %v4469_v15  ;;  %v3685_v2 = vpop.eup %3684  ;;  %vm2794_vm1 = vweird.f32 %v3683_v49  ;;  %vm4569_vm2 = vcmp.eq.f32.partialorder %v773_v63, 8.507059e+37 }
  0x9f   :  { %v757_v62 = vsel %vm756_vm11, %v4473_v16, %v753_v50  ;;  %v1231_v59 = vsub.f32 1.0, %v1230_v51  ;;  %v3687_v6 = vpop.eup %3686  ;;  %v776_v18 = vor.u32 1.1754944e-38, %v775_v0  ;;  %vm2795_vm6 = vmor %vm2793_vm9, %vm2794_vm1  ;;  %v2332_v15 = vand.u32 2147483647, %v4510_v38 }
  0xa0   :  { %v762_v3 = vsel %vm4484_vm3, %v761_v17, %v757_v62  ;;  %v2316_v4 = vsel %vm2315_vm13, %v4480_v19, %v2312_v56  ;;  %v2790_v5 = vsub.f32 1.0, %v2789_v57  ;;  %v765_v14 = vmul.f32 %v3687_v6, %v4507_v33  ;;  %vm1236_vm3 = vmor %vm1234_vm7, %vm1235_vm15  ;;  %v74_v62 = vld [vmem:[%s7759_s0 + $0x1a0] sm:$0xff] }
  0xa1   :  { %v1709_v7 = vmul.f32 %v762_v3, %v4404_v39  ;;  %v2321_v61 = vsel %vm4494_vm5, %v2320_v22, %v2316_v4  ;;  %v1232_v8 = vmul.f32 %v3681_v44, %v1231_v59  ;;  %v3689_v16 = vpop.eup %3688  ;;  %v4573_v19 = vadd.f32 1.0, %v3685_v2  ;;  %v403_v22 = vpop.f32.mrf.mxu2 }
  0xa2   :  { %v3268_v9 = vmul.f32 %v2321_v61, %v4407_v41  ;;  %v2791_v13 = vmul.f32 %v3683_v49, %v2790_v5  ;;  %v766_v20 = vsub.f32 1.0, %v765_v14  ;;  %v2324_v21 = vmul.f32 %v3689_v16, %v4510_v38 }
  0xa3   :  { %1774 = vst.msk [vmem:[%s7762_s5] sm:$0xff] %vm1773_vm4, %v1709_v7  ;;  %v1233_v17 = vadd.f32 %v3681_v44, %v1232_v8  ;;  %vm2328_vm5 = vweird.f32 %v4510_v38  ;;  %vm770_vm8 = vweird.f32 %v3687_v6  ;;  %3690 = vrcp.f32 %v4573_v19  ;;  %v42_v38 = vld [vmem:[%s7759_s0 + $0xa0] sm:$0xff]  ;;  %v1965_v8 = vpop.f32.mrf.mxu3 }
  0xa4   :  { %3332 = vst.msk [vmem:[%s7763_s6] sm:$0xff] %vm1773_vm4, %v3268_v9  ;;  %v2792_v41 = vadd.f32 %v3683_v49, %v2791_v13  ;;  %v767_v27 = vmul.f32 %v3687_v6, %v766_v20  ;;  %v2325_v30 = vsub.f32 1.0, %v2324_v21  ;;  %vm2329_vm7 = vweird.f32 %v3689_v16  ;;  %vm771_vm9 = vmor %vm769_vm14, %vm770_vm8  ;;  %3424 = vmatmul.msk.f32.gmra.mxu0 %vm7764_vm0, %v42_v38  ;;  %3552 = vmatmul.msk.f32.gmra.mxu1 %vm7764_vm0, %v42_v38 }
  0xa5   :  { %v1237_v24 = vsel %vm1236_vm3, %v3681_v44, %v1233_v17  ;;  %3692 = vpow2.f32 %v4500_v28  ;;  %v1869_v44 = vpop.f32.mrf.mxu1  ;;  %v4605_v46 = vadd.f32 %v4390_v34, %v403_v22  ;;  %v4616_v33 = vadd.f32 %v4390_v34, %v310_v37  ;;  %3456 = vmatmul.msk.f32.gmra.mxu2 %vm7764_vm0, %v74_v62  ;;  %3584 = vmatmul.msk.f32.gmra.mxu3 %vm7764_vm0, %v74_v62 }
  0xa6   :  { %v1242_v10 = vsel %vm4527_vm10, %v1241_v48, %v1237_v24  ;;  %v2796_v26 = vsel %vm2795_vm6, %v3683_v49, %v2792_v41  ;;  %v768_v42 = vadd.f32 %v3687_v6, %v767_v27  ;;  %v2326_v43 = vmul.f32 %v3689_v16, %v2325_v30  ;;  %vm2330_vm10 = vmor %vm2328_vm5, %vm2329_vm7 }
  0xa7   :  { %v1741_v32 = vmul.f32 %v1242_v10, %v4416_v45  ;;  %v2801_v36 = vsel %vm4543_vm12, %v2800_v60, %v2796_v26  ;;  %v2335_v45 = vor.u32 1.1754944e-38, %v2334_v25  ;;  %3694 = vpow2.f32 %v4503_v29 }
  0xa8   :  { %v3300_v40 = vmul.f32 %v2801_v36, %v4419_v47  ;;  %v4608_v47 = vadd.f32 %v4395_v35, %v1962_v31  ;;  %v772_v28 = vsel %vm771_vm9, %v3687_v6, %v768_v42  ;;  %v2327_v48 = vadd.f32 %v3689_v16, %v2326_v43 }
  0xa9   :  { %1806 = vst.msk [vmem:[%s7762_s5 + $0x100] sm:$0xff] %vm1773_vm4, %v1741_v32  ;;  %3696 = vpow2.f32 %v4533_v54  ;;  %v3691_v49 = vpop.eup %3690  ;;  %v777_v29 = vsel %vm4569_vm2, %v776_v18, %v772_v28  ;;  %v3502_v50 = vmul.f32 -1.442695, %v4605_v46  ;;  %v4626_v53 = vadd.f32 %v4395_v35, %v1869_v44  ;;  %v406_v2 = vpop.f32.mrf.mxu2 }
  0xaa   :  { %3364 = vst.msk [vmem:[%s7763_s6 + $0x100] sm:$0xff] %vm1773_vm4, %v3300_v40  ;;  %v3630_v51 = vmul.f32 -1.442695, %v4608_v47  ;;  %v1710_v54 = vmul.f32 %v777_v29, %v4429_v52  ;;  %v2331_v56 = vsel %vm2330_vm10, %v3689_v16, %v2327_v48  ;;  %vm2333_vm11 = vcmp.eq.f32.partialorder %v2332_v15, 8.507059e+37  ;;  %v313_v18 = vpop.f32.mrf.mxu0 }
  0xab   :  { %v1245_v57 = vmul.f32 %v3691_v49, %v4573_v19  ;;  %v2336_v58 = vsel %vm2333_vm11, %v2335_v45, %v2331_v56  ;;  %3698 = vpow2.f32 %v3502_v50  ;;  %v3471_v60 = vmul.f32 -1.442695, %v4616_v33  ;;  %v3693_v59 = vpop.eup %3692 }
  0xac   :  { %1775 = vst.msk [vmem:[%s7762_s5 + $0x8] sm:$0xff] %vm1773_vm4, %v1710_v54  ;;  %v3269_v52 = vmul.f32 %v2336_v58, %v4433_v55  ;;  %v1253_v0 = vand.u32 2147483647, %v4573_v19  ;;  %3700 = vpow2.f32 %v3630_v51  ;;  %v1255_v4 = vand.u32 2147483648, %v4573_v19 }
  0xad   :  { %v1246_v63 = vsub.f32 1.0, %v1245_v57  ;;  %v3695_v3 = vpop.eup %3694  ;;  %v4646_v5 = vadd.f32 1.0, %v3693_v59  ;;  %v3599_v6 = vmul.f32 -1.442695, %v4626_v53  ;;  %vm1250_vm12 = vweird.f32 %v3691_v49 }
  0xae   :  { %3333 = vst.msk [vmem:[%s7763_s6 + $0x8] sm:$0xff] %vm1773_vm4, %v3269_v52  ;;  %v4655_v61 = vadd.f32 1.0, %v3695_v3  ;;  %3702 = vpow2.f32 %v3471_v60  ;;  %v4659_v9 = vadd.f32 %v4390_v34, %v406_v2  ;;  %vm1249_vm13 = vweird.f32 %v4573_v19  ;;  %v43_v52 = vld [vmem:[%s7759_s0 + $0xa8] sm:$0xff] }
  0xaf   :  { %v3697_v55 = vpop.eup %3696  ;;  %v1247_v7 = vmul.f32 %v3691_v49, %v1246_v63  ;;  %3704 = vrcp.f32 %v4646_v5  ;;  %vm1254_vm14 = vcmp.eq.f32.partialorder %v1253_v0, 8.507059e+37  ;;  %vm1251_vm15 = vmor %vm1249_vm13, %vm1250_vm12  ;;  %v1256_v16 = vor.u32 1.1754944e-38, %v1255_v4  ;;  %v75_v63 = vld [vmem:[%s7759_s0 + $0x1a8] sm:$0xff]  ;;  %3425 = vmatmul.msk.f32.gmra.mxu0 %vm7764_vm0, %v43_v52  ;;  %3553 = vmatmul.msk.f32.gmra.mxu1 %vm7764_vm0, %v43_v52 }
  0xb0   :  { %3706 = vrcp.f32 %v4655_v61  ;;  %v4663_v17 = vadd.f32 1.0, %v3697_v55  ;;  %v4666_v39 = vadd.f32 %v4395_v35, %v1965_v8  ;;  %v2812_v21 = vand.u32 2147483647, %v4646_v5  ;;  %3457 = vmatmul.msk.f32.gmra.mxu2 %vm7764_vm0, %v75_v63  ;;  %3585 = vmatmul.msk.f32.gmra.mxu3 %vm7764_vm0, %v75_v63  ;;  %v1968_v63 = vpop.f32.mrf.mxu3 }
  0xb1   :  { %v1248_v13 = vadd.f32 %v3691_v49, %v1247_v7  ;;  %v3699_v14 = vpop.eup %3698  ;;  %3708 = vpow2.f32 %v3599_v6  ;;  %v2814_v22 = vand.u32 2147483648, %v4646_v5  ;;  %v788_v25 = vand.u32 2147483647, %v4655_v61 }
  0xb2   :  { %v3701_v41 = vpop.eup %3700  ;;  %v4670_v19 = vadd.f32 1.0, %v3699_v14  ;;  %3710 = vrcp.f32 %v4663_v17  ;;  %v3503_v10 = vmul.f32 -1.442695, %v4659_v9  ;;  %v790_v30 = vand.u32 2147483648, %v4655_v61 }
  0xb3   :  { %v1252_v20 = vsel %vm1251_vm15, %v3691_v49, %v1248_v13  ;;  %v4679_v31 = vadd.f32 %v4390_v34, %v313_v18  ;;  %vm2808_vm1 = vweird.f32 %v4646_v5  ;;  %vm784_vm2 = vweird.f32 %v4655_v61 }
  0xb4   :  { %v1257_v24 = vsel %vm1254_vm14, %v1256_v16, %v1252_v20  ;;  %v3703_v26 = vpop.eup %3702  ;;  %3712 = vrcp.f32 %v4670_v19  ;;  %v2349_v36 = vand.u32 2147483648, %v4663_v17  ;;  %v4684_v15 = vadd.f32 1.0, %v3701_v41 }
  0xb5   :  { %v1742_v27 = vmul.f32 %v1257_v24, %v4449_v1  ;;  %v3705_v32 = vpop.eup %3704  ;;  %vm4691_vm3 = vcmp.eq.f32.partialorder %v2812_v21, 8.507059e+37  ;;  %v2815_v42 = vor.u32 1.1754944e-38, %v2814_v22  ;;  %v2347_v43 = vand.u32 2147483647, %v4663_v17 }
  0xb6   :  { %v3707_v37 = vpop.eup %3706  ;;  %v2804_v1 = vmul.f32 %v3705_v32, %v4646_v5  ;;  %vm4697_vm5 = vcmp.eq.f32.partialorder %v788_v25, 8.507059e+37  ;;  %v1268_v48 = vand.u32 2147483647, %v4670_v19  ;;  %v1270_v49 = vand.u32 2147483648, %v4670_v19 }
  0xb7   :  { %1807 = vst.msk [vmem:[%s7762_s5 + $0x108] sm:$0xff] %vm1773_vm4, %v1742_v27  ;;  %v3709_v44 = vpop.eup %3708  ;;  %v780_v45 = vmul.f32 %v3707_v37, %v4655_v61  ;;  %3714 = vpow2.f32 %v3503_v10  ;;  %v791_v50 = vor.u32 1.1754944e-38, %v790_v30  ;;  %vm2343_vm6 = vweird.f32 %v4663_v17 }
  0xb8   :  { %v2805_v29 = vsub.f32 1.0, %v2804_v1  ;;  %3716 = vrcp.f32 %v4684_v15  ;;  %v4705_v51 = vpop.eup %3710  ;;  %vm2809_vm8 = vweird.f32 %v3705_v32  ;;  %v2350_v56 = vor.u32 1.1754944e-38, %v2349_v36  ;;  %v1872_v36 = vpop.f32.mrf.mxu1 }
  0xb9   :  { %v781_v54 = vsub.f32 1.0, %v780_v45  ;;  %vm1264_vm7 = vweird.f32 %v4670_v19  ;;  %v4708_v57 = vadd.f32 1.0, %v3703_v26  ;;  %vm785_vm9 = vweird.f32 %v3707_v37  ;;  %vm2810_vm12 = vmor %vm2808_vm1, %vm2809_vm8 }
  0xba   :  { %v4710_v58 = vpop.eup %3712  ;;  %v2806_v60 = vmul.f32 %v3705_v32, %v2805_v29  ;;  %v2339_v38 = vmul.f32 %v4705_v51, %v4663_v17  ;;  %vm4714_vm10 = vcmp.eq.f32.partialorder %v2347_v43, 8.507059e+37  ;;  %v4718_v59 = vadd.f32 1.0, %v3709_v44  ;;  %vm786_vm15 = vmor %vm784_vm2, %vm785_vm9  ;;  %v409_v17 = vpop.f32.mrf.mxu2 }
  0xbb   :  { %v782_v0 = vmul.f32 %v3707_v37, %v781_v54  ;;  %v1260_v2 = vmul.f32 %v4710_v58, %v4670_v19  ;;  %vm4728_vm11 = vcmp.eq.f32.partialorder %v1268_v48, 8.507059e+37  ;;  %v1271_v4 = vor.u32 1.1754944e-38, %v1270_v49 }
  0xbc   :  { %v2807_v6 = vadd.f32 %v3705_v32, %v2806_v60  ;;  %v2340_v55 = vsub.f32 1.0, %v2339_v38  ;;  %v2827_v7 = vand.u32 2147483647, %v4684_v15  ;;  %3718 = vrcp.f32 %v4708_v57 }
  0xbd   :  { %v3715_v8 = vpop.eup %3714  ;;  %v783_v13 = vadd.f32 %v3707_v37, %v782_v0  ;;  %vm2344_vm13 = vweird.f32 %v4705_v51  ;;  %v1261_v14 = vsub.f32 1.0, %v1260_v2  ;;  %vm2823_vm14 = vweird.f32 %v4684_v15 }
  0xbe   :  { %v2829_v16 = vand.u32 2147483648, %v4684_v15  ;;  %v3717_v18 = vpop.eup %3716  ;;  %v2811_v41 = vsel %vm2810_vm12, %v3705_v32, %v2807_v6  ;;  %v2341_v20 = vmul.f32 %v4705_v51, %v2340_v55  ;;  %vm1265_vm0 = vweird.f32 %v4710_v58  ;;  %vm2345_vm2 = vmor %vm2343_vm6, %vm2344_vm13 }
  0xbf   :  { %3720 = vrcp.f32 %v4718_v59  ;;  %v2816_v5 = vsel %vm4691_vm3, %v2815_v42, %v2811_v41  ;;  %v787_v21 = vsel %vm786_vm15, %v3707_v37, %v783_v13  ;;  %v1262_v22 = vmul.f32 %v4710_v58, %v1261_v14  ;;  %vm1266_vm3 = vmor %vm1264_vm7, %vm1265_vm0 }
  0xc0   :  { %v2819_v24 = vmul.f32 %v3717_v18, %v4684_v15  ;;  %v3301_v25 = vmul.f32 %v2816_v5, %v4463_v11  ;;  %v792_v61 = vsel %vm4697_vm5, %v791_v50, %v787_v21  ;;  %v2342_v10 = vadd.f32 %v4705_v51, %v2341_v20 }
  0xc1   :  { %vm4758_vm1 = vcmp.eq.f32.partialorder %v2827_v7, 8.507059e+37  ;;  %v1711_v27 = vmul.f32 %v792_v61, %v4466_v12  ;;  %v1263_v30 = vadd.f32 %v4710_v58, %v1262_v22  ;;  %v2830_v11 = vor.u32 1.1754944e-38, %v2829_v16  ;;  %v316_v7 = vpop.f32.mrf.mxu0 }
  0xc2   :  { %v2820_v32 = vsub.f32 1.0, %v2819_v24  ;;  %v3719_v37 = vpop.eup %3718  ;;  %3365 = vst.msk [vmem:[%s7763_s6 + $0x108] sm:$0xff] %vm1773_vm4, %v3301_v25  ;;  %v2346_v1 = vsel %vm2345_vm2, %v4705_v51, %v2342_v10  ;;  %vm2824_vm5 = vweird.f32 %v3717_v18  ;;  %vm799_vm6 = vweird.f32 %v4708_v57  ;;  %v412_v20 = vpop.f32.mrf.mxu2  ;;  %v76_v24 = vld [vmem:[%s7759_s0 + $0x1b0] sm:$0xff] }
  0xc3   :  { %v803_v12 = vand.u32 2147483647, %v4708_v57  ;;  %1776 = vst.msk [vmem:[%s7762_s5 + $0x10] sm:$0xff] %vm1773_vm4, %v1711_v27  ;;  %v2351_v40 = vsel %vm4714_vm10, %v2350_v56, %v2346_v1  ;;  %v1267_v42 = vsel %vm1266_vm3, %v4710_v58, %v1263_v30  ;;  %v795_v19 = vmul.f32 %v3719_v37, %v4708_v57  ;;  %vm2825_vm8 = vmor %vm2823_vm14, %vm2824_vm5 }
  0xc4   :  { %v2821_v43 = vmul.f32 %v3717_v18, %v2820_v32  ;;  %v3270_v45 = vmul.f32 %v2351_v40, %v4490_v23  ;;  %v1272_v28 = vsel %vm4728_vm11, %v1271_v4, %v1267_v42  ;;  %v805_v48 = vand.u32 2147483648, %v4708_v57  ;;  %v1875_v57 = vpop.f32.mrf.mxu1  ;;  %v1971_v42 = vpop.f32.mrf.mxu3 }
  0xc5   :  { %v3721_v44 = vpop.eup %3720  ;;  %vm2358_vm0 = vweird.f32 %v4718_v59  ;;  %v1743_v49 = vmul.f32 %v1272_v28, %v4605_v46  ;;  %v796_v50 = vsub.f32 1.0, %v795_v19  ;;  %vm800_vm7 = vweird.f32 %v3719_v37 }
  0xc6   :  { %v2822_v29 = vadd.f32 %v3717_v18, %v2821_v43  ;;  %v2354_v51 = vmul.f32 %v3721_v44, %v4718_v59  ;;  %3334 = vst.msk [vmem:[%s7763_s6 + $0x10] sm:$0xff] %vm1773_vm4, %v3270_v45  ;;  %v2364_v23 = vand.u32 2147483648, %v4718_v59  ;;  %v4802_v54 = vadd.f32 1.0, %v3715_v8  ;;  %vm801_vm11 = vmor %vm799_vm6, %vm800_vm7 }
  0xc7   :  { %v3631_v46 = vmul.f32 -1.442695, %v4666_v39  ;;  %1808 = vst.msk [vmem:[%s7762_s5 + $0x110] sm:$0xff] %vm1773_vm4, %v1743_v49  ;;  %v797_v58 = vmul.f32 %v3719_v37, %v796_v50  ;;  %v3472_v38 = vmul.f32 -1.442695, %v4679_v31  ;;  %vm4812_vm9 = vcmp.eq.f32.partialorder %v803_v12, 8.507059e+37 }
  0xc8   :  { %v2826_v56 = vsel %vm2825_vm8, %v3717_v18, %v2822_v29  ;;  %v2355_v60 = vsub.f32 1.0, %v2354_v51  ;;  %v2362_v52 = vand.u32 2147483647, %v4718_v59  ;;  %3722 = vrcp.f32 %v4802_v54  ;;  %v44_v59 = vld [vmem:[%s7759_s0 + $0xb0] sm:$0xff] }
  0xc9   :  { %v2831_v15 = vsel %vm4758_vm1, %v2830_v11, %v2826_v56  ;;  %v798_v2 = vadd.f32 %v3719_v37, %v797_v58  ;;  %vm2359_vm10 = vweird.f32 %v3721_v44  ;;  %v806_v4 = vor.u32 1.1754944e-38, %v805_v48  ;;  %v319_v51 = vpop.f32.mrf.mxu0 }
  0xca   :  { %v3302_v0 = vmul.f32 %v2831_v15, %v4608_v47  ;;  %v2356_v3 = vmul.f32 %v3721_v44, %v2355_v60  ;;  %3724 = vpow2.f32 %v3631_v46  ;;  %v4823_v6 = vadd.f32 %v4395_v35, %v1872_v36  ;;  %vm2360_vm12 = vmor %vm2358_vm0, %vm2359_vm10  ;;  %v415_v58 = vpop.f32.mrf.mxu2 }
  0xcb   :  { %v4826_v55 = vadd.f32 %v4390_v34, %v409_v17  ;;  %v802_v47 = vsel %vm801_vm11, %v3719_v37, %v798_v2  ;;  %v2365_v13 = vor.u32 1.1754944e-38, %v2364_v23  ;;  %3726 = vpow2.f32 %v3472_v38 }
  0xcc   :  { %3366 = vst.msk [vmem:[%s7763_s6 + $0x110] sm:$0xff] %vm1773_vm4, %v3302_v0  ;;  %v2357_v8 = vadd.f32 %v3721_v44, %v2356_v3  ;;  %v807_v14 = vsel %vm4812_vm9, %v806_v4, %v802_v47  ;;  %v3600_v16 = vmul.f32 -1.442695, %v4823_v6  ;;  %v4839_v41 = vadd.f32 %v4395_v35, %v1968_v63  ;;  %v1878_v23 = vpop.f32.mrf.mxu1 }
  0xcd   :  { %v3504_v18 = vmul.f32 -1.442695, %v4826_v55  ;;  %v1712_v5 = vmul.f32 %v807_v14, %v4616_v33  ;;  %vm2363_vm13 = vcmp.eq.f32.partialorder %v2362_v52, 8.507059e+37  ;;  %v4843_v22 = vadd.f32 %v4390_v34, %v316_v7 }
  0xce   :  { %v2361_v21 = vsel %vm2360_vm12, %v3721_v44, %v2357_v8  ;;  %v3723_v25 = vpop.eup %3722  ;;  %3728 = vpow2.f32 %v3600_v16  ;;  %v3632_v10 = vmul.f32 -1.442695, %v4839_v41  ;;  %v4853_v33 = vadd.f32 %v4395_v35, %v1875_v57 }
  0xcf   :  { %v2366_v61 = vsel %vm2363_vm13, %v2365_v13, %v2361_v21  ;;  %vm7787_vm14 = vcmask 64512   ;;  %1777 = vst.msk [vmem:[%s7762_s5 + $0x18] sm:$0xff] %vm1773_vm4, %v1712_v5  ;;  %v1275_v27 = vmul.f32 %v3723_v25, %v4802_v54  ;;  %3730 = vpow2.f32 %v3504_v18 }
  0xd0   :  { %3426 = vmatmul.msk.f32.gmra.mxu0 %vm7787_vm14, %v44_v59  ;;  %vm7788_vm15 = vmmov %vm7787_vm14  ;;  %v3271_v26 = vmul.f32 %v2366_v61, %v4626_v53  ;;  %v3725_v30 = vpop.eup %3724  ;;  %v1283_v32 = vand.u32 2147483647, %v4802_v54  ;;  %v1285_v11 = vand.u32 2147483648, %v4802_v54  ;;  %v3473_v36 = vmul.f32 -1.442695, %v4843_v22 }
  0xd1   :  { %3458 = vmatmul.msk.f32.gmra.mxu2 %vm7788_vm15, %v76_v24  ;;  %vm7789_vm1 = vmmov %vm7787_vm14  ;;  %v3727_v37 = vpop.eup %3726  ;;  %v1276_v53 = vsub.f32 1.0, %v1275_v27  ;;  %v4872_v1 = vadd.f32 1.0, %v3725_v30  ;;  %3732 = vpow2.f32 %v3632_v10  ;;  %v4875_v12 = vadd.f32 %v4390_v34, %v412_v20 }
  0xd2   :  { %3554 = vmatmul.msk.f32.gmra.mxu1 %vm7789_vm1, %v44_v59  ;;  %vm7790_vm2 = vmmov %vm7789_vm1  ;;  %3335 = vst.msk [vmem:[%s7763_s6 + $0x18] sm:$0xff] %vm1773_vm4, %v3271_v26  ;;  %v4877_v17 = vadd.f32 1.0, %v3727_v37  ;;  %3734 = vpow2.f32 %v3473_v36  ;;  %v3601_v40 = vmul.f32 -1.442695, %v4853_v33  ;;  %vm1280_vm3 = vweird.f32 %v3723_v25 }
  0xd3   :  { %3586 = vmatmul.msk.f32.gmra.mxu3 %vm7790_vm2, %v76_v24  ;;  %v1277_v43 = vmul.f32 %v3723_v25, %v1276_v53  ;;  %3736 = vrcp.f32 %v4872_v1  ;;  %vm1279_vm5 = vweird.f32 %v4802_v54  ;;  %vm4882_vm6 = vcmp.eq.f32.partialorder %v1283_v32, 8.507059e+37  ;;  %v45_v53 = vld [vmem:[%s7759_s0 + $0xb8] sm:$0xff] }
  0xd4   :  { %v3729_v19 = vpop.eup %3728  ;;  %v1286_v45 = vor.u32 1.1754944e-38, %v1285_v11  ;;  %3738 = vrcp.f32 %v4877_v17  ;;  %v3505_v29 = vmul.f32 -1.442695, %v4875_v12  ;;  %v4891_v50 = vadd.f32 %v4395_v35, %v1971_v42  ;;  %vm1281_vm0 = vmor %vm1279_vm5, %vm1280_vm3 }
  0xd5   :  { %v3731_v28 = vpop.eup %3730  ;;  %v1278_v48 = vadd.f32 %v3723_v25, %v1277_v43  ;;  %v4887_v49 = vadd.f32 1.0, %v3729_v19  ;;  %v2842_v54 = vand.u32 2147483647, %v4872_v1  ;;  %v2844_v46 = vand.u32 2147483648, %v4872_v1  ;;  %vm7801_vm3 = vmmov %vm7790_vm2 }
  0xd6   :  { %v4895_v56 = vadd.f32 1.0, %v3731_v28  ;;  %3740 = vpow2.f32 %v3601_v40  ;;  %v818_v15 = vand.u32 2147483647, %v4877_v17  ;;  %v820_v62 = vand.u32 2147483648, %v4877_v17  ;;  %v77_v40 = vld [vmem:[%s7759_s0 + $0x1b8] sm:$0xff] }
  0xd7   :  { %v3733_v60 = vpop.eup %3732  ;;  %v1282_v38 = vsel %vm1281_vm0, %v3723_v25, %v1278_v48  ;;  %3742 = vrcp.f32 %v4887_v49  ;;  %v4904_v0 = vadd.f32 %v4390_v34, %v319_v51  ;;  %v4907_v2 = vadd.f32 %v4395_v35, %v1878_v23  ;;  %vm7803_vm0 = vmmov %vm7790_vm2 }
  0xd8   :  { %v3735_v52 = vpop.eup %3734  ;;  %v1287_v63 = vsel %vm4882_vm6, %v1286_v45, %v1282_v38  ;;  %3744 = vrcp.f32 %v4895_v56  ;;  %vm2838_vm8 = vweird.f32 %v4872_v1  ;;  %vm814_vm7 = vweird.f32 %v4877_v17  ;;  %3427 = vmatmul.msk.f32.gmra.mxu0 %vm7790_vm2, %v45_v53  ;;  %vm7802_vm6 = vmmov %vm7790_vm2 }
  0xd9   :  { %v3737_v3 = vpop.eup %3736  ;;  %v1744_v4 = vmul.f32 %v1287_v63, %v4659_v9  ;;  %v4913_v7 = vadd.f32 %v4390_v34, %v415_v58  ;;  %vm4916_vm9 = vcmp.eq.f32.partialorder %v2842_v54, 8.507059e+37  ;;  %v2845_v57 = vor.u32 1.1754944e-38, %v2844_v46  ;;  %3459 = vmatmul.msk.f32.gmra.mxu2 %vm7801_vm3, %v77_v40 }
  0xda   :  { %v3739_v47 = vpop.eup %3738  ;;  %v2834_v8 = vmul.f32 %v3737_v3, %v4872_v1  ;;  %v2377_v35 = vand.u32 2147483647, %v4887_v49  ;;  %v2379_v14 = vand.u32 2147483648, %v4887_v49  ;;  %vm4927_vm10 = vcmp.eq.f32.partialorder %v818_v15, 8.507059e+37  ;;  %3555 = vmatmul.msk.f32.gmra.mxu1 %vm7802_vm6, %v45_v53 }
  0xdb   :  { %1809 = vst.msk [vmem:[%s7762_s5 + $0x118] sm:$0xff] %vm1773_vm4, %v1744_v4  ;;  %v810_v34 = vmul.f32 %v3739_v47, %v4877_v17  ;;  %v821_v16 = vor.u32 1.1754944e-38, %v820_v62  ;;  %v1298_v18 = vand.u32 2147483647, %v4895_v56  ;;  %vm2373_vm11 = vweird.f32 %v4887_v49  ;;  %3587 = vmatmul.msk.f32.gmra.mxu3 %vm7803_vm0, %v77_v40 }
  0xdc   :  { %v3741_v20 = vpop.eup %3740  ;;  %v2835_v5 = vsub.f32 1.0, %v2834_v8  ;;  %v1300_v21 = vand.u32 2147483648, %v4895_v56  ;;  %v4934_v59 = vadd.f32 1.0, %v3733_v60  ;;  %vm2839_vm12 = vweird.f32 %v3737_v3 }
  0xdd   :  { %v3743_v24 = vpop.eup %3742  ;;  %v811_v25 = vsub.f32 1.0, %v810_v34  ;;  %vm1294_vm13 = vweird.f32 %v4895_v56  ;;  %v4937_v61 = vadd.f32 1.0, %v3735_v52  ;;  %vm4940_vm14 = vcmp.eq.f32.partialorder %v2377_v35, 8.507059e+37  ;;  %vm2840_vm5 = vmor %vm2838_vm8, %vm2839_vm12 }
  0xde   :  { %v3745_v10 = vpop.eup %3744  ;;  %v2836_v26 = vmul.f32 %v3737_v3, %v2835_v5  ;;  %v2369_v27 = vmul.f32 %v3743_v24, %v4887_v49  ;;  %v2380_v32 = vor.u32 1.1754944e-38, %v2379_v14  ;;  %3746 = vrcp.f32 %v4934_v59 }
  0xdf   :  { %v812_v11 = vmul.f32 %v3739_v47, %v811_v25  ;;  %vm815_vm15 = vweird.f32 %v3739_v47  ;;  %v1290_v36 = vmul.f32 %v3745_v10, %v4895_v56  ;;  %vm4946_vm1 = vcmp.eq.f32.partialorder %v1298_v18, 8.507059e+37 }
  0xe0   :  { %v2837_v42 = vadd.f32 %v3737_v3, %v2836_v26  ;;  %v2370_v43 = vsub.f32 1.0, %v2369_v27  ;;  %v1301_v19 = vor.u32 1.1754944e-38, %v1300_v21  ;;  %3748 = vpow2.f32 %v3505_v29  ;;  %vm816_vm2 = vmor %vm814_vm7, %vm815_vm15  ;;  %v1974_v27 = vpop.f32.mrf.mxu3 }
  0xe1   :  { %v813_v44 = vadd.f32 %v3739_v47, %v812_v11  ;;  %v1291_v45 = vsub.f32 1.0, %v1290_v36  ;;  %3750 = vrcp.f32 %v4937_v61  ;;  %v4962_v28 = vadd.f32 1.0, %v3741_v20 }
  0xe2   :  { %v2841_v48 = vsel %vm2840_vm5, %v3737_v3, %v2837_v42  ;;  %v2371_v29 = vmul.f32 %v3743_v24, %v2370_v43  ;;  %vm2374_vm3 = vweird.f32 %v3743_v24  ;;  %v3633_v1 = vmul.f32 -1.442695, %v4891_v50  ;;  %v46_v42 = vld [vmem:[%s7759_s0 + $0xc0] sm:$0xff] }
  0xe3   :  { %v2846_v51 = vsel %vm4916_vm9, %v2845_v57, %v2841_v48  ;;  %v817_v23 = vsel %vm816_vm2, %v3739_v47, %v813_v44  ;;  %v1292_v54 = vmul.f32 %v3745_v10, %v1291_v45  ;;  %vm1295_vm8 = vweird.f32 %v3745_v10  ;;  %vm2375_vm7 = vmor %vm2373_vm11, %vm2374_vm3  ;;  %v78_v43 = vld [vmem:[%s7759_s0 + $0x1c0] sm:$0xff] }
  0xe4   :  { %v3747_v46 = vpop.eup %3746  ;;  %v3303_v58 = vmul.f32 %v2846_v51, %v4666_v39  ;;  %v822_v60 = vsel %vm4927_vm10, %v821_v16, %v817_v23  ;;  %v2372_v38 = vadd.f32 %v3743_v24, %v2371_v29  ;;  %v3474_v17 = vmul.f32 -1.442695, %v4904_v0  ;;  %vm1296_vm10 = vmor %vm1294_vm13, %vm1295_vm8  ;;  %v5046_v44 = vld [vmem:[%s7761_s4] ss:$0 sm:$0xff]  ;;  %v322_v23 = vpop.f32.mrf.mxu0 }
  0xe5   :  { %v1713_v15 = vmul.f32 %v822_v60, %v4679_v31  ;;  %v1293_v62 = vadd.f32 %v3745_v10, %v1292_v54  ;;  %v2849_v52 = vmul.f32 %v3747_v46, %v4934_v59  ;;  %vm2853_vm9 = vweird.f32 %v4934_v59 }
  0xe6   :  { %v3749_v63 = vpop.eup %3748  ;;  %3367 = vst.msk [vmem:[%s7763_s6 + $0x118] sm:$0xff] %vm1773_vm4, %v3303_v58  ;;  %v2376_v39 = vsel %vm2375_vm7, %v3743_v24, %v2372_v38  ;;  %v2857_v31 = vand.u32 2147483647, %v4934_v59  ;;  %v2859_v49 = vand.u32 2147483648, %v4934_v59  ;;  %3752 = vrcp.f32 %v4962_v28 }
  0xe7   :  { %v3751_v3 = vpop.eup %3750  ;;  %1778 = vst.msk [vmem:[%s7762_s5 + $0x20] sm:$0xff] %vm1773_vm4, %v1713_v15  ;;  %v2381_v4 = vsel %vm4940_vm14, %v2380_v32, %v2376_v39  ;;  %v1297_v47 = vsel %vm1296_vm10, %v3745_v10, %v1293_v62  ;;  %v2850_v8 = vsub.f32 1.0, %v2849_v52  ;;  %vm829_vm11 = vweird.f32 %v4937_v61  ;;  %v1881_v62 = vpop.f32.mrf.mxu1  ;;  %v5085_v39 = vld [vmem:[%s7760_s3] ss:$0 sm:$0xff] }
  0xe8   :  { %v3272_v56 = vmul.f32 %v2381_v4, %v4823_v6  ;;  %v1302_v13 = vsel %vm4946_vm1, %v1301_v19, %v1297_v47  ;;  %v825_v57 = vmul.f32 %v3751_v3, %v4937_v61  ;;  %v833_v35 = vand.u32 2147483647, %v4937_v61 }
  0xe9   :  { %v1745_v14 = vmul.f32 %v1302_v13, %v4826_v55  ;;  %v2851_v34 = vmul.f32 %v3747_v46, %v2850_v8  ;;  %vm2854_vm12 = vweird.f32 %v3747_v46  ;;  %v835_v9 = vand.u32 2147483648, %v4937_v61 }
  0xea   :  { %3336 = vst.msk [vmem:[%s7763_s6 + $0x20] sm:$0xff] %vm1773_vm4, %v3272_v56  ;;  %v826_v16 = vsub.f32 1.0, %v825_v57  ;;  %v5008_v6 = vadd.f32 1.0, %v3749_v63  ;;  %3754 = vpow2.f32 %v3633_v1  ;;  %v3602_v18 = vmul.f32 -1.442695, %v4907_v2  ;;  %vm2855_vm14 = vmor %vm2853_vm9, %vm2854_vm12 }
  0xeb   :  { %1810 = vst.msk [vmem:[%s7762_s5 + $0x120] sm:$0xff] %vm1773_vm4, %v1745_v14  ;;  %v2852_v55 = vadd.f32 %v3747_v46, %v2851_v34  ;;  %vm2858_vm13 = vcmp.eq.f32.partialorder %v2857_v31, 8.507059e+37  ;;  %v2860_v20 = vor.u32 1.1754944e-38, %v2859_v49  ;;  %3756 = vpow2.f32 %v3474_v17  ;;  %v47_v17 = vld [vmem:[%s7759_s0 + $0xc8] sm:$0xff] }
  0xec   :  { %v3753_v5 = vpop.eup %3752  ;;  %v827_v21 = vmul.f32 %v3751_v3, %v826_v16  ;;  %vm830_vm15 = vweird.f32 %v3751_v3  ;;  %vm5017_vm1 = vcmp.eq.f32.partialorder %v833_v35, 8.507059e+37  ;;  %3758 = vrcp.f32 %v5008_v6 }
  0xed   :  { %v2856_v25 = vsel %vm2855_vm14, %v3747_v46, %v2852_v55  ;;  %v836_v10 = vor.u32 1.1754944e-38, %v835_v9  ;;  %v2384_v26 = vmul.f32 %v3753_v5, %v4962_v28  ;;  %vm2388_vm5 = vweird.f32 %v4962_v28  ;;  %vm5028_vm6 = vmor %vm829_vm11, %vm830_vm15 }
  0xee   :  { %v2861_v30 = vsel %vm2858_vm13, %v2860_v20, %v2856_v25  ;;  %v828_v32 = vadd.f32 %v3751_v3, %v827_v21  ;;  %v2392_v59 = vand.u32 2147483647, %v4962_v28  ;;  %3760 = vpow2.f32 %v3602_v18 }
  0xef   :  { %v3304_v11 = vmul.f32 %v2861_v30, %v4839_v41  ;;  %v2385_v37 = vsub.f32 1.0, %v2384_v26  ;;  %v2394_v53 = vand.u32 2147483648, %v4962_v28  ;;  %v3506_v40 = vmul.f32 -1.442695, %v4913_v7 }
  0xf0   :  { %v3755_v41 = vpop.eup %3754  ;;  %v832_v61 = vsel %vm5028_vm6, %v3751_v3, %v828_v32  ;;  %vm2389_vm0 = vweird.f32 %v3753_v5  ;;  %v1313_v19 = vand.u32 2147483647, %v5008_v6  ;;  %v5049_v45 = vadd.f32 %v5046_v44, %v1974_v27 }
  0xf1   :  { %vm7808_vm2 = vcmask 64512   ;;  %v3757_v48 = vpop.eup %3756  ;;  %3368 = vst.msk [vmem:[%s7763_s6 + $0x120] sm:$0xff] %vm1773_vm4, %v3304_v11  ;;  %v837_v29 = vsel %vm5017_vm1, %v836_v10, %v832_v61  ;;  %v2386_v1 = vmul.f32 %v3753_v5, %v2385_v37  ;;  %v5058_v51 = vadd.f32 1.0, %v3755_v41  ;;  %vm2390_vm10 = vmor %vm2388_vm5, %vm2389_vm0  ;;  %v418_v61 = vpop.f32.mrf.mxu2 }
  0xf2   :  { %3428 = vmatmul.msk.f32.gmra.mxu0 %vm7808_vm2, %v46_v42  ;;  %3762 = vpow2.f32 %v3506_v40  ;;  %vm7809_vm3 = vmmov %vm7808_vm2  ;;  %v3759_v54 = vpop.eup %3758  ;;  %v1714_v46 = vmul.f32 %v837_v29, %v4843_v22  ;;  %v1315_v58 = vand.u32 2147483648, %v5008_v6  ;;  %v5064_v60 = vadd.f32 1.0, %v3757_v48 }
  0xf3   :  { %3460 = vmatmul.msk.f32.gmra.mxu2 %vm7809_vm3, %v78_v43  ;;  %vm7810_vm8 = vmmov %vm7808_vm2  ;;  %v2387_v38 = vadd.f32 %v3753_v5, %v2386_v1  ;;  %vm5067_vm9 = vcmp.eq.f32.partialorder %v2392_v59, 8.507059e+37  ;;  %v1305_v15 = vmul.f32 %v3759_v54, %v5008_v6  ;;  %3764 = vrcp.f32 %v5058_v51 }
  0xf4   :  { %3556 = vmatmul.msk.f32.gmra.mxu1 %vm7810_vm8, %v46_v42  ;;  %vm7811_vm7 = vmmov %vm7808_vm2  ;;  %v3761_v52 = vpop.eup %3760  ;;  %1779 = vst.msk [vmem:[%s7762_s5 + $0x28] sm:$0xff] %vm1773_vm4, %v1714_v46  ;;  %v2395_v22 = vor.u32 1.1754944e-38, %v2394_v53  ;;  %3766 = vrcp.f32 %v5064_v60  ;;  %v3634_v63 = vmul.f32 -1.442695, %v5049_v45  ;;  %v5088_v31 = vadd.f32 %v5085_v39, %v322_v23 }
  0xf5   :  { %3588 = vmatmul.msk.f32.gmra.mxu3 %vm7811_vm7, %v78_v43  ;;  %v2391_v49 = vsel %vm2390_vm10, %v3753_v5, %v2387_v38  ;;  %v1306_v3 = vsub.f32 1.0, %v1305_v15  ;;  %vm1309_vm11 = vweird.f32 %v5008_v6  ;;  %vm5091_vm12 = vcmp.eq.f32.partialorder %v1313_v19, 8.507059e+37  ;;  %v79_v15 = vld [vmem:[%s7759_s0 + $0x1c8] sm:$0xff] }
  0xf6   :  { %v2396_v4 = vsel %vm5067_vm9, %v2395_v22, %v2391_v49  ;;  %vm1310_vm13 = vweird.f32 %v3759_v54  ;;  %v1316_v47 = vor.u32 1.1754944e-38, %v1315_v58  ;;  %v5098_v8 = vadd.f32 %v5046_v44, %v1881_v62 }
  0xf7   :  { %v3273_v13 = vmul.f32 %v2396_v4, %v4853_v33  ;;  %v1307_v57 = vmul.f32 %v3759_v54, %v1306_v3  ;;  %v2872_v35 = vand.u32 2147483647, %v5058_v51  ;;  %v5102_v14 = vadd.f32 1.0, %v3761_v52  ;;  %vm1311_vm15 = vmor %vm1309_vm11, %vm1310_vm13 }
  0xf8   :  { %v3763_v56 = vpop.eup %3762  ;;  %vm2868_vm14 = vweird.f32 %v5058_v51  ;;  %3768 = vpow2.f32 %v3634_v63  ;;  %v3475_v9 = vmul.f32 -1.442695, %v5088_v31  ;;  %v2874_v33 = vand.u32 2147483648, %v5058_v51 }
  0xf9   :  { %v5105_v34 = vadd.f32 1.0, %v3763_v56  ;;  %v3765_v16 = vpop.eup %3764  ;;  %3337 = vst.msk [vmem:[%s7763_s6 + $0x28] sm:$0xff] %vm1773_vm4, %v3273_v13  ;;  %v1308_v18 = vadd.f32 %v3759_v54, %v1307_v57  ;;  %v848_v55 = vand.u32 2147483647, %v5064_v60  ;;  %3770 = vrcp.f32 %v5102_v14 }
  0xfa   :  { %v3767_v20 = vpop.eup %3766  ;;  %v2864_v5 = vmul.f32 %v3765_v16, %v5058_v51  ;;  %vm844_vm1 = vweird.f32 %v5064_v60  ;;  %v850_v21 = vand.u32 2147483648, %v5064_v60  ;;  %vm5122_vm5 = vcmp.eq.f32.partialorder %v2872_v35, 8.507059e+37 }
  0xfb   :  { %3772 = vrcp.f32 %v5105_v34  ;;  %v1312_v24 = vsel %vm1311_vm15, %v3759_v54, %v1308_v18  ;;  %v840_v10 = vmul.f32 %v3767_v20, %v5064_v60  ;;  %v3603_v26 = vmul.f32 -1.442695, %v5098_v8  ;;  %v1977_v54 = vpop.f32.mrf.mxu3 }
  0xfc   :  { %v1317_v6 = vsel %vm5091_vm12, %v1316_v47, %v1312_v24  ;;  %v2865_v27 = vsub.f32 1.0, %v2864_v5  ;;  %v2407_v30 = vand.u32 2147483647, %v5102_v14  ;;  %v2409_v32 = vand.u32 2147483648, %v5102_v14  ;;  %v1884_v24 = vpop.f32.mrf.mxu1 }
  0xfd   :  { %v1746_v59 = vmul.f32 %v1317_v6, %v4875_v12  ;;  %v2875_v11 = vor.u32 1.1754944e-38, %v2874_v33  ;;  %v841_v36 = vsub.f32 1.0, %v840_v10  ;;  %vm5133_vm6 = vcmp.eq.f32.partialorder %v848_v55, 8.507059e+37 }
  0xfe   :  { %v3769_v53 = vpop.eup %3768  ;;  %v2866_v40 = vmul.f32 %v3765_v16, %v2865_v27  ;;  %vm2869_vm0 = vweird.f32 %v3765_v16  ;;  %v851_v42 = vor.u32 1.1754944e-38, %v850_v21  ;;  %3774 = vpow2.f32 %v3475_v9  ;;  %v325_v9 = vpop.f32.mrf.mxu0 }
  0xff   :  { %v5137_v43 = vpop.eup %3770  ;;  %1811 = vst.msk [vmem:[%s7762_s5 + $0x128] sm:$0xff] %vm1773_vm4, %v1746_v59  ;;  %v842_v41 = vmul.f32 %v3767_v20, %v841_v36  ;;  %vm845_vm2 = vweird.f32 %v3767_v20  ;;  %vm2403_vm3 = vweird.f32 %v5102_v14  ;;  %v5144_v12 = vadd.f32 1.0, %v3769_v53  ;;  %vm2870_vm7 = vmor %vm2868_vm14, %vm2869_vm0 }
 0x100   :  { %v2867_v48 = vadd.f32 %v3765_v16, %v2866_v40  ;;  %v2399_v29 = vmul.f32 %v5137_v43, %v5102_v14  ;;  %vm5150_vm8 = vcmp.eq.f32.partialorder %v2407_v30, 8.507059e+37  ;;  %v2410_v23 = vor.u32 1.1754944e-38, %v2409_v32  ;;  %vm846_vm9 = vmor %vm844_vm1, %vm845_vm2 }
 0x101   :  { %v5146_v19 = vpop.eup %3772  ;;  %3776 = vpow2.f32 %v3603_v26  ;;  %v843_v46 = vadd.f32 %v3767_v20, %v842_v41  ;;  %v1328_v38 = vand.u32 2147483647, %v5105_v34  ;;  %v1330_v52 = vand.u32 2147483648, %v5105_v34 }
 0x102   :  { %v1320_v58 = vmul.f32 %v5146_v19, %v5105_v34  ;;  %3778 = vrcp.f32 %v5144_v12  ;;  %v2871_v62 = vsel %vm2870_vm7, %v3765_v16, %v2867_v48  ;;  %v2400_v51 = vsub.f32 1.0, %v2399_v29 }
 0x103   :  { %v5172_v22 = vadd.f32 %v5085_v39, %v418_v61  ;;  %vm7822_vm10 = vcmask 64512   ;;  %v2876_v63 = vsel %vm5122_vm5, %v2875_v11, %v2871_v62  ;;  %v847_v49 = vsel %vm846_vm9, %v3767_v20, %v843_v46  ;;  %v421_v11 = vpop.f32.mrf.mxu2 }
 0x104   :  { %3429 = vmatmul.msk.f32.gmra.mxu0 %vm7822_vm10, %v47_v17  ;;  %vm7823_vm11 = vmmov %vm7822_vm10  ;;  %v1321_v3 = vsub.f32 1.0, %v1320_v58  ;;  %v5179_v28 = vadd.f32 %v5046_v44, %v1977_v54  ;;  %v3775_v60 = vpop.eup %3774  ;;  %v3305_v4 = vmul.f32 %v2876_v63, %v4891_v50  ;;  %v852_v47 = vsel %vm5133_vm6, %v851_v42, %v847_v49  ;;  %v1980_v42 = vpop.f32.mrf.mxu3 }
 0x105   :  { %3461 = vmatmul.msk.f32.gmra.mxu2 %vm7823_vm11, %v79_v15  ;;  %vm7824_vm12 = vmmov %vm7822_vm10  ;;  %v2401_v56 = vmul.f32 %v5137_v43, %v2400_v51  ;;  %vm2404_vm14 = vweird.f32 %v5137_v43  ;;  %v1715_v13 = vmul.f32 %v852_v47, %v4904_v0  ;;  %vm1325_vm15 = vweird.f32 %v5146_v19 }
 0x106   :  { %3557 = vmatmul.msk.f32.gmra.mxu1 %vm7824_vm12, %v47_v17  ;;  %vm7825_vm13 = vmmov %vm7822_vm10  ;;  %v1322_v57 = vmul.f32 %v5146_v19, %v1321_v3  ;;  %v5191_v35 = vadd.f32 1.0, %v3775_v60  ;;  %3369 = vst.msk [vmem:[%s7763_s6 + $0x128] sm:$0xff] %vm1773_vm4, %v3305_v4  ;;  %vm1324_vm1 = vweird.f32 %v5105_v34  ;;  %vm5199_vm5 = vcmp.eq.f32.partialorder %v1328_v38, 8.507059e+37  ;;  %v1887_v4 = vpop.f32.mrf.mxu1 }
 0x107   :  { %3589 = vmatmul.msk.f32.gmra.mxu3 %vm7825_vm13, %v79_v15  ;;  %v3777_v16 = vpop.eup %3776  ;;  %v2402_v50 = vadd.f32 %v5137_v43, %v2401_v56  ;;  %v1331_v0 = vor.u32 1.1754944e-38, %v1330_v52  ;;  %1780 = vst.msk [vmem:[%s7762_s5 + $0x30] sm:$0xff] %vm1773_vm4, %v1715_v13  ;;  %vm2405_vm6 = vmor %vm2403_vm3, %vm2404_vm14  ;;  %vm2883_vm0 = vweird.f32 %v5144_v12  ;;  %v2887_v34 = vand.u32 2147483647, %v5144_v12  ;;  %v328_v15 = vpop.f32.mrf.mxu0 }
 0x108   :  { %v3779_v33 = vpop.eup %3778  ;;  %v1323_v55 = vadd.f32 %v5146_v19, %v1322_v57  ;;  %3780 = vrcp.f32 %v5191_v35  ;;  %vm1326_vm2 = vmor %vm1324_vm1, %vm1325_vm15  ;;  %v3507_v21 = vmul.f32 -1.442695, %v5172_v22  ;;  %v5219_v14 = vadd.f32 %v5085_v39, %v325_v9 }
 0x109   :  { %v2406_v20 = vsel %vm2405_vm6, %v5137_v43, %v2402_v50  ;;  %v2879_v5 = vmul.f32 %v3779_v33, %v5144_v12  ;;  %v5224_v26 = vadd.f32 1.0, %v3777_v16  ;;  %v3635_v6 = vmul.f32 -1.442695, %v5179_v28 }
 0x10a   :  { %v2411_v25 = vsel %vm5150_vm8, %v2410_v23, %v2406_v20  ;;  %v1327_v10 = vsel %vm1326_vm2, %v5146_v19, %v1323_v55  ;;  %v2889_v59 = vand.u32 2147483648, %v5144_v12  ;;  %vm2884_vm3 = vweird.f32 %v3779_v33  ;;  %v48_v55 = vld [vmem:[%s7759_s0 + $0xd0] sm:$0xff] }
 0x10b   :  { %v3274_v27 = vmul.f32 %v2411_v25, %v4907_v2  ;;  %v1332_v30 = vsel %vm5199_vm5, %v1331_v0, %v1327_v10  ;;  %v2880_v32 = vsub.f32 1.0, %v2879_v5  ;;  %v863_v37 = vand.u32 2147483647, %v5191_v35  ;;  %vm2885_vm9 = vmor %vm2883_vm0, %vm2884_vm3  ;;  %v424_v16 = vpop.f32.mrf.mxu2 }
 0x10c   :  { %v1747_v36 = vmul.f32 %v1332_v30, %v4913_v7  ;;  %3782 = vrcp.f32 %v5224_v26  ;;  %v865_v53 = vand.u32 2147483648, %v5191_v35  ;;  %v3476_v40 = vmul.f32 -1.442695, %v5219_v14 }
 0x10d   :  { %3338 = vst.msk [vmem:[%s7763_s6 + $0x30] sm:$0xff] %vm1773_vm4, %v3274_v27  ;;  %v2881_v2 = vmul.f32 %v3779_v33, %v2880_v32  ;;  %3784 = vpow2.f32 %v3507_v21  ;;  %vm5244_vm8 = vcmp.eq.f32.partialorder %v2887_v34, 8.507059e+37  ;;  %v5249_v41 = vadd.f32 %v5046_v44, %v1884_v24 }
 0x10e   :  { %v3781_v43 = vpop.eup %3780  ;;  %1812 = vst.msk [vmem:[%s7762_s5 + $0x130] sm:$0xff] %vm1773_vm4, %v1747_v36  ;;  %3786 = vpow2.f32 %v3635_v6  ;;  %v5252_v61 = vadd.f32 %v5085_v39, %v421_v11  ;;  %v2890_v48 = vor.u32 1.1754944e-38, %v2889_v59  ;;  %vm859_vm7 = vweird.f32 %v5191_v35 }
 0x10f   :  { %v2882_v19 = vadd.f32 %v3779_v33, %v2881_v2  ;;  %v855_v29 = vmul.f32 %v3781_v43, %v5191_v35  ;;  %3788 = vpow2.f32 %v3476_v40  ;;  %v3604_v1 = vmul.f32 -1.442695, %v5249_v41  ;;  %v80_v35 = vld [vmem:[%s7759_s0 + $0x1d0] sm:$0xff] }
 0x110   :  { %v3508_v23 = vmul.f32 -1.442695, %v5252_v61  ;;  %v5262_v54 = vadd.f32 %v5046_v44, %v1980_v42  ;;  %vm5264_vm10 = vcmp.eq.f32.partialorder %v863_v37, 8.507059e+37  ;;  %v866_v17 = vor.u32 1.1754944e-38, %v865_v53 }
 0x111   :  { %v2886_v46 = vsel %vm2885_vm9, %v3779_v33, %v2882_v19  ;;  %v856_v58 = vsub.f32 1.0, %v855_v29  ;;  %v2422_v51 = vand.u32 2147483647, %v5224_v26  ;;  %3790 = vpow2.f32 %v3604_v1 }
 0x112   :  { %v3783_v62 = vpop.eup %3782  ;;  %v2891_v12 = vsel %vm5244_vm8, %v2890_v48, %v2886_v46  ;;  %v3636_v52 = vmul.f32 -1.442695, %v5262_v54  ;;  %vm860_vm11 = vweird.f32 %v3781_v43  ;;  %vm2418_vm12 = vweird.f32 %v5224_v26 }
 0x113   :  { %v3785_v63 = vpop.eup %3784  ;;  %v3306_v49 = vmul.f32 %v2891_v12, %v5049_v45  ;;  %v857_v3 = vmul.f32 %v3781_v43, %v856_v58  ;;  %v2414_v60 = vmul.f32 %v3783_v62, %v5224_v26  ;;  %3792 = vpow2.f32 %v3508_v23  ;;  %vm861_vm13 = vmor %vm859_vm7, %vm860_vm11 }
 0x114   :  { %v3787_v47 = vpop.eup %3786  ;;  %v5275_v56 = vadd.f32 1.0, %v3785_v63  ;;  %v5278_v13 = vadd.f32 %v5085_v39, %v328_v15  ;;  %3794 = vpow2.f32 %v3636_v52  ;;  %vm5289_vm14 = vcmp.eq.f32.partialorder %v2422_v51, 8.507059e+37  ;;  %v1983_v52 = vpop.f32.mrf.mxu3 }
 0x115   :  { %3370 = vst.msk [vmem:[%s7763_s6 + $0x130] sm:$0xff] %vm1773_vm4, %v3306_v49  ;;  %v858_v45 = vadd.f32 %v3781_v43, %v857_v3  ;;  %v2415_v57 = vsub.f32 1.0, %v2414_v60  ;;  %v5284_v9 = vadd.f32 1.0, %v3787_v47  ;;  %v3789_v50 = vpop.eup %3788  ;;  %v2424_v0 = vand.u32 2147483648, %v5224_v26 }
 0x116   :  { %3796 = vrcp.f32 %v5275_v56  ;;  %v5296_v33 = vadd.f32 %v5046_v44, %v1887_v4  ;;  %vm2419_vm15 = vweird.f32 %v3783_v62  ;;  %vm7834_vm1 = vcmask 64512  }
 0x117   :  { %v862_v34 = vsel %vm861_vm13, %v3781_v43, %v858_v45  ;;  %v2416_v20 = vmul.f32 %v3783_v62, %v2415_v57  ;;  %3798 = vrcp.f32 %v5284_v9  ;;  %3430 = vmatmul.msk.f32.gmra.mxu0 %vm7834_vm1, %v48_v55  ;;  %vm7835_vm5 = vmmov %vm7834_vm1  ;;  %v3791_v5 = vpop.eup %3790  ;;  %v1345_v24 = vand.u32 2147483648, %v5275_v56 }
 0x118   :  { %3462 = vmatmul.msk.f32.gmra.mxu2 %vm7835_vm5, %v80_v35  ;;  %v867_v21 = vsel %vm5264_vm10, %v866_v17, %v862_v34  ;;  %v3477_v25 = vmul.f32 -1.442695, %v5278_v13  ;;  %v5312_v10 = vadd.f32 %v5085_v39, %v424_v16  ;;  %vm7836_vm6 = vmmov %vm7834_vm1  ;;  %v1343_v30 = vand.u32 2147483647, %v5275_v56 }
 0x119   :  { %3558 = vmatmul.msk.f32.gmra.mxu1 %vm7836_vm6, %v48_v55  ;;  %vm7837_vm0 = vmmov %vm7834_vm1  ;;  %v1716_v6 = vmul.f32 %v867_v21, %v5088_v31  ;;  %v2417_v27 = vadd.f32 %v3783_v62, %v2416_v20  ;;  %v5318_v32 = vadd.f32 1.0, %v3789_v50  ;;  %v3793_v59 = vpop.eup %3792  ;;  %v2425_v11 = vor.u32 1.1754944e-38, %v2424_v0  ;;  %v427_v55 = vpop.f32.mrf.mxu2 }
 0x11a   :  { %3590 = vmatmul.msk.f32.gmra.mxu3 %vm7837_vm0, %v80_v35  ;;  %vm2420_vm2 = vmor %vm2418_vm12, %vm2419_vm15  ;;  %v2902_v36 = vand.u32 2147483647, %v5284_v9  ;;  %v2904_v37 = vand.u32 2147483648, %v5284_v9  ;;  %v5325_v2 = vadd.f32 1.0, %v3791_v5  ;;  %v3795_v53 = vpop.eup %3794  ;;  %vm1339_vm3 = vweird.f32 %v5275_v56  ;;  %v49_v5 = vld [vmem:[%s7759_s0 + $0xd8] sm:$0xff] }
 0x11b   :  { %1781 = vst.msk [vmem:[%s7762_s5 + $0x38] sm:$0xff] %vm1773_vm4, %v1716_v6  ;;  %v2421_v31 = vsel %vm2420_vm2, %v3783_v62, %v2417_v27  ;;  %3800 = vrcp.f32 %v5318_v32  ;;  %v3605_v26 = vmul.f32 -1.442695, %v5296_v33  ;;  %v1346_v43 = vor.u32 1.1754944e-38, %v1345_v24  ;;  %vm7850_vm2 = vmmov %vm7837_vm0 }
 0x11c   :  { %v3797_v40 = vpop.eup %3796  ;;  %v2426_v42 = vsel %vm5289_vm14, %v2425_v11, %v2421_v31  ;;  %vm2898_vm8 = vweird.f32 %v5284_v9  ;;  %3802 = vrcp.f32 %v5325_v2  ;;  %vm5340_vm7 = vcmp.eq.f32.partialorder %v1343_v30, 8.507059e+37 }
 0x11d   :  { %v3799_v7 = vpop.eup %3798  ;;  %v3275_v19 = vmul.f32 %v2426_v42, %v5098_v8  ;;  %v1335_v48 = vmul.f32 %v3797_v40, %v5275_v56  ;;  %3804 = vpow2.f32 %v3477_v25  ;;  %v5345_v1 = vmul.f32 -1.442695, %v5312_v10  ;;  %v81_v56 = vld [vmem:[%s7759_s0 + $0x1d8] sm:$0xff] }
 0x11e   :  { %v2894_v23 = vmul.f32 %v3799_v7, %v5284_v9  ;;  %vm5348_vm9 = vcmp.eq.f32.partialorder %v2902_v36, 8.507059e+37  ;;  %v2905_v58 = vor.u32 1.1754944e-38, %v2904_v37  ;;  %vm874_vm10 = vweird.f32 %v5318_v32 }
 0x11f   :  { %v878_v8 = vand.u32 2147483647, %v5318_v32  ;;  %3339 = vst.msk [vmem:[%s7763_s6 + $0x38] sm:$0xff] %vm1773_vm4, %v3275_v19  ;;  %v1336_v38 = vsub.f32 1.0, %v1335_v48  ;;  %vm1340_vm11 = vweird.f32 %v3797_v40  ;;  %v880_v17 = vand.u32 2147483648, %v5318_v32  ;;  %3431 = vmatmul.msk.f32.gmra.mxu0 %vm7837_vm0, %v49_v5 }
 0x120   :  { %v5359_v15 = vadd.f32 1.0, %v3793_v59  ;;  %v2895_v62 = vsub.f32 1.0, %v2894_v23  ;;  %v2437_v12 = vand.u32 2147483647, %v5325_v2  ;;  %v5362_v51 = vadd.f32 1.0, %v3795_v53  ;;  %vm5379_vm15 = vmor %vm1339_vm3, %vm1340_vm11  ;;  %3463 = vmatmul.msk.f32.gmra.mxu2 %vm7850_vm2, %v81_v56  ;;  %v331_v23 = vpop.f32.mrf.mxu0 }
 0x121   :  { %3806 = vpow2.f32 %v3605_v26  ;;  %v3801_v63 = vpop.eup %3800  ;;  %v1337_v49 = vmul.f32 %v3797_v40, %v1336_v38  ;;  %vm2433_vm12 = vweird.f32 %v5325_v2  ;;  %v2439_v3 = vand.u32 2147483648, %v5325_v2  ;;  %vm7852_vm11 = vmmov %vm7837_vm0 }
 0x122   :  { %3808 = vrcp.f32 %v5359_v15  ;;  %v3803_v60 = vpop.eup %3802  ;;  %v2896_v4 = vmul.f32 %v3799_v7, %v2895_v62  ;;  %vm2899_vm13 = vweird.f32 %v3799_v7  ;;  %v870_v47 = vmul.f32 %v3801_v63, %v5318_v32  ;;  %3591 = vmatmul.msk.f32.gmra.mxu3 %vm7852_vm11, %v81_v56 }
 0x123   :  { %vm5368_vm14 = vcmp.eq.f32.partialorder %v878_v8, 8.507059e+37  ;;  %v3805_v57 = vpop.eup %3804  ;;  %v1338_v16 = vadd.f32 %v3797_v40, %v1337_v49  ;;  %v881_v50 = vor.u32 1.1754944e-38, %v880_v17  ;;  %v2429_v18 = vmul.f32 %v3803_v60, %v5325_v2  ;;  %vm5399_vm5 = vmor %vm2898_vm8, %vm2899_vm13 }
 0x124   :  { %v5374_v0 = vadd.f32 %v5046_v44, %v1983_v52  ;;  %v2897_v35 = vadd.f32 %v3799_v7, %v2896_v4  ;;  %v871_v34 = vsub.f32 1.0, %v870_v47  ;;  %vm5383_vm1 = vcmp.eq.f32.partialorder %v2437_v12, 8.507059e+37  ;;  %vm7851_vm8 = vmmov %vm7837_vm0 }
 0x125   :  { %3810 = vrcp.f32 %v5362_v51  ;;  %v1342_v21 = vsel %vm5379_vm15, %v3797_v40, %v1338_v16  ;;  %vm875_vm6 = vweird.f32 %v3801_v63  ;;  %v2430_v25 = vsub.f32 1.0, %v2429_v18  ;;  %3559 = vmatmul.msk.f32.gmra.mxu1 %vm7851_vm8, %v49_v5  ;;  %v1986_v5 = vpop.f32.mrf.mxu3 }
 0x126   :  { %v2440_v6 = vor.u32 1.1754944e-38, %v2439_v3  ;;  %v1347_v30 = vsel %vm5340_vm7, %v1346_v43, %v1342_v21  ;;  %v2901_v59 = vsel %vm5399_vm5, %v3799_v7, %v2897_v35  ;;  %v872_v11 = vmul.f32 %v3801_v63, %v871_v34  ;;  %vm876_vm7 = vmor %vm874_vm10, %vm875_vm6 }
 0x127   :  { %v3807_v27 = vpop.eup %3806  ;;  %vm1354_vm3 = vweird.f32 %v5359_v15  ;;  %v1748_v36 = vmul.f32 %v1347_v30, %v5172_v22  ;;  %v2906_v37 = vsel %vm5348_vm9, %v2905_v58, %v2901_v59  ;;  %v2431_v53 = vmul.f32 %v3803_v60, %v2430_v25 }
 0x128   :  { %v3809_v9 = vpop.eup %3808  ;;  %vm2434_vm13 = vweird.f32 %v3803_v60  ;;  %v3307_v31 = vmul.f32 %v2906_v37, %v5179_v28  ;;  %v873_v26 = vadd.f32 %v3801_v63, %v872_v11  ;;  %v1358_v42 = vand.u32 2147483647, %v5359_v15  ;;  %v334_v30 = vpop.f32.mrf.mxu0 }
 0x129   :  { %v1350_v40 = vmul.f32 %v3809_v9, %v5359_v15  ;;  %1813 = vst.msk [vmem:[%s7762_s5 + $0x138] sm:$0xff] %vm1773_vm4, %v1748_v36  ;;  %v2432_v22 = vadd.f32 %v3803_v60, %v2431_v53  ;;  %v1360_v43 = vand.u32 2147483648, %v5359_v15  ;;  %v2917_v7 = vand.u32 2147483647, %v5362_v51  ;;  %vm2435_vm9 = vmor %vm2433_vm12, %vm2434_vm13 }
 0x12a   :  { %v5427_v28 = vadd.f32 1.0, %v3805_v57  ;;  %3371 = vst.msk [vmem:[%s7763_s6 + $0x138] sm:$0xff] %vm1773_vm4, %v3307_v31  ;;  %v877_v48 = vsel %vm876_vm7, %v3801_v63, %v873_v26  ;;  %v5435_v32 = vadd.f32 1.0, %v3807_v27  ;;  %3812 = vpow2.f32 %v5345_v1 }
 0x12b   :  { %v3811_v19 = vpop.eup %3810  ;;  %v1351_v29 = vsub.f32 1.0, %v1350_v40  ;;  %v882_v46 = vsel %vm5368_vm14, %v881_v50, %v877_v48  ;;  %v2436_v58 = vsel %vm2435_vm9, %v3803_v60, %v2432_v22  ;;  %v2919_v38 = vand.u32 2147483648, %v5362_v51  ;;  %v1890_v60 = vpop.f32.mrf.mxu1 }
 0x12c   :  { %v2909_v8 = vmul.f32 %v3811_v19, %v5362_v51  ;;  %v1717_v17 = vmul.f32 %v882_v46, %v5219_v14  ;;  %v2441_v2 = vsel %vm5383_vm1, %v2440_v6, %v2436_v58  ;;  %vm1355_vm10 = vweird.f32 %v3809_v9 }
 0x12d   :  { %v1352_v62 = vmul.f32 %v3809_v9, %v1351_v29  ;;  %v3276_v12 = vmul.f32 %v2441_v2, %v5249_v41  ;;  %vm5446_vm12 = vcmp.eq.f32.partialorder %v1358_v42, 8.507059e+37  ;;  %3814 = vrcp.f32 %v5427_v28  ;;  %vm1356_vm15 = vmor %vm1354_vm3, %vm1355_vm10  ;;  %v50_v2 = vld [vmem:[%s7759_s0 + $0xe0] sm:$0xff] }
 0x12e   :  { %v2910_v52 = vsub.f32 1.0, %v2909_v8  ;;  %1782 = vst.msk [vmem:[%s7762_s5 + $0x40] sm:$0xff] %vm1773_vm4, %v1717_v17  ;;  %v1361_v63 = vor.u32 1.1754944e-38, %v1360_v43  ;;  %vm2913_vm14 = vweird.f32 %v5362_v51  ;;  %3816 = vrcp.f32 %v5435_v32 }
 0x12f   :  { %v1353_v14 = vadd.f32 %v3809_v9, %v1352_v62  ;;  %3340 = vst.msk [vmem:[%s7763_s6 + $0x40] sm:$0xff] %vm1773_vm4, %v3276_v12  ;;  %vm2914_vm1 = vweird.f32 %v3811_v19  ;;  %vm5463_vm5 = vcmp.eq.f32.partialorder %v2917_v7, 8.507059e+37  ;;  %v2920_v3 = vor.u32 1.1754944e-38, %v2919_v38  ;;  %v82_v62 = vld [vmem:[%s7759_s0 + $0x1e0] sm:$0xff] }
 0x130   :  { %v2911_v41 = vmul.f32 %v3811_v19, %v2910_v52  ;;  %v3813_v4 = vpop.eup %3812  ;;  %vm889_vm6 = vweird.f32 %v5427_v28  ;;  %v893_v45 = vand.u32 2147483647, %v5427_v28  ;;  %v3637_v57 = vmul.f32 -1.442695, %v5374_v0  ;;  %vm2915_vm0 = vmor %vm2913_vm14, %vm2914_vm1 }
 0x131   :  { %v1357_v47 = vsel %vm1356_vm15, %v3809_v9, %v1353_v14  ;;  %v895_v50 = vand.u32 2147483648, %v5427_v28  ;;  %v2452_v18 = vand.u32 2147483647, %v5435_v32  ;;  %v5478_v34 = vadd.f32 1.0, %v3813_v4 }
 0x132   :  { %v1362_v15 = vsel %vm5446_vm12, %v1361_v63, %v1357_v47  ;;  %v2912_v16 = vadd.f32 %v3811_v19, %v2911_v41  ;;  %3818 = vpow2.f32 %v3637_v57  ;;  %v5481_v20 = vadd.f32 %v5085_v39, %v331_v23 }
 0x133   :  { %v1749_v35 = vmul.f32 %v1362_v15, %v5252_v61  ;;  %v3815_v56 = vpop.eup %3814  ;;  %vm2448_vm2 = vweird.f32 %v5435_v32  ;;  %v2454_v24 = vand.u32 2147483648, %v5435_v32  ;;  %v5486_v25 = vadd.f32 %v5046_v44, %v1890_v60  ;;  %v1893_v23 = vpop.f32.mrf.mxu1 }
 0x134   :  { %v2916_v21 = vsel %vm2915_vm0, %v3811_v19, %v2912_v16  ;;  %v3817_v61 = vpop.eup %3816  ;;  %v885_v6 = vmul.f32 %v3815_v56, %v5427_v28  ;;  %3820 = vrcp.f32 %v5478_v34  ;;  %v5497_v27 = vadd.f32 %v5085_v39, %v427_v55 }
 0x135   :  { %1814 = vst.msk [vmem:[%s7762_s5 + $0x140] sm:$0xff] %vm1773_vm4, %v1749_v35  ;;  %v2921_v51 = vsel %vm5463_vm5, %v2920_v3, %v2916_v21  ;;  %vm5500_vm3 = vcmp.eq.f32.partialorder %v893_v45, 8.507059e+37  ;;  %v2444_v9 = vmul.f32 %v3817_v61, %v5435_v32  ;;  %v5506_v36 = vadd.f32 %v5046_v44, %v1986_v5 }
 0x136   :  { %v3308_v59 = vmul.f32 %v2921_v51, %v5262_v54  ;;  %v886_v37 = vsub.f32 1.0, %v885_v6  ;;  %v896_v53 = vor.u32 1.1754944e-38, %v895_v50  ;;  %vm5508_vm8 = vcmp.eq.f32.partialorder %v2452_v18, 8.507059e+37  ;;  %v430_v18 = vpop.f32.mrf.mxu2 }
 0x137   :  { %v3478_v26 = vmul.f32 -1.442695, %v5481_v20  ;;  %vm890_vm11 = vweird.f32 %v3815_v56  ;;  %v2445_v54 = vsub.f32 1.0, %v2444_v9  ;;  %v3606_v40 = vmul.f32 -1.442695, %v5486_v25 }
 0x138   :  { %3372 = vst.msk [vmem:[%s7763_s6 + $0x140] sm:$0xff] %vm1773_vm4, %v3308_v59  ;;  %v5519_v42 = vadd.f32 %v5085_v39, %v334_v30  ;;  %v3819_v22 = vpop.eup %3818  ;;  %v887_v43 = vmul.f32 %v3815_v56, %v886_v37  ;;  %vm2449_vm13 = vweird.f32 %v3817_v61  ;;  %v3510_v7 = vmul.f32 -1.442695, %v5497_v27  ;;  %vm891_vm7 = vmor %vm889_vm6, %vm890_vm11  ;;  %v1989_v59 = vpop.f32.mrf.mxu3 }
 0x139   :  { %3822 = vpow2.f32 %v3478_v26  ;;  %v2446_v19 = vmul.f32 %v3817_v61, %v2445_v54  ;;  %v5522_v48 = vadd.f32 1.0, %v3819_v22  ;;  %v3638_v29 = vmul.f32 -1.442695, %v5506_v36  ;;  %vm2450_vm12 = vmor %vm2448_vm2, %vm2449_vm13 }
 0x13a   :  { %3824 = vpow2.f32 %v3606_v40  ;;  %v3821_v46 = vpop.eup %3820  ;;  %v888_v58 = vadd.f32 %v3815_v56, %v887_v43  ;;  %v2455_v8 = vor.u32 1.1754944e-38, %v2454_v24  ;;  %v1373_v38 = vand.u32 2147483647, %v5478_v34 }
 0x13b   :  { %v1375_v17 = vand.u32 2147483648, %v5478_v34  ;;  %v2447_v12 = vadd.f32 %v3817_v61, %v2446_v19  ;;  %v1365_v1 = vmul.f32 %v3821_v46, %v5478_v34  ;;  %3826 = vrcp.f32 %v5522_v48 }
 0x13c   :  { %v3479_v52 = vmul.f32 -1.442695, %v5519_v42  ;;  %vm7861_vm9 = vcmask 64512   ;;  %v892_v14 = vsel %vm891_vm7, %v3815_v56, %v888_v58  ;;  %vm1370_vm14 = vweird.f32 %v3821_v46 }
 0x13d   :  { %3432 = vmatmul.msk.f32.gmra.mxu0 %vm7861_vm9, %v50_v2  ;;  %vm7862_vm10 = vmmov %vm7861_vm9  ;;  %3828 = vpow2.f32 %v3510_v7  ;;  %v5545_v28 = vadd.f32 %v5046_v44, %v1893_v23  ;;  %v897_v63 = vsel %vm5500_vm3, %v896_v53, %v892_v14  ;;  %v2451_v41 = vsel %vm2450_vm12, %v3817_v61, %v2447_v12 }
 0x13e   :  { %3464 = vmatmul.msk.f32.gmra.mxu2 %vm7862_vm10, %v82_v62  ;;  %vm7863_vm15 = vmmov %vm7861_vm9  ;;  %v1366_v49 = vsub.f32 1.0, %v1365_v1  ;;  %3830 = vpow2.f32 %v3638_v29  ;;  %v1718_v60 = vmul.f32 %v897_v63, %v5278_v13  ;;  %v2456_v32 = vsel %vm5508_vm8, %v2455_v8, %v2451_v41  ;;  %v433_v8 = vpop.f32.mrf.mxu2 }
 0x13f   :  { %3560 = vmatmul.msk.f32.gmra.mxu1 %vm7863_vm15, %v50_v2  ;;  %vm7864_vm1 = vmmov %vm7861_vm9  ;;  %v3823_v3 = vpop.eup %3822  ;;  %v2932_v4 = vand.u32 2147483647, %v5522_v48  ;;  %v2934_v47 = vand.u32 2147483648, %v5522_v48  ;;  %v3277_v57 = vmul.f32 %v2456_v32, %v5296_v33  ;;  %3832 = vpow2.f32 %v3479_v52 }
 0x140   :  { %3592 = vmatmul.msk.f32.gmra.mxu3 %vm7864_vm1, %v82_v62  ;;  %v3825_v45 = vpop.eup %3824  ;;  %v1367_v15 = vmul.f32 %v3821_v46, %v1366_v49  ;;  %v5557_v16 = vadd.f32 1.0, %v3823_v3  ;;  %1783 = vst.msk [vmem:[%s7762_s5 + $0x48] sm:$0xff] %vm1773_vm4, %v1718_v60  ;;  %vm1369_vm5 = vweird.f32 %v5478_v34  ;;  %vm5564_vm6 = vcmp.eq.f32.partialorder %v1373_v38, 8.507059e+37 }
 0x141   :  { %v5568_v50 = vadd.f32 1.0, %v3825_v45  ;;  %v3827_v55 = vpop.eup %3826  ;;  %3341 = vst.msk [vmem:[%s7763_s6 + $0x48] sm:$0xff] %vm1773_vm4, %v3277_v57  ;;  %v1376_v35 = vor.u32 1.1754944e-38, %v1375_v17  ;;  %vm2928_vm0 = vweird.f32 %v5522_v48  ;;  %vm1371_vm2 = vmor %vm1369_vm5, %vm1370_vm14  ;;  %vm5578_vm3 = vcmp.eq.f32.partialorder %v2932_v4, 8.507059e+37  ;;  %v51_v4 = vld [vmem:[%s7759_s0 + $0xe8] sm:$0xff] }
 0x142   :  { %v1368_v33 = vadd.f32 %v3821_v46, %v1367_v15  ;;  %3834 = vrcp.f32 %v5557_v16  ;;  %v2924_v5 = vmul.f32 %v3827_v55, %v5522_v48  ;;  %v3607_v21 = vmul.f32 -1.442695, %v5545_v28 }
 0x143   :  { %v3829_v34 = vpop.eup %3828  ;;  %3836 = vrcp.f32 %v5568_v50  ;;  %v2935_v51 = vor.u32 1.1754944e-38, %v2934_v47  ;;  %v908_v6 = vand.u32 2147483647, %v5557_v16  ;;  %v5586_v30 = vadd.f32 %v5085_v39, %v430_v18 }
 0x144   :  { %v3831_v24 = vpop.eup %3830  ;;  %v1372_v61 = vsel %vm1371_vm2, %v3821_v46, %v1368_v33  ;;  %v2925_v9 = vsub.f32 1.0, %v2924_v5  ;;  %v910_v37 = vand.u32 2147483648, %v5557_v16  ;;  %v2467_v53 = vand.u32 2147483647, %v5568_v50 }
 0x145   :  { %v1377_v11 = vsel %vm5564_vm6, %v1376_v35, %v1372_v61  ;;  %v3833_v31 = vpop.eup %3832  ;;  %v2469_v54 = vand.u32 2147483648, %v5568_v50  ;;  %v5594_v40 = vadd.f32 1.0, %v3829_v34  ;;  %v5596_v22 = vadd.f32 1.0, %v3831_v24 }
 0x146   :  { %v1750_v26 = vmul.f32 %v1377_v11, %v5312_v10  ;;  %v2926_v39 = vmul.f32 %v3827_v55, %v2925_v9  ;;  %vm2929_vm8 = vweird.f32 %v3827_v55  ;;  %3838 = vpow2.f32 %v3607_v21 }
 0x147   :  { %v5599_v43 = vadd.f32 %v5046_v44, %v1989_v59  ;;  %vm904_vm11 = vweird.f32 %v5557_v16  ;;  %vm2463_vm13 = vweird.f32 %v5568_v50  ;;  %3840 = vrcp.f32 %v5594_v40  ;;  %vm2930_vm9 = vmor %vm2928_vm0, %vm2929_vm8 }
 0x148   :  { %v5601_v7 = vpop.eup %3834  ;;  %1815 = vst.msk [vmem:[%s7762_s5 + $0x148] sm:$0xff] %vm1773_vm4, %v1750_v26  ;;  %v5610_v10 = vadd.f32 1.0, %v3833_v31  ;;  %v2927_v29 = vadd.f32 %v3827_v55, %v2926_v39  ;;  %vm5616_vm7 = vcmp.eq.f32.partialorder %v908_v6, 8.507059e+37  ;;  %v911_v46 = vor.u32 1.1754944e-38, %v910_v37  ;;  %v1896_v37 = vpop.f32.mrf.mxu1 }
 0x149   :  { %v5612_v19 = vpop.eup %3836  ;;  %v900_v44 = vmul.f32 %v5601_v7, %v5557_v16  ;;  %3842 = vrcp.f32 %v5596_v22  ;;  %vm5626_vm10 = vcmp.eq.f32.partialorder %v2467_v53, 8.507059e+37  ;;  %v2470_v38 = vor.u32 1.1754944e-38, %v2469_v54 }
 0x14a   :  { %v2459_v58 = vmul.f32 %v5612_v19, %v5568_v50  ;;  %v1390_v17 = vand.u32 2147483648, %v5594_v40  ;;  %v2931_v2 = vsel %vm2930_vm9, %v3827_v55, %v2927_v29  ;;  %v1388_v12 = vand.u32 2147483647, %v5594_v40  ;;  %v337_v55 = vpop.f32.mrf.mxu0  ;;  %v5727_v29 = vld [vmem:[%s7760_s3] ss:$0 sm:$0xff] }
 0x14b   :  { %v901_v62 = vsub.f32 1.0, %v900_v44  ;;  %v2947_v1 = vand.u32 2147483647, %v5596_v22  ;;  %v2936_v48 = vsel %vm5578_vm3, %v2935_v51, %v2931_v2  ;;  %v2949_v14 = vand.u32 2147483648, %v5596_v22 }
 0x14c   :  { %v2460_v52 = vsub.f32 1.0, %v2459_v58  ;;  %3844 = vrcp.f32 %v5610_v10  ;;  %v3839_v63 = vpop.eup %3838  ;;  %v3309_v41 = vmul.f32 %v2936_v48, %v5374_v0  ;;  %vm905_vm12 = vweird.f32 %v5601_v7  ;;  %v83_v0 = vld [vmem:[%s7759_s0 + $0x1e8] sm:$0xff] }
 0x14d   :  { %v902_v49 = vmul.f32 %v5601_v7, %v901_v62  ;;  %vm1384_vm14 = vweird.f32 %v5594_v40  ;;  %v5641_v3 = vpop.eup %3840  ;;  %vm2464_vm15 = vweird.f32 %v5612_v19  ;;  %v1391_v32 = vor.u32 1.1754944e-38, %v1390_v17  ;;  %vm906_vm3 = vmor %vm904_vm11, %vm905_vm12 }
 0x14e   :  { %v2461_v60 = vmul.f32 %v5612_v19, %v2460_v52  ;;  %vm2943_vm1 = vweird.f32 %v5596_v22  ;;  %3373 = vst.msk [vmem:[%s7763_s6 + $0x148] sm:$0xff] %vm1773_vm4, %v3309_v41  ;;  %v1380_v57 = vmul.f32 %v5641_v3, %v5594_v40  ;;  %vm5661_vm5 = vcmp.eq.f32.partialorder %v1388_v12, 8.507059e+37  ;;  %vm2465_vm11 = vmor %vm2463_vm13, %vm2464_vm15  ;;  %v1992_v12 = vpop.f32.mrf.mxu3 }
 0x14f   :  { %v5652_v47 = vpop.eup %3842  ;;  %v903_v45 = vadd.f32 %v5601_v7, %v902_v49  ;;  %v2950_v13 = vor.u32 1.1754944e-38, %v2949_v14  ;;  %vm919_vm6 = vweird.f32 %v5610_v10  ;;  %v5666_v18 = vadd.f32 1.0, %v3839_v63  ;;  %v5754_v49 = vld [vmem:[%s7761_s4] ss:$0 sm:$0xff] }
 0x150   :  { %vm7875_vm0 = vcmask 64512   ;;  %v2462_v33 = vadd.f32 %v5612_v19, %v2461_v60  ;;  %v2939_v35 = vmul.f32 %v5652_v47, %v5596_v22  ;;  %vm5677_vm8 = vcmp.eq.f32.partialorder %v2947_v1, 8.507059e+37 }
 0x151   :  { %3433 = vmatmul.msk.f32.gmra.mxu0 %vm7875_vm0, %v51_v4  ;;  %vm7876_vm2 = vmmov %vm7875_vm0  ;;  %v923_v5 = vand.u32 2147483647, %v5610_v10  ;;  %v925_v56 = vand.u32 2147483648, %v5610_v10  ;;  %3593 = vmatmul.msk.f32.gmra.mxu3 %vm7875_vm0, %v83_v0  ;;  %v907_v16 = vsel %vm906_vm3, %v5601_v7, %v903_v45  ;;  %v1381_v21 = vsub.f32 1.0, %v1380_v57 }
 0x152   :  { %3465 = vmatmul.msk.f32.gmra.mxu2 %vm7876_vm2, %v83_v0  ;;  %vm7879_vm9 = vmmov %vm7875_vm0  ;;  %vm1385_vm12 = vweird.f32 %v5641_v3  ;;  %3846 = vrcp.f32 %v5666_v18  ;;  %v3845_v24 = vpop.eup %3844  ;;  %v912_v61 = vsel %vm5616_vm7, %v911_v46, %v907_v16  ;;  %v2466_v51 = vsel %vm2465_vm11, %v5612_v19, %v2462_v33  ;;  %v340_v52 = vpop.f32.mrf.mxu0 }
 0x153   :  { %3561 = vmatmul.msk.f32.gmra.mxu1 %vm7879_vm9, %v51_v4  ;;  %v2940_v6 = vsub.f32 1.0, %v2939_v35  ;;  %vm2944_vm2 = vweird.f32 %v5652_v47  ;;  %v1719_v59 = vmul.f32 %v912_v61, %v5481_v20  ;;  %v2471_v50 = vsel %vm5626_vm10, %v2470_v38, %v2466_v51  ;;  %vm1386_vm10 = vmor %vm1384_vm14, %vm1385_vm12  ;;  %v52_v35 = vld [vmem:[%s7759_s0 + $0xf0] sm:$0xff]  ;;  %v436_v61 = vpop.f32.mrf.mxu2 }
 0x154   :  { %v1382_v11 = vmul.f32 %v5641_v3, %v1381_v21  ;;  %v915_v9 = vmul.f32 %v3845_v24, %v5610_v10  ;;  %v3278_v53 = vmul.f32 %v2471_v50, %v5486_v25  ;;  %vm5703_vm13 = vcmp.eq.f32.partialorder %v923_v5, 8.507059e+37  ;;  %vm2945_vm14 = vmor %vm2943_vm1, %vm2944_vm2 }
 0x155   :  { %v2941_v31 = vmul.f32 %v5652_v47, %v2940_v6  ;;  %v926_v54 = vor.u32 1.1754944e-38, %v925_v56  ;;  %1784 = vst.msk [vmem:[%s7762_s5 + $0x50] sm:$0xff] %vm1773_vm4, %v1719_v59  ;;  %vm2478_vm7 = vweird.f32 %v5666_v18  ;;  %v3511_v7 = vmul.f32 -1.442695, %v5586_v30  ;;  %vm7882_vm3 = vmmov %vm7875_vm0 }
 0x156   :  { %v1383_v20 = vadd.f32 %v5641_v3, %v1382_v11  ;;  %v916_v39 = vsub.f32 1.0, %v915_v9  ;;  %3342 = vst.msk [vmem:[%s7763_s6 + $0x50] sm:$0xff] %vm1773_vm4, %v3278_v53  ;;  %vm920_vm15 = vweird.f32 %v3845_v24  ;;  %v3639_v19 = vmul.f32 -1.442695, %v5599_v43  ;;  %vm7883_vm9 = vmmov %vm7875_vm0  ;;  %v1995_v59 = vpop.f32.mrf.mxu3 }
 0x157   :  { %v2942_v25 = vadd.f32 %v5652_v47, %v2941_v31  ;;  %v5730_v44 = vadd.f32 %v5727_v29, %v337_v55  ;;  %v2482_v58 = vand.u32 2147483647, %v5666_v18  ;;  %3848 = vpow2.f32 %v3511_v7  ;;  %vm921_vm1 = vmor %vm919_vm6, %vm920_vm15 }
 0x158   :  { %v3847_v23 = vpop.eup %3846  ;;  %v1387_v46 = vsel %vm1386_vm10, %v5641_v3, %v1383_v20  ;;  %v917_v40 = vmul.f32 %v3845_v24, %v916_v39  ;;  %v2484_v62 = vand.u32 2147483648, %v5666_v18  ;;  %3850 = vpow2.f32 %v3639_v19  ;;  %vm7884_vm11 = vmmov %vm7875_vm0 }
 0x159   :  { %v1392_v38 = vsel %vm5661_vm5, %v1391_v32, %v1387_v46  ;;  %v2946_v17 = vsel %vm2945_vm14, %v5652_v47, %v2942_v25  ;;  %v2474_v2 = vmul.f32 %v3847_v23, %v5666_v18  ;;  %v3480_v41 = vmul.f32 -1.442695, %v5730_v44  ;;  %3434 = vmatmul.msk.f32.gmra.mxu0 %vm7882_vm3, %v52_v35 }
 0x15a   :  { %v1751_v1 = vmul.f32 %v1392_v38, %v5497_v27  ;;  %v2951_v22 = vsel %vm5677_vm8, %v2950_v13, %v2946_v17  ;;  %v918_v48 = vadd.f32 %v3845_v24, %v917_v40  ;;  %v5757_v27 = vadd.f32 %v5754_v49, %v1896_v37  ;;  %v1899_v13 = vpop.f32.mrf.mxu1  ;;  %v343_v9 = vpop.f32.mrf.mxu0 }
 0x15b   :  { %v3310_v14 = vmul.f32 %v2951_v22, %v5506_v36  ;;  %v2475_v63 = vsub.f32 1.0, %v2474_v2  ;;  %vm2479_vm5 = vweird.f32 %v3847_v23  ;;  %v5764_v10 = vadd.f32 %v5727_v29, %v433_v8  ;;  %3562 = vmatmul.msk.f32.gmra.mxu1 %vm7875_vm0, %v52_v35 }
 0x15c   :  { %1816 = vst.msk [vmem:[%s7762_s5 + $0x150] sm:$0xff] %vm1773_vm4, %v1751_v1  ;;  %v922_v36 = vsel %vm921_vm1, %v3845_v24, %v918_v48  ;;  %v5767_v3 = vadd.f32 %v5754_v49, %v1992_v12  ;;  %3852 = vpow2.f32 %v3480_v41  ;;  %v3608_v4 = vmul.f32 -1.442695, %v5757_v27  ;;  %vm2480_vm6 = vmor %vm2478_vm7, %vm2479_vm5 }
 0x15d   :  { %3374 = vst.msk [vmem:[%s7763_s6 + $0x150] sm:$0xff] %vm1773_vm4, %v3310_v14  ;;  %v927_v60 = vsel %vm5703_vm13, %v926_v54, %v922_v36  ;;  %v2476_v32 = vmul.f32 %v3847_v23, %v2475_v63  ;;  %v3849_v0 = vpop.eup %3848  ;;  %v3512_v45 = vmul.f32 -1.442695, %v5764_v10  ;;  %v5780_v15 = vadd.f32 %v5727_v29, %v340_v52 }
 0x15e   :  { %v1720_v47 = vmul.f32 %v927_v60, %v5519_v42  ;;  %v3640_v57 = vmul.f32 -1.442695, %v5767_v3  ;;  %v5782_v33 = vadd.f32 1.0, %v3849_v0  ;;  %3854 = vpow2.f32 %v3608_v4  ;;  %v84_v42 = vld [vmem:[%s7759_s0 + $0x1f0] sm:$0xff]  ;;  %v3851_v34 = vpop.eup %3850 }
 0x15f   :  { %v2477_v55 = vadd.f32 %v3847_v23, %v2476_v32  ;;  %v2485_v5 = vor.u32 1.1754944e-38, %v2484_v62  ;;  %3856 = vpow2.f32 %v3512_v45  ;;  %vm2483_vm8 = vcmp.eq.f32.partialorder %v2482_v58, 8.507059e+37  ;;  %3466 = vmatmul.msk.f32.gmra.mxu2 %vm7883_vm9, %v84_v42  ;;  %3594 = vmatmul.msk.f32.gmra.mxu3 %vm7884_vm11, %v84_v42 }
 0x160   :  { %1785 = vst.msk [vmem:[%s7762_s5 + $0x58] sm:$0xff] %vm1773_vm4, %v1720_v47  ;;  %3858 = vrcp.f32 %v5782_v33  ;;  %v5800_v16 = vadd.f32 %v5754_v49, %v1899_v13  ;;  %v5804_v24 = vadd.f32 1.0, %v3851_v34  ;;  %v3481_v18 = vmul.f32 -1.442695, %v5780_v15 }
 0x161   :  { %v2481_v56 = vsel %vm2480_vm6, %v3847_v23, %v2477_v55  ;;  %3860 = vpow2.f32 %v3640_v57  ;;  %v1403_v50 = vand.u32 2147483647, %v5782_v33  ;;  %v1405_v11 = vand.u32 2147483648, %v5782_v33 }
 0x162   :  { %v2486_v21 = vsel %vm2483_vm8, %v2485_v5, %v2481_v56  ;;  %v3853_v51 = vpop.eup %3852  ;;  %3862 = vrcp.f32 %v5804_v24  ;;  %v3609_v31 = vmul.f32 -1.442695, %v5800_v16  ;;  %v5825_v20 = vadd.f32 %v5754_v49, %v1995_v59 }
 0x163   :  { %v3279_v6 = vmul.f32 %v2486_v21, %v5545_v28  ;;  %v5816_v53 = vadd.f32 1.0, %v3853_v51  ;;  %v5820_v28 = vadd.f32 %v5727_v29, %v436_v61  ;;  %3864 = vpow2.f32 %v3481_v18 }
 0x164   :  { %v3855_v37 = vpop.eup %3854  ;;  %vm1399_vm12 = vweird.f32 %v5782_v33  ;;  %v2962_v7 = vand.u32 2147483647, %v5804_v24  ;;  %v5831_v25 = vadd.f32 %v5727_v29, %v343_v9  ;;  %vm5834_vm2 = vcmp.eq.f32.partialorder %v1403_v50, 8.507059e+37  ;;  %v53_v50 = vld [vmem:[%s7759_s0 + $0xf8] sm:$0xff] }
 0x165   :  { %3343 = vst.msk [vmem:[%s7763_s6 + $0x58] sm:$0xff] %vm1773_vm4, %v3279_v6  ;;  %v3857_v26 = vpop.eup %3856  ;;  %v5822_v54 = vadd.f32 1.0, %v3855_v37  ;;  %3866 = vrcp.f32 %v5816_v53  ;;  %v1406_v40 = vor.u32 1.1754944e-38, %v1405_v11  ;;  %vm2958_vm13 = vweird.f32 %v5804_v24  ;;  %v85_v11 = vld [vmem:[%s7759_s0 + $0x1f8] sm:$0xff]  ;;  %3435 = vmatmul.msk.f32.gmra.mxu0 %vm7884_vm11, %v53_v50 }
 0x166   :  { %v3859_v39 = vpop.eup %3858  ;;  %v2964_v58 = vand.u32 2147483648, %v5804_v24  ;;  %v938_v8 = vand.u32 2147483647, %v5816_v53  ;;  %v5843_v38 = vmul.f32 -1.442695, %v5820_v28  ;;  %v940_v62 = vand.u32 2147483648, %v5816_v53 }
 0x167   :  { %v3861_v19 = vpop.eup %3860  ;;  %v1395_v23 = vmul.f32 %v3859_v39, %v5782_v33  ;;  %3868 = vrcp.f32 %v5822_v54  ;;  %v5846_v12 = vadd.f32 1.0, %v3857_v26  ;;  %vm5851_vm7 = vcmp.eq.f32.partialorder %v2962_v7, 8.507059e+37 }
 0x168   :  { %3870 = vpow2.f32 %v3609_v31  ;;  %v3863_v17 = vpop.eup %3862  ;;  %v5848_v1 = vadd.f32 1.0, %v3861_v19  ;;  %v2497_v52 = vand.u32 2147483647, %v5822_v54  ;;  %v5857_v14 = vmul.f32 -1.442695, %v5825_v20 }
 0x169   :  { %v1396_v2 = vsub.f32 1.0, %v1395_v23  ;;  %v2954_v22 = vmul.f32 %v3863_v17, %v5804_v24  ;;  %v5860_v63 = vmul.f32 -1.442695, %v5831_v25  ;;  %v3865_v41 = vpop.eup %3864  ;;  %vm1400_vm10 = vweird.f32 %v3859_v39 }
 0x16a   :  { %v2499_v60 = vand.u32 2147483648, %v5822_v54  ;;  %3872 = vrcp.f32 %v5846_v12  ;;  %v2965_v0 = vor.u32 1.1754944e-38, %v2964_v58  ;;  %vm934_vm15 = vweird.f32 %v5816_v53  ;;  %vm1401_vm5 = vmor %vm1399_vm12, %vm1400_vm10 }
 0x16b   :  { %v1397_v36 = vmul.f32 %v3859_v39, %v1396_v2  ;;  %v3867_v32 = vpop.eup %3866  ;;  %v2955_v4 = vsub.f32 1.0, %v2954_v22  ;;  %3874 = vrcp.f32 %v5848_v1  ;;  %vm5867_vm14 = vcmp.eq.f32.partialorder %v938_v8, 8.507059e+37  ;;  %vm7893_vm12 = vmmov %vm7884_vm11 }
 0x16c   :  { %v930_v57 = vmul.f32 %v3867_v32, %v5816_v53  ;;  %v941_v55 = vor.u32 1.1754944e-38, %v940_v62  ;;  %vm2493_vm1 = vweird.f32 %v5822_v54  ;;  %vm2959_vm6 = vweird.f32 %v3863_v17  ;;  %3467 = vmatmul.msk.f32.gmra.mxu2 %vm7893_vm12, %v85_v11  ;;  %vm7894_vm10 = vmmov %vm7884_vm11 }
 0x16d   :  { %v3869_v47 = vpop.eup %3868  ;;  %v1398_v45 = vadd.f32 %v3859_v39, %v1397_v36  ;;  %v2956_v42 = vmul.f32 %v3863_v17, %v2955_v4  ;;  %vm5876_vm3 = vcmp.eq.f32.partialorder %v2497_v52, 8.507059e+37  ;;  %v2500_v18 = vor.u32 1.1754944e-38, %v2499_v60  ;;  %vm2960_vm9 = vmor %vm2958_vm13, %vm2959_vm6  ;;  %3563 = vmatmul.msk.f32.gmra.mxu1 %vm7894_vm10, %v53_v50  ;;  %v1902_v52 = vpop.f32.mrf.mxu1 }
 0x16e   :  { %v3871_v35 = vpop.eup %3870  ;;  %v2489_v34 = vmul.f32 %v3869_v47, %v5822_v54  ;;  %v931_v21 = vsub.f32 1.0, %v930_v57  ;;  %v1418_v61 = vand.u32 2147483647, %v5846_v12  ;;  %vm1414_vm8 = vweird.f32 %v5846_v12  ;;  %v439_v60 = vpop.f32.mrf.mxu2 }
 0x16f   :  { %v1402_v56 = vsel %vm1401_vm5, %v3859_v39, %v1398_v45  ;;  %v2957_v6 = vadd.f32 %v3863_v17, %v2956_v42  ;;  %v5884_v33 = vadd.f32 1.0, %v3865_v41  ;;  %vm935_vm0 = vweird.f32 %v3867_v32  ;;  %vm7895_vm5 = vmmov %vm7894_vm10  ;;  %v1998_v42 = vpop.f32.mrf.mxu3 }
 0x170   :  { %v1407_v51 = vsel %vm5834_vm2, %v1406_v40, %v1402_v56  ;;  %v2490_v59 = vsub.f32 1.0, %v2489_v34  ;;  %v3873_v9 = vpop.eup %3872  ;;  %v932_v31 = vmul.f32 %v3867_v32, %v931_v21  ;;  %v1420_v26 = vand.u32 2147483648, %v5846_v12  ;;  %3595 = vmatmul.msk.f32.gmra.mxu3 %vm7895_vm5, %v85_v11  ;;  %vm936_vm6 = vmor %vm934_vm15, %vm935_vm0  ;;  %v346_v21 = vpop.f32.mrf.mxu0 }
 0x171   :  { %v1752_v37 = vmul.f32 %v1407_v51, %v5586_v30  ;;  %v3875_v39 = vpop.eup %3874  ;;  %v2961_v7 = vsel %vm2960_vm9, %v3863_v17, %v2957_v6  ;;  %vm2494_vm2 = vweird.f32 %v3869_v47  ;;  %v1410_v23 = vmul.f32 %v3873_v9, %v5846_v12 }
 0x172   :  { %v2491_v19 = vmul.f32 %v3869_v47, %v2490_v59  ;;  %v2966_v30 = vsel %vm5851_vm7, %v2965_v0, %v2961_v7  ;;  %v933_v24 = vadd.f32 %v3867_v32, %v932_v31  ;;  %v2969_v46 = vmul.f32 %v3875_v39, %v5848_v1  ;;  %vm2495_vm7 = vmor %vm2493_vm1, %vm2494_vm2 }
 0x173   :  { %1817 = vst.msk [vmem:[%s7762_s5 + $0x158] sm:$0xff] %vm1773_vm4, %v1752_v37  ;;  %vm2973_vm13 = vweird.f32 %v5848_v1  ;;  %v3311_v40 = vmul.f32 %v2966_v30, %v5599_v43  ;;  %v1411_v8 = vsub.f32 1.0, %v1410_v23  ;;  %3876 = vrcp.f32 %v5884_v33 }
 0x174   :  { %v2492_v58 = vadd.f32 %v3869_v47, %v2491_v19  ;;  %v937_v17 = vsel %vm936_vm6, %v3867_v32, %v933_v24  ;;  %v2970_v2 = vsub.f32 1.0, %v2969_v46  ;;  %v2977_v62 = vand.u32 2147483647, %v5848_v1 }
 0x175   :  { %v2979_v22 = vand.u32 2147483648, %v5848_v1  ;;  %3375 = vst.msk [vmem:[%s7763_s6 + $0x158] sm:$0xff] %vm1773_vm4, %v3311_v40  ;;  %v942_v43 = vsel %vm5867_vm14, %v941_v55, %v937_v17  ;;  %v1412_v48 = vmul.f32 %v3873_v9, %v1411_v8  ;;  %vm1415_vm15 = vweird.f32 %v3873_v9  ;;  %v1905_v31 = vpop.f32.mrf.mxu1 }
 0x176   :  { %v2496_v53 = vsel %vm2495_vm7, %v3869_v47, %v2492_v58  ;;  %v1721_v54 = vmul.f32 %v942_v43, %v5730_v44  ;;  %v2971_v36 = vmul.f32 %v3875_v39, %v2970_v2  ;;  %vm2974_vm1 = vweird.f32 %v3875_v39  ;;  %vm1416_vm14 = vmor %vm1414_vm8, %vm1415_vm15  ;;  %v442_v2 = vpop.f32.mrf.mxu2 }
 0x177   :  { %v2501_v41 = vsel %vm5876_vm3, %v2500_v18, %v2496_v53  ;;  %v1413_v4 = vadd.f32 %v3873_v9, %v1412_v48  ;;  %vm1419_vm9 = vcmp.eq.f32.partialorder %v1418_v61, 8.507059e+37  ;;  %v5930_v0 = vadd.f32 1.0, %v3871_v35  ;;  %vm2975_vm3 = vmor %vm2973_vm13, %vm2974_vm1 }
 0x178   :  { %v3280_v32 = vmul.f32 %v2501_v41, %v5757_v27  ;;  %1786 = vst.msk [vmem:[%s7762_s5 + $0x60] sm:$0xff] %vm1773_vm4, %v1721_v54  ;;  %v1421_v44 = vor.u32 1.1754944e-38, %v1420_v26  ;;  %v2972_v47 = vadd.f32 %v3875_v39, %v2971_v36  ;;  %3878 = vpow2.f32 %v5843_v38 }
 0x179   :  { %v5940_v45 = vadd.f32 %v5754_v49, %v1902_v52  ;;  %v3877_v27 = vpop.eup %3876  ;;  %v1417_v57 = vsel %vm1416_vm14, %v3873_v9, %v1413_v4  ;;  %v2980_v12 = vor.u32 1.1754944e-38, %v2979_v22  ;;  %3880 = vrcp.f32 %v5930_v0 }
 0x17a   :  { %3344 = vst.msk [vmem:[%s7763_s6 + $0x60] sm:$0xff] %vm1773_vm4, %v3280_v32  ;;  %v5951_v13 = vadd.f32 %v5727_v29, %v439_v60  ;;  %v1422_v38 = vsel %vm1419_vm9, %v1421_v44, %v1417_v57  ;;  %v2976_v55 = vsel %vm2975_vm3, %v3875_v39, %v2972_v47  ;;  %vm2978_vm8 = vcmp.eq.f32.partialorder %v2977_v62, 8.507059e+37 }
 0x17b   :  { %v945_v35 = vmul.f32 %v3877_v27, %v5884_v33  ;;  %v1753_v34 = vmul.f32 %v1422_v38, %v5764_v10  ;;  %v2981_v5 = vsel %vm2978_vm8, %v2980_v12, %v2976_v55  ;;  %v953_v56 = vand.u32 2147483647, %v5884_v33 }
 0x17c   :  { %v955_v1 = vand.u32 2147483648, %v5884_v33  ;;  %v3312_v18 = vmul.f32 %v2981_v5, %v5767_v3  ;;  %3882 = vpow2.f32 %v5857_v14  ;;  %v3610_v51 = vmul.f32 -1.442695, %v5940_v45 }
 0x17d   :  { %v946_v61 = vsub.f32 1.0, %v945_v35  ;;  %1818 = vst.msk [vmem:[%s7762_s5 + $0x160] sm:$0xff] %vm1773_vm4, %v1753_v34  ;;  %vm949_vm0 = vweird.f32 %v5884_v33  ;;  %3884 = vpow2.f32 %v5860_v63  ;;  %v3514_v10 = vmul.f32 -1.442695, %v5951_v13 }
 0x17e   :  { %v5968_v6 = vadd.f32 %v5754_v49, %v1998_v42  ;;  %v3879_v3 = vpop.eup %3878  ;;  %3376 = vst.msk [vmem:[%s7763_s6 + $0x160] sm:$0xff] %vm1773_vm4, %v3312_v18  ;;  %vm950_vm11 = vweird.f32 %v3877_v27  ;;  %3886 = vpow2.f32 %v3610_v51  ;;  %v5975_v59 = vadd.f32 %v5727_v29, %v346_v21 }
 0x17f   :  { %v947_v14 = vmul.f32 %v3877_v27, %v946_v61  ;;  %v3881_v50 = vpop.eup %3880  ;;  %vm5977_vm12 = vcmp.eq.f32.partialorder %v953_v56, 8.507059e+37  ;;  %v956_v11 = vor.u32 1.1754944e-38, %v955_v1  ;;  %v5981_v9 = vadd.f32 1.0, %v3879_v3  ;;  %vm951_vm2 = vmor %vm949_vm0, %vm950_vm11 }
 0x180   :  { %v3642_v37 = vmul.f32 -1.442695, %v5968_v6  ;;  %v2504_v39 = vmul.f32 %v3881_v50, %v5930_v0  ;;  %3888 = vpow2.f32 %v3514_v10  ;;  %v3483_v7 = vmul.f32 -1.442695, %v5975_v59 }
 0x181   :  { %v948_v26 = vadd.f32 %v3877_v27, %v947_v14  ;;  %vm2508_vm10 = vweird.f32 %v5930_v0  ;;  %v2512_v19 = vand.u32 2147483647, %v5930_v0  ;;  %v2514_v23 = vand.u32 2147483648, %v5930_v0 }
 0x182   :  { %3890 = vrcp.f32 %v5981_v9  ;;  %v3883_v30 = vpop.eup %3882  ;;  %v2505_v46 = vsub.f32 1.0, %v2504_v39  ;;  %v5993_v40 = vadd.f32 %v5754_v49, %v1905_v31  ;;  %vm2509_vm5 = vweird.f32 %v3881_v50 }
 0x183   :  { %v952_v24 = vsel %vm951_vm2, %v3877_v27, %v948_v26  ;;  %3892 = vpow2.f32 %v3642_v37  ;;  %v3885_v58 = vpop.eup %3884  ;;  %v1433_v8 = vand.u32 2147483647, %v5981_v9  ;;  %v5998_v17 = vadd.f32 1.0, %v3883_v30  ;;  %vm2510_vm6 = vmor %vm2508_vm10, %vm2509_vm5 }
 0x184   :  { %v957_v33 = vsel %vm5977_vm12, %v956_v11, %v952_v24  ;;  %v3887_v62 = vpop.eup %3886  ;;  %v2506_v43 = vmul.f32 %v3881_v50, %v2505_v46  ;;  %v6001_v53 = vadd.f32 1.0, %v3885_v58  ;;  %3894 = vpow2.f32 %v3483_v7 }
 0x185   :  { %v1722_v22 = vmul.f32 %v957_v33, %v5780_v15  ;;  %vm6003_vm13 = vcmp.eq.f32.partialorder %v2512_v19, 8.507059e+37  ;;  %v2515_v52 = vor.u32 1.1754944e-38, %v2514_v23  ;;  %3896 = vrcp.f32 %v5998_v17 }
 0x186   :  { %v3889_v54 = vpop.eup %3888  ;;  %v2507_v41 = vadd.f32 %v3881_v50, %v2506_v43  ;;  %v1435_v15 = vand.u32 2147483648, %v5981_v9  ;;  %3898 = vrcp.f32 %v6001_v53  ;;  %v6015_v36 = vadd.f32 %v5727_v29, %v442_v2 }
 0x187   :  { %1787 = vst.msk [vmem:[%s7762_s5 + $0x68] sm:$0xff] %vm1773_vm4, %v1722_v22  ;;  %vm1429_vm7 = vweird.f32 %v5981_v9  ;;  %v2994_v32 = vand.u32 2147483648, %v5998_v17  ;;  %v6022_v4 = vadd.f32 1.0, %v3887_v62  ;;  %v3611_v44 = vmul.f32 -1.442695, %v5993_v40 }
 0x188   :  { %v3891_v60 = vpop.eup %3890  ;;  %v2511_v27 = vsel %vm2510_vm6, %v3881_v50, %v2507_v41  ;;  %vm6026_vm15 = vcmp.eq.f32.partialorder %v1433_v8, 8.507059e+37  ;;  %v2992_v38 = vand.u32 2147483647, %v5998_v17  ;;  %v968_v55 = vand.u32 2147483647, %v6001_v53 }
 0x189   :  { %v3893_v47 = vpop.eup %3892  ;;  %v1425_v57 = vmul.f32 %v3891_v60, %v5981_v9  ;;  %v2516_v0 = vsel %vm6003_vm13, %v2515_v52, %v2511_v27  ;;  %v970_v35 = vand.u32 2147483648, %v6001_v53  ;;  %3900 = vrcp.f32 %v6022_v4 }
 0x18a   :  { %v3895_v42 = vpop.eup %3894  ;;  %v3281_v34 = vmul.f32 %v2516_v0, %v5800_v16  ;;  %v1436_v56 = vor.u32 1.1754944e-38, %v1435_v15  ;;  %vm2988_vm1 = vweird.f32 %v5998_v17  ;;  %v2995_v21 = vor.u32 1.1754944e-38, %v2994_v32 }
 0x18b   :  { %v1426_v5 = vsub.f32 1.0, %v1425_v57  ;;  %v3897_v1 = vpop.eup %3896  ;;  %vm964_vm9 = vweird.f32 %v6001_v53  ;;  %v6039_v18 = vadd.f32 1.0, %v3889_v54  ;;  %v6041_v61 = vadd.f32 1.0, %v3893_v47  ;;  %v2001_v54 = vpop.f32.mrf.mxu3 }
 0x18c   :  { %v3899_v51 = vpop.eup %3898  ;;  %3345 = vst.msk [vmem:[%s7763_s6 + $0x68] sm:$0xff] %vm1773_vm4, %v3281_v34  ;;  %vm1430_vm14 = vweird.f32 %v3891_v60  ;;  %v2984_v16 = vmul.f32 %v3897_v1, %v5998_v17  ;;  %vm6048_vm3 = vcmp.eq.f32.partialorder %v2992_v38, 8.507059e+37  ;;  %v2527_v14 = vand.u32 2147483647, %v6022_v4 }
 0x18d   :  { %v1427_v10 = vmul.f32 %v3891_v60, %v1426_v5  ;;  %v960_v50 = vmul.f32 %v3899_v51, %v6001_v53  ;;  %vm6054_vm8 = vcmp.eq.f32.partialorder %v968_v55, 8.507059e+37  ;;  %v971_v11 = vor.u32 1.1754944e-38, %v970_v35  ;;  %vm1431_vm11 = vmor %vm1429_vm7, %vm1430_vm14  ;;  %v349_v55 = vpop.f32.mrf.mxu0 }
 0x18e   :  { %vm2523_vm0 = vweird.f32 %v6022_v4  ;;  %3902 = vrcp.f32 %v6039_v18  ;;  %v2985_v31 = vsub.f32 1.0, %v2984_v16  ;;  %v2529_v26 = vand.u32 2147483648, %v6022_v4  ;;  %v445_v16 = vpop.f32.mrf.mxu2 }
 0x18f   :  { %v1428_v37 = vadd.f32 %v3891_v60, %v1427_v10  ;;  %3904 = vpow2.f32 %v3611_v44  ;;  %v3901_v39 = vpop.eup %3900  ;;  %vm2989_vm12 = vweird.f32 %v3897_v1  ;;  %v961_v7 = vsub.f32 1.0, %v960_v50 }
 0x190   :  { %3906 = vrcp.f32 %v6041_v61  ;;  %v6064_v19 = vadd.f32 1.0, %v3895_v42  ;;  %v2986_v30 = vmul.f32 %v3897_v1, %v2985_v31  ;;  %v2519_v24 = vmul.f32 %v3901_v39, %v6022_v4  ;;  %vm2990_vm5 = vmor %vm2988_vm1, %vm2989_vm12 }
 0x191   :  { %v1432_v23 = vsel %vm1431_vm11, %v3891_v60, %v1428_v37  ;;  %vm6067_vm2 = vcmp.eq.f32.partialorder %v2527_v14, 8.507059e+37  ;;  %v1448_v58 = vand.u32 2147483647, %v6039_v18  ;;  %v962_v33 = vmul.f32 %v3899_v51, %v961_v7 }
 0x192   :  { %v1437_v9 = vsel %vm6026_vm15, %v1436_v56, %v1432_v23  ;;  %vm965_vm10 = vweird.f32 %v3899_v51  ;;  %v1450_v8 = vand.u32 2147483648, %v6039_v18  ;;  %v2987_v62 = vadd.f32 %v3897_v1, %v2986_v30 }
 0x193   :  { %v1754_v2 = vmul.f32 %v1437_v9, %v5820_v28  ;;  %v2520_v22 = vsub.f32 1.0, %v2519_v24  ;;  %v2530_v43 = vor.u32 1.1754944e-38, %v2529_v26  ;;  %v963_v52 = vadd.f32 %v3899_v51, %v962_v33  ;;  %vm966_vm7 = vmor %vm964_vm9, %vm965_vm10  ;;  %v2004_v30 = vpop.f32.mrf.mxu3 }
 0x194   :  { %v3903_v48 = vpop.eup %3902  ;;  %vm2524_vm13 = vweird.f32 %v3901_v39  ;;  %vm1444_vm6 = vweird.f32 %v6039_v18  ;;  %3908 = vrcp.f32 %v6064_v19  ;;  %v2991_v28 = vsel %vm2990_vm5, %v3897_v1, %v2987_v62 }
 0x195   :  { %v3905_v41 = vpop.eup %3904  ;;  %1819 = vst.msk [vmem:[%s7762_s5 + $0x168] sm:$0xff] %vm1773_vm4, %v1754_v2  ;;  %v2521_v17 = vmul.f32 %v3901_v39, %v2520_v22  ;;  %v1440_v15 = vmul.f32 %v3903_v48, %v6039_v18  ;;  %vm6089_vm15 = vcmp.eq.f32.partialorder %v1448_v58, 8.507059e+37  ;;  %v2996_v44 = vsel %vm6048_vm3, %v2995_v21, %v2991_v28  ;;  %vm2525_vm9 = vmor %vm2523_vm0, %vm2524_vm13 }
 0x196   :  { %v3907_v32 = vpop.eup %3906  ;;  %v967_v47 = vsel %vm966_vm7, %v3899_v51, %v963_v52  ;;  %v1451_v27 = vor.u32 1.1754944e-38, %v1450_v8  ;;  %vm3003_vm1 = vweird.f32 %v6041_v61  ;;  %v3007_v57 = vand.u32 2147483647, %v6041_v61 }
 0x197   :  { %v3313_v53 = vmul.f32 %v2996_v44, %v5825_v20  ;;  %v972_v12 = vsel %vm6054_vm8, %v971_v11, %v967_v47  ;;  %v2522_v38 = vadd.f32 %v3901_v39, %v2521_v17  ;;  %v1441_v0 = vsub.f32 1.0, %v1440_v15  ;;  %v448_v47 = vpop.f32.mrf.mxu2 }
 0x198   :  { %v1723_v35 = vmul.f32 %v972_v12, %v5831_v25  ;;  %vm1445_vm14 = vweird.f32 %v3903_v48  ;;  %v2999_v42 = vmul.f32 %v3907_v32, %v6041_v61  ;;  %v3009_v34 = vand.u32 2147483648, %v6041_v61  ;;  %v1908_v25 = vpop.f32.mrf.mxu1 }
 0x199   :  { %3377 = vst.msk [vmem:[%s7763_s6 + $0x168] sm:$0xff] %vm1773_vm4, %v3313_v53  ;;  %v2526_v20 = vsel %vm2525_vm9, %v3901_v39, %v2522_v38  ;;  %v1442_v5 = vmul.f32 %v3903_v48, %v1441_v0  ;;  %v983_v56 = vand.u32 2147483647, %v6064_v19  ;;  %v6111_v1 = vadd.f32 1.0, %v3905_v41  ;;  %vm1446_vm8 = vmor %vm1444_vm6, %vm1445_vm14 }
 0x19a   :  { %v3909_v21 = vpop.eup %3908  ;;  %1788 = vst.msk [vmem:[%s7762_s5 + $0x70] sm:$0xff] %vm1773_vm4, %v1723_v35  ;;  %v2531_v4 = vsel %vm6067_vm2, %v2530_v43, %v2526_v20  ;;  %v3000_v51 = vsub.f32 1.0, %v2999_v42  ;;  %vm979_vm3 = vweird.f32 %v6064_v19  ;;  %v3515_v10 = vmul.f32 -1.442695, %v6015_v36  ;;  %v352_v43 = vpop.f32.mrf.mxu0 }
 0x19b   :  { %v3282_v3 = vmul.f32 %v2531_v4, %v5940_v45  ;;  %v1443_v14 = vadd.f32 %v3903_v48, %v1442_v5  ;;  %v975_v50 = vmul.f32 %v3909_v21, %v6064_v19  ;;  %v985_v63 = vand.u32 2147483648, %v6064_v19 }
 0x19c   :  { %v3001_v11 = vmul.f32 %v3907_v32, %v3000_v51  ;;  %vm3004_vm0 = vweird.f32 %v3907_v32  ;;  %vm6127_vm11 = vcmp.eq.f32.partialorder %v3007_v57, 8.507059e+37  ;;  %3910 = vrcp.f32 %v6111_v1 }
 0x19d   :  { %3346 = vst.msk [vmem:[%s7763_s6 + $0x70] sm:$0xff] %vm1773_vm4, %v3282_v3  ;;  %v1447_v45 = vsel %vm1446_vm8, %v3903_v48, %v1443_v14  ;;  %v3010_v31 = vor.u32 1.1754944e-38, %v3009_v34  ;;  %v976_v26 = vsub.f32 1.0, %v975_v50  ;;  %vm6136_vm12 = vcmp.eq.f32.partialorder %v983_v56, 8.507059e+37  ;;  %vm3005_vm2 = vmor %vm3003_vm1, %vm3004_vm0 }
 0x19e   :  { %v1452_v18 = vsel %vm6089_vm15, %v1451_v27, %v1447_v45  ;;  %v3002_v7 = vadd.f32 %v3907_v32, %v3001_v11  ;;  %3912 = vpow2.f32 %v3515_v10  ;;  %v6143_v23 = vadd.f32 %v5754_v49, %v2001_v54 }
 0x19f   :  { %v1755_v24 = vmul.f32 %v1452_v18, %v5951_v13  ;;  %v977_v46 = vmul.f32 %v3909_v21, %v976_v26  ;;  %vm980_vm10 = vweird.f32 %v3909_v21  ;;  %v986_v58 = vor.u32 1.1754944e-38, %v985_v63 }
 0x1a0   :  { %v3006_v9 = vsel %vm3005_vm2, %v3907_v32, %v3002_v7  ;;  %v3643_v33 = vmul.f32 -1.442695, %v6143_v23  ;;  %v6150_v8 = vadd.f32 %v5727_v29, %v349_v55  ;;  %v6153_v2 = vadd.f32 %v5754_v49, %v1908_v25  ;;  %vm981_vm5 = vmor %vm979_vm3, %vm980_vm10  ;;  %v1911_v60 = vpop.f32.mrf.mxu1 }
 0x1a1   :  { %1820 = vst.msk [vmem:[%s7762_s5 + $0x170] sm:$0xff] %vm1773_vm4, %v1755_v24  ;;  %v3011_v13 = vsel %vm6127_vm11, %v3010_v31, %v3006_v9  ;;  %v978_v61 = vadd.f32 %v3909_v21, %v977_v46  ;;  %v6162_v62 = vadd.f32 %v5727_v29, %v445_v16  ;;  %v6165_v22 = vadd.f32 %v5754_v49, %v2004_v30 }
 0x1a2   :  { %v3911_v48 = vpop.eup %3910  ;;  %v3314_v52 = vmul.f32 %v3011_v13, %v5968_v6  ;;  %3914 = vpow2.f32 %v3643_v33  ;;  %v3484_v54 = vmul.f32 -1.442695, %v6150_v8  ;;  %v3612_v41 = vmul.f32 -1.442695, %v6153_v2  ;;  %v355_v31 = vpop.f32.mrf.mxu0 }
 0x1a3   :  { %v982_v28 = vsel %vm981_vm5, %v3909_v21, %v978_v61  ;;  %v2534_v17 = vmul.f32 %v3911_v48, %v6111_v1  ;;  %vm2538_vm13 = vweird.f32 %v6111_v1  ;;  %v3516_v15 = vmul.f32 -1.442695, %v6162_v62 }
 0x1a4   :  { %v3913_v32 = vpop.eup %3912  ;;  %3378 = vst.msk [vmem:[%s7763_s6 + $0x170] sm:$0xff] %vm1773_vm4, %v3314_v52  ;;  %v987_v6 = vsel %vm6136_vm12, %v986_v58, %v982_v28  ;;  %v2542_v19 = vand.u32 2147483647, %v6111_v1  ;;  %3916 = vpow2.f32 %v3484_v54  ;;  %v6183_v44 = vadd.f32 %v5727_v29, %v352_v43 }
 0x1a5   :  { %v1724_v27 = vmul.f32 %v987_v6, %v5975_v59  ;;  %v2535_v57 = vsub.f32 1.0, %v2534_v17  ;;  %v6186_v53 = vadd.f32 1.0, %v3913_v32  ;;  %3918 = vpow2.f32 %v3612_v41 }
 0x1a6   :  { %v2544_v12 = vand.u32 2147483648, %v6111_v1  ;;  %3920 = vpow2.f32 %v3516_v15  ;;  %v3644_v38 = vmul.f32 -1.442695, %v6165_v22  ;;  %v6191_v0 = vadd.f32 %v5754_v49, %v1911_v60  ;;  %v2007_v1 = vpop.f32.mrf.mxu3 }
 0x1a7   :  { %1789 = vst.msk [vmem:[%s7762_s5 + $0x78] sm:$0xff] %vm1773_vm4, %v1724_v27  ;;  %v2536_v55 = vmul.f32 %v3911_v48, %v2535_v57  ;;  %vm2539_vm6 = vweird.f32 %v3911_v48  ;;  %3922 = vrcp.f32 %v6186_v53  ;;  %v6199_v59 = vadd.f32 %v5727_v29, %v448_v47 }
 0x1a8   :  { %v3915_v35 = vpop.eup %3914  ;;  %v3485_v42 = vmul.f32 -1.442695, %v6183_v44  ;;  %v3613_v5 = vmul.f32 -1.442695, %v6191_v0  ;;  %vm2540_vm7 = vmor %vm2538_vm13, %vm2539_vm6  ;;  %vm2543_vm15 = vcmp.eq.f32.partialorder %v2542_v19, 8.507059e+37  ;;  %v2545_v25 = vor.u32 1.1754944e-38, %v2544_v12 }
 0x1a9   :  { %v2537_v34 = vadd.f32 %v3911_v48, %v2536_v55  ;;  %v6202_v20 = vadd.f32 1.0, %v3915_v35  ;;  %v1463_v21 = vand.u32 2147483647, %v6186_v53  ;;  %3924 = vpow2.f32 %v3644_v38 }
 0x1aa   :  { %v3917_v56 = vpop.eup %3916  ;;  %v1465_v10 = vand.u32 2147483648, %v6186_v53  ;;  %v3517_v16 = vmul.f32 -1.442695, %v6199_v59  ;;  %vm1459_vm1 = vweird.f32 %v6186_v53  ;;  %v6233_v30 = vadd.f32 %v5754_v49, %v2007_v1 }
 0x1ab   :  { %v3919_v4 = vpop.eup %3918  ;;  %v2541_v51 = vsel %vm2540_vm7, %v3911_v48, %v2537_v34  ;;  %3926 = vrcp.f32 %v6202_v20  ;;  %v6211_v50 = vadd.f32 1.0, %v3917_v56  ;;  %vm6220_vm9 = vcmp.eq.f32.partialorder %v1463_v21, 8.507059e+37 }
 0x1ac   :  { %v3921_v3 = vpop.eup %3920  ;;  %v2546_v14 = vsel %vm2543_vm15, %v2545_v25, %v2541_v51  ;;  %v6213_v63 = vadd.f32 1.0, %v3919_v4  ;;  %3928 = vpow2.f32 %v3485_v42  ;;  %v3022_v18 = vand.u32 2147483647, %v6202_v20 }
 0x1ad   :  { %v3923_v11 = vpop.eup %3922  ;;  %v3283_v37 = vmul.f32 %v2546_v14, %v5993_v40  ;;  %v6217_v45 = vadd.f32 1.0, %v3921_v3  ;;  %3930 = vpow2.f32 %v3613_v5  ;;  %v1466_v40 = vor.u32 1.1754944e-38, %v1465_v10 }
 0x1ae   :  { %v1455_v26 = vmul.f32 %v3923_v11, %v6186_v53  ;;  %3932 = vrcp.f32 %v6211_v50  ;;  %v3024_v7 = vand.u32 2147483648, %v6202_v20  ;;  %v1000_v58 = vand.u32 2147483648, %v6211_v50 }
 0x1af   :  { %3347 = vst.msk [vmem:[%s7763_s6 + $0x78] sm:$0xff] %vm1773_vm4, %v3283_v37  ;;  %3934 = vrcp.f32 %v6213_v63  ;;  %v3925_v24 = vpop.eup %3924  ;;  %v6237_v9 = vadd.f32 %v5727_v29, %v355_v31  ;;  %vm3018_vm14 = vweird.f32 %v6202_v20  ;;  %v998_v13 = vand.u32 2147483647, %v6211_v50 }
 0x1b0   :  { %v1456_v46 = vsub.f32 1.0, %v1455_v26  ;;  %3936 = vpow2.f32 %v3517_v16  ;;  %v2559_v61 = vand.u32 2147483648, %v6213_v63  ;;  %vm1460_vm3 = vweird.f32 %v3923_v11 }
 0x1b1   :  { %v3927_v33 = vpop.eup %3926  ;;  %3938 = vrcp.f32 %v6217_v45  ;;  %vm6244_vm8 = vcmp.eq.f32.partialorder %v3022_v18, 8.507059e+37  ;;  %v2557_v29 = vand.u32 2147483647, %v6213_v63  ;;  %v3025_v41 = vor.u32 1.1754944e-38, %v3024_v7  ;;  %vm1461_vm2 = vmor %vm1459_vm1, %vm1460_vm3 }
 0x1b2   :  { %v3929_v43 = vpop.eup %3928  ;;  %v1457_v49 = vmul.f32 %v3923_v11, %v1456_v46  ;;  %v3014_v48 = vmul.f32 %v3927_v33, %v6202_v20  ;;  %vm994_vm0 = vweird.f32 %v6211_v50  ;;  %vm2553_vm11 = vweird.f32 %v6213_v63 }
 0x1b3   :  { %v3931_v54 = vpop.eup %3930  ;;  %v6251_v28 = vadd.f32 1.0, %v3925_v24  ;;  %vm3019_vm12 = vweird.f32 %v3927_v33  ;;  %v1001_v32 = vor.u32 1.1754944e-38, %v1000_v58  ;;  %vm6257_vm10 = vcmp.eq.f32.partialorder %v998_v13, 8.507059e+37 }
 0x1b4   :  { %v3933_v17 = vpop.eup %3932  ;;  %v1458_v15 = vadd.f32 %v3923_v11, %v1457_v49  ;;  %v3015_v60 = vsub.f32 1.0, %v3014_v48  ;;  %v2560_v27 = vor.u32 1.1754944e-38, %v2559_v61  ;;  %v1478_v57 = vand.u32 2147483647, %v6217_v45  ;;  %vm3020_vm6 = vmor %vm3018_vm14, %vm3019_vm12 }
 0x1b5   :  { %v3935_v6 = vpop.eup %3934  ;;  %v990_v19 = vmul.f32 %v3933_v17, %v6211_v50  ;;  %v1480_v12 = vand.u32 2147483648, %v6217_v45  ;;  %vm6266_vm5 = vcmp.eq.f32.partialorder %v2557_v29, 8.507059e+37  ;;  %vm1474_vm13 = vweird.f32 %v6217_v45 }
 0x1b6   :  { %v6263_v38 = vpop.eup %3936  ;;  %v1462_v55 = vsel %vm1461_vm2, %v3923_v11, %v1458_v15  ;;  %v3016_v35 = vmul.f32 %v3927_v33, %v3015_v60  ;;  %v2549_v42 = vmul.f32 %v3935_v6, %v6213_v63  ;;  %v6271_v34 = vadd.f32 1.0, %v3929_v43 }
 0x1b7   :  { %v3939_v5 = vpop.eup %3938  ;;  %v1467_v56 = vsel %vm6220_vm9, %v1466_v40, %v1462_v55  ;;  %v991_v25 = vsub.f32 1.0, %v990_v19  ;;  %3940 = vrcp.f32 %v6251_v28  ;;  %v6276_v21 = vadd.f32 1.0, %v3931_v54 }
 0x1b8   :  { %v1756_v4 = vmul.f32 %v1467_v56, %v6015_v36  ;;  %v3017_v51 = vadd.f32 %v3927_v33, %v3016_v35  ;;  %v2550_v10 = vsub.f32 1.0, %v2549_v42  ;;  %v1470_v16 = vmul.f32 %v3939_v5, %v6217_v45  ;;  %v2010_v56 = vpop.f32.mrf.mxu3 }
 0x1b9   :  { %v992_v3 = vmul.f32 %v3933_v17, %v991_v25  ;;  %vm995_vm7 = vweird.f32 %v3933_v17  ;;  %vm2554_vm15 = vweird.f32 %v3935_v6  ;;  %vm6283_vm1 = vcmp.eq.f32.partialorder %v1478_v57, 8.507059e+37 }
 0x1ba   :  { %1821 = vst.msk [vmem:[%s7762_s5 + $0x178] sm:$0xff] %vm1773_vm4, %v1756_v4  ;;  %v3021_v36 = vsel %vm3020_vm6, %v3927_v33, %v3017_v51  ;;  %v2551_v1 = vmul.f32 %v3935_v6, %v2550_v10  ;;  %v1471_v11 = vsub.f32 1.0, %v1470_v16  ;;  %3942 = vrcp.f32 %v6271_v34  ;;  %vm996_vm14 = vmor %vm994_vm0, %vm995_vm7  ;;  %v358_v10 = vpop.f32.mrf.mxu0 }
 0x1bb   :  { %v3026_v20 = vsel %vm6244_vm8, %v3025_v41, %v3021_v36  ;;  %v993_v37 = vadd.f32 %v3933_v17, %v992_v3  ;;  %vm1475_vm9 = vweird.f32 %v3939_v5  ;;  %v1481_v31 = vor.u32 1.1754944e-38, %v1480_v12  ;;  %vm2555_vm3 = vmor %vm2553_vm11, %vm2554_vm15 }
 0x1bc   :  { %v3315_v26 = vmul.f32 %v3026_v20, %v6143_v23  ;;  %v2552_v39 = vadd.f32 %v3935_v6, %v2551_v1  ;;  %v1472_v18 = vmul.f32 %v3939_v5, %v1471_v11  ;;  %v3037_v40 = vand.u32 2147483647, %v6251_v28  ;;  %vm1476_vm8 = vmor %vm1474_vm13, %vm1475_vm9  ;;  %v6379_v20 = vld [vmem:[%s7760_s3] ss:$0 sm:$0xff] }
 0x1bd   :  { %v3941_v7 = vpop.eup %3940  ;;  %v997_v24 = vsel %vm996_vm14, %v3933_v17, %v993_v37  ;;  %v3039_v46 = vand.u32 2147483648, %v6251_v28  ;;  %v1013_v58 = vand.u32 2147483647, %v6271_v34  ;;  %3944 = vrcp.f32 %v6276_v21 }
 0x1be   :  { %3379 = vst.msk [vmem:[%s7763_s6 + $0x178] sm:$0xff] %vm1773_vm4, %v3315_v26  ;;  %v1002_v23 = vsel %vm6257_vm10, %v1001_v32, %v997_v24  ;;  %v2556_v50 = vsel %vm2555_vm3, %v3935_v6, %v2552_v39  ;;  %v1473_v33 = vadd.f32 %v3939_v5, %v1472_v18  ;;  %v3029_v13 = vmul.f32 %v3941_v7, %v6251_v28 }
 0x1bf   :  { %v1725_v63 = vmul.f32 %v1002_v23, %v6150_v8  ;;  %v2561_v61 = vsel %vm6266_vm5, %v2560_v27, %v2556_v50  ;;  %vm3033_vm0 = vweird.f32 %v6251_v28  ;;  %v1015_v43 = vand.u32 2147483648, %v6271_v34  ;;  %v1914_v8 = vpop.f32.mrf.mxu1  ;;  %v6362_v28 = vld [vmem:[%s7761_s4] ss:$0 sm:$0xff] }
 0x1c0   :  { %v3943_v49 = vpop.eup %3942  ;;  %v3284_v48 = vmul.f32 %v2561_v61, %v6153_v2  ;;  %v1477_v52 = vsel %vm1476_vm8, %v3939_v5, %v1473_v33  ;;  %v3030_v29 = vsub.f32 1.0, %v3029_v13  ;;  %vm6320_vm11 = vcmp.eq.f32.partialorder %v3037_v40, 8.507059e+37  ;;  %v451_v5 = vpop.f32.mrf.mxu2 }
 0x1c1   :  { %1790 = vst.msk [vmem:[%s7762_s5 + $0x80] sm:$0xff] %vm1773_vm4, %v1725_v63  ;;  %v1482_v45 = vsel %vm6283_vm1, %v1481_v31, %v1477_v52  ;;  %v3040_v41 = vor.u32 1.1754944e-38, %v3039_v46  ;;  %v1005_v17 = vmul.f32 %v3943_v49, %v6271_v34  ;;  %vm1009_vm12 = vweird.f32 %v6271_v34 }
 0x1c2   :  { %3348 = vst.msk [vmem:[%s7763_s6 + $0x80] sm:$0xff] %vm1773_vm4, %v3284_v48  ;;  %v1757_v2 = vmul.f32 %v1482_v45, %v6162_v62  ;;  %v3031_v15 = vmul.f32 %v3941_v7, %v3030_v29  ;;  %vm3034_vm2 = vweird.f32 %v3941_v7  ;;  %vm6337_vm10 = vcmp.eq.f32.partialorder %v1013_v58, 8.507059e+37  ;;  %v2013_v29 = vpop.f32.mrf.mxu3 }
 0x1c3   :  { %v3945_v32 = vpop.eup %3944  ;;  %v1006_v6 = vsub.f32 1.0, %v1005_v17  ;;  %v1016_v19 = vor.u32 1.1754944e-38, %v1015_v43  ;;  %v6342_v47 = vadd.f32 1.0, %v6263_v38  ;;  %v3645_v27 = vmul.f32 -1.442695, %v6233_v30  ;;  %vm3035_vm5 = vmor %vm3033_vm0, %vm3034_vm2 }
 0x1c4   :  { %1822 = vst.msk [vmem:[%s7762_s5 + $0x180] sm:$0xff] %vm1773_vm4, %v1757_v2  ;;  %v3032_v62 = vadd.f32 %v3941_v7, %v3031_v15  ;;  %v2564_v57 = vmul.f32 %v3945_v32, %v6276_v21  ;;  %v2572_v12 = vand.u32 2147483647, %v6276_v21  ;;  %v2574_v55 = vand.u32 2147483648, %v6276_v21 }
 0x1c5   :  { %v1007_v35 = vmul.f32 %v3943_v49, %v1006_v6  ;;  %vm1010_vm13 = vweird.f32 %v3943_v49  ;;  %3946 = vrcp.f32 %v6342_v47  ;;  %v3486_v38 = vmul.f32 -1.442695, %v6237_v9 }
 0x1c6   :  { %v3036_v42 = vsel %vm3035_vm5, %v3941_v7, %v3032_v62  ;;  %v2565_v53 = vsub.f32 1.0, %v2564_v57  ;;  %vm2568_vm6 = vweird.f32 %v6276_v21  ;;  %vm2569_vm7 = vweird.f32 %v3945_v32  ;;  %vm1011_vm15 = vmor %vm1009_vm12, %vm1010_vm13 }
 0x1c7   :  { %v3041_v25 = vsel %vm6320_vm11, %v3040_v41, %v3036_v42  ;;  %v1008_v4 = vadd.f32 %v3943_v49, %v1007_v35  ;;  %3948 = vpow2.f32 %v3645_v27  ;;  %v6365_v51 = vadd.f32 %v6362_v28, %v1914_v8  ;;  %v1917_v39 = vpop.f32.mrf.mxu1  ;;  %vm2570_vm9 = vmor %vm2568_vm6, %vm2569_vm7  ;;  %v361_v41 = vpop.f32.mrf.mxu0 }
 0x1c8   :  { %v3316_v16 = vmul.f32 %v3041_v25, %v6165_v22  ;;  %v2566_v3 = vmul.f32 %v3945_v32, %v2565_v53  ;;  %vm6371_vm1 = vcmp.eq.f32.partialorder %v2572_v12, 8.507059e+37  ;;  %v2575_v36 = vor.u32 1.1754944e-38, %v2574_v55  ;;  %v454_v52 = vpop.f32.mrf.mxu2 }
 0x1c9   :  { %v1012_v1 = vsel %vm1011_vm15, %v3943_v49, %v1008_v4  ;;  %3950 = vpow2.f32 %v3486_v38  ;;  %v3614_v11 = vmul.f32 -1.442695, %v6365_v51  ;;  %v6382_v22 = vadd.f32 %v6379_v20, %v451_v5 }
 0x1ca   :  { %3380 = vst.msk [vmem:[%s7763_s6 + $0x180] sm:$0xff] %vm1773_vm4, %v3316_v16  ;;  %v1017_v34 = vsel %vm6337_vm10, %v1016_v19, %v1012_v1  ;;  %v2567_v37 = vadd.f32 %v3945_v32, %v2566_v3  ;;  %v6391_v31 = vadd.f32 %v6362_v28, %v2010_v56  ;;  %v6394_v26 = vadd.f32 %v6379_v20, %v358_v10 }
 0x1cb   :  { %v3947_v18 = vpop.eup %3946  ;;  %v1726_v40 = vmul.f32 %v1017_v34, %v6183_v44  ;;  %v1493_v7 = vand.u32 2147483647, %v6342_v47  ;;  %3952 = vpow2.f32 %v3614_v11  ;;  %v3518_v24 = vmul.f32 -1.442695, %v6382_v22 }
 0x1cc   :  { %v2571_v46 = vsel %vm2570_vm9, %v3945_v32, %v2567_v37  ;;  %v1485_v58 = vmul.f32 %v3947_v18, %v6342_v47  ;;  %v1495_v23 = vand.u32 2147483648, %v6342_v47  ;;  %v3646_v50 = vmul.f32 -1.442695, %v6391_v31 }
 0x1cd   :  { %v3949_v33 = vpop.eup %3948  ;;  %1791 = vst.msk [vmem:[%s7762_s5 + $0x88] sm:$0xff] %vm1773_vm4, %v1726_v40  ;;  %v2576_v44 = vsel %vm6371_vm1, %v2575_v36, %v2571_v46  ;;  %3954 = vpow2.f32 %v3518_v24  ;;  %v3487_v21 = vmul.f32 -1.442695, %v6394_v26  ;;  %v6413_v13 = vadd.f32 %v6362_v28, %v1917_v39 }
 0x1ce   :  { %v3285_v63 = vmul.f32 %v2576_v44, %v6191_v0  ;;  %v1486_v61 = vsub.f32 1.0, %v1485_v58  ;;  %v6416_v43 = vadd.f32 1.0, %v3949_v33  ;;  %3956 = vpow2.f32 %v3646_v50 }
 0x1cf   :  { %v3951_v49 = vpop.eup %3950  ;;  %vm1490_vm14 = vweird.f32 %v3947_v18  ;;  %vm1489_vm3 = vweird.f32 %v6342_v47  ;;  %vm6424_vm8 = vcmp.eq.f32.partialorder %v1493_v7, 8.507059e+37  ;;  %v3615_v45 = vmul.f32 -1.442695, %v6413_v13 }
 0x1d0   :  { %3349 = vst.msk [vmem:[%s7763_s6 + $0x88] sm:$0xff] %vm1773_vm4, %v3285_v63  ;;  %v1487_v48 = vmul.f32 %v3947_v18, %v1486_v61  ;;  %3958 = vrcp.f32 %v6416_v43  ;;  %v6428_v8 = vadd.f32 1.0, %v3951_v49  ;;  %v1496_v2 = vor.u32 1.1754944e-38, %v1495_v23  ;;  %vm1491_vm0 = vmor %vm1489_vm3, %vm1490_vm14 }
 0x1d1   :  { %v3953_v54 = vpop.eup %3952  ;;  %3960 = vpow2.f32 %v3487_v21  ;;  %v3052_v32 = vand.u32 2147483647, %v6416_v43  ;;  %v6437_v6 = vadd.f32 %v6379_v20, %v454_v52  ;;  %v6440_v19 = vadd.f32 %v6362_v28, %v2013_v29 }
 0x1d2   :  { %v1488_v17 = vadd.f32 %v3947_v18, %v1487_v48  ;;  %v6431_v15 = vadd.f32 1.0, %v3953_v54  ;;  %3962 = vrcp.f32 %v6428_v8  ;;  %v3054_v62 = vand.u32 2147483648, %v6416_v43 }
 0x1d3   :  { %v3955_v60 = vpop.eup %3954  ;;  %v6445_v57 = vadd.f32 %v6379_v20, %v361_v41  ;;  %vm3048_vm11 = vweird.f32 %v6416_v43  ;;  %v1028_v55 = vand.u32 2147483647, %v6428_v8  ;;  %v1030_v42 = vand.u32 2147483648, %v6428_v8 }
 0x1d4   :  { %v3957_v47 = vpop.eup %3956  ;;  %v1492_v27 = vsel %vm1491_vm0, %v3947_v18, %v1488_v17  ;;  %3964 = vrcp.f32 %v6431_v15  ;;  %v6453_v53 = vadd.f32 1.0, %v3955_v60  ;;  %vm6458_vm12 = vcmp.eq.f32.partialorder %v3052_v32, 8.507059e+37 }
 0x1d5   :  { %v1497_v12 = vsel %vm6424_vm8, %v1496_v2, %v1492_v27  ;;  %3966 = vpow2.f32 %v3615_v45  ;;  %v6455_v5 = vadd.f32 1.0, %v3957_v47  ;;  %v2587_v4 = vand.u32 2147483647, %v6431_v15 }
 0x1d6   :  { %v3959_v35 = vpop.eup %3958  ;;  %v1758_v38 = vmul.f32 %v1497_v12, %v6199_v59  ;;  %v3519_v10 = vmul.f32 -1.442695, %v6437_v6  ;;  %v3055_v59 = vor.u32 1.1754944e-38, %v3054_v62  ;;  %v2589_v3 = vand.u32 2147483648, %v6431_v15 }
 0x1d7   :  { %v3044_v56 = vmul.f32 %v3959_v35, %v6416_v43  ;;  %v3961_v16 = vpop.eup %3960  ;;  %3968 = vrcp.f32 %v6453_v53  ;;  %v6471_v14 = vmul.f32 -1.442695, %v6440_v19  ;;  %vm1024_vm2 = vweird.f32 %v6428_v8 }
 0x1d8   :  { %1823 = vst.msk [vmem:[%s7762_s5 + $0x188] sm:$0xff] %vm1773_vm4, %v1758_v38  ;;  %v3963_v36 = vpop.eup %3962  ;;  %vm2583_vm10 = vweird.f32 %v6431_v15  ;;  %3970 = vrcp.f32 %v6455_v5  ;;  %vm3049_vm5 = vweird.f32 %v3959_v35  ;;  %vm6477_vm13 = vcmp.eq.f32.partialorder %v1028_v55, 8.507059e+37 }
 0x1d9   :  { %v3045_v1 = vsub.f32 1.0, %v3044_v56  ;;  %v1020_v34 = vmul.f32 %v3963_v36, %v6428_v8  ;;  %v1031_v39 = vor.u32 1.1754944e-38, %v1030_v42  ;;  %vm6482_vm6 = vcmp.eq.f32.partialorder %v2587_v4, 8.507059e+37  ;;  %vm3050_vm15 = vmor %vm3048_vm11, %vm3049_vm5 }
 0x1da   :  { %v3965_v11 = vpop.eup %3964  ;;  %v1508_v46 = vand.u32 2147483647, %v6453_v53  ;;  %v2590_v23 = vor.u32 1.1754944e-38, %v2589_v3  ;;  %v1510_v50 = vand.u32 2147483648, %v6453_v53  ;;  %v6488_v33 = vadd.f32 1.0, %v3961_v16 }
 0x1db   :  { %v3967_v18 = vpop.eup %3966  ;;  %v3046_v40 = vmul.f32 %v3959_v35, %v3045_v1  ;;  %v2579_v7 = vmul.f32 %v3965_v11, %v6431_v15  ;;  %v1021_v58 = vsub.f32 1.0, %v1020_v34  ;;  %vm1504_vm7 = vweird.f32 %v6453_v53 }
 0x1dc   :  { %v3067_v63 = vand.u32 2147483647, %v6455_v5  ;;  %3972 = vpow2.f32 %v3519_v10  ;;  %vm1025_vm1 = vweird.f32 %v3963_v36  ;;  %vm3063_vm9 = vweird.f32 %v6455_v5 }
 0x1dd   :  { %v3047_v44 = vadd.f32 %v3959_v35, %v3046_v40  ;;  %v2580_v21 = vsub.f32 1.0, %v2579_v7  ;;  %v3969_v61 = vpop.eup %3968  ;;  %v1022_v49 = vmul.f32 %v3963_v36, %v1021_v58  ;;  %3974 = vrcp.f32 %v6488_v33  ;;  %vm1026_vm8 = vmor %vm1024_vm2, %vm1025_vm1  ;;  %v457_v40 = vpop.f32.mrf.mxu2 }
 0x1de   :  { %v6497_v48 = vadd.f32 1.0, %v3967_v18  ;;  %v3971_v52 = vpop.eup %3970  ;;  %vm2584_vm14 = vweird.f32 %v3965_v11  ;;  %v1500_v0 = vmul.f32 %v3969_v61, %v6453_v53  ;;  %vm6500_vm3 = vcmp.eq.f32.partialorder %v1508_v46, 8.507059e+37  ;;  %v1920_v53 = vpop.f32.mrf.mxu1 }
 0x1df   :  { %v3051_v29 = vsel %vm3050_vm15, %v3959_v35, %v3047_v44  ;;  %v2581_v54 = vmul.f32 %v3965_v11, %v2580_v21  ;;  %v1023_v41 = vadd.f32 %v3963_v36, %v1022_v49  ;;  %v1511_v17 = vor.u32 1.1754944e-38, %v1510_v50  ;;  %vm2585_vm11 = vmor %vm2583_vm10, %vm2584_vm14  ;;  %v2016_v58 = vpop.f32.mrf.mxu3 }
 0x1e0   :  { %v3056_v43 = vsel %vm6458_vm12, %v3055_v59, %v3051_v29  ;;  %v3059_v2 = vmul.f32 %v3971_v52, %v6455_v5  ;;  %v1501_v47 = vsub.f32 1.0, %v1500_v0  ;;  %vm6511_vm0 = vcmp.eq.f32.partialorder %v3067_v63, 8.507059e+37  ;;  %v364_v0 = vpop.f32.mrf.mxu0 }
 0x1e1   :  { %v3317_v60 = vmul.f32 %v3056_v43, %v6233_v30  ;;  %v2582_v32 = vadd.f32 %v3965_v11, %v2581_v54  ;;  %v1027_v62 = vsel %vm1026_vm8, %v3963_v36, %v1023_v41  ;;  %v3069_v55 = vand.u32 2147483648, %v6455_v5 }
 0x1e2   :  { %v3060_v12 = vsub.f32 1.0, %v3059_v2  ;;  %3976 = vrcp.f32 %v6497_v48  ;;  %v3973_v30 = vpop.eup %3972  ;;  %v1032_v8 = vsel %vm6477_vm13, %v1031_v39, %v1027_v62  ;;  %v1502_v38 = vmul.f32 %v3969_v61, %v1501_v47 }
 0x1e3   :  { %3381 = vst.msk [vmem:[%s7763_s6 + $0x188] sm:$0xff] %vm1773_vm4, %v3317_v60  ;;  %v2586_v35 = vsel %vm2585_vm11, %v3965_v11, %v2582_v32  ;;  %vm1505_vm12 = vweird.f32 %v3969_v61  ;;  %v3975_v42 = vpop.eup %3974  ;;  %v1727_v15 = vmul.f32 %v1032_v8, %v6237_v9  ;;  %vm3064_vm2 = vweird.f32 %v3971_v52 }
 0x1e4   :  { %v2591_v56 = vsel %vm6482_vm6, %v2590_v23, %v2586_v35  ;;  %v3061_v25 = vmul.f32 %v3971_v52, %v3060_v12  ;;  %v1503_v10 = vadd.f32 %v3969_v61, %v1502_v38  ;;  %v1035_v16 = vmul.f32 %v3975_v42, %v6488_v33  ;;  %vm1506_vm10 = vmor %vm1504_vm7, %vm1505_vm12 }
 0x1e5   :  { %v3286_v4 = vmul.f32 %v2591_v56, %v6365_v51  ;;  %v3488_v59 = vmul.f32 -1.442695, %v6445_v57  ;;  %1792 = vst.msk [vmem:[%s7762_s5 + $0x90] sm:$0xff] %vm1773_vm4, %v1727_v15  ;;  %v3070_v3 = vor.u32 1.1754944e-38, %v3069_v55  ;;  %v1043_v36 = vand.u32 2147483647, %v6488_v33  ;;  %vm3065_vm5 = vmor %vm3063_vm9, %vm3064_vm2  ;;  %v460_v35 = vpop.f32.mrf.mxu2 }
 0x1e6   :  { %v3062_v9 = vadd.f32 %v3971_v52, %v3061_v25  ;;  %v1045_v1 = vand.u32 2147483648, %v6488_v33  ;;  %v1507_v51 = vsel %vm1506_vm10, %v3969_v61, %v1503_v10  ;;  %v1036_v11 = vsub.f32 1.0, %v1035_v16 }
 0x1e7   :  { %3350 = vst.msk [vmem:[%s7763_s6 + $0x90] sm:$0xff] %vm1773_vm4, %v3286_v4  ;;  %v6545_v34 = vadd.f32 1.0, %v3973_v30  ;;  %3978 = vpow2.f32 %v6471_v14  ;;  %v1512_v39 = vsel %vm6500_vm3, %v1511_v17, %v1507_v51  ;;  %vm1039_vm13 = vweird.f32 %v6488_v33  ;;  %v2019_v16 = vpop.f32.mrf.mxu3 }
 0x1e8   :  { %v3977_v37 = vpop.eup %3976  ;;  %v3066_v18 = vsel %vm3065_vm5, %v3971_v52, %v3062_v9  ;;  %vm1040_vm6 = vweird.f32 %v3975_v42  ;;  %v1759_v7 = vmul.f32 %v1512_v39, %v6382_v22  ;;  %v1037_v24 = vmul.f32 %v3975_v42, %v1036_v11 }
 0x1e9   :  { %v3071_v5 = vsel %vm6511_vm0, %v3070_v3, %v3066_v18  ;;  %v2594_v46 = vmul.f32 %v3977_v37, %v6497_v48  ;;  %vm6556_vm7 = vcmp.eq.f32.partialorder %v1043_v36, 8.507059e+37  ;;  %v1046_v50 = vor.u32 1.1754944e-38, %v1045_v1  ;;  %vm1041_vm1 = vmor %vm1039_vm13, %vm1040_vm6 }
 0x1ea   :  { %v3318_v14 = vmul.f32 %v3071_v5, %v6391_v31  ;;  %3980 = vrcp.f32 %v6545_v34  ;;  %1824 = vst.msk [vmem:[%s7762_s5 + $0x190] sm:$0xff] %vm1773_vm4, %v1759_v7  ;;  %v1038_v22 = vadd.f32 %v3975_v42, %v1037_v24  ;;  %vm2598_vm15 = vweird.f32 %v6497_v48 }
 0x1eb   :  { %v2595_v44 = vsub.f32 1.0, %v2594_v46  ;;  %v2604_v21 = vand.u32 2147483648, %v6497_v48  ;;  %3982 = vpow2.f32 %v3488_v59  ;;  %v6575_v31 = vadd.f32 %v6362_v28, %v1920_v53 }
 0x1ec   :  { %3382 = vst.msk [vmem:[%s7763_s6 + $0x190] sm:$0xff] %vm1773_vm4, %v3318_v14  ;;  %v6578_v63 = vadd.f32 %v6379_v20, %v457_v40  ;;  %v6581_v61 = vadd.f32 %v6362_v28, %v2016_v58  ;;  %v1042_v52 = vsel %vm1041_vm1, %v3975_v42, %v1038_v22  ;;  %vm2599_vm9 = vweird.f32 %v3977_v37 }
 0x1ed   :  { %v3979_v49 = vpop.eup %3978  ;;  %v2596_v29 = vmul.f32 %v3977_v37, %v2595_v44  ;;  %v2602_v54 = vand.u32 2147483647, %v6497_v48  ;;  %v1047_v33 = vsel %vm6556_vm7, %v1046_v50, %v1042_v52  ;;  %v3616_v43 = vmul.f32 -1.442695, %v6575_v31  ;;  %vm2600_vm14 = vmor %vm2598_vm15, %vm2599_vm9  ;;  %v1923_v48 = vpop.f32.mrf.mxu1 }
 0x1ee   :  { %v6586_v45 = vadd.f32 1.0, %v3979_v49  ;;  %v3520_v41 = vmul.f32 -1.442695, %v6578_v63  ;;  %v1728_v17 = vmul.f32 %v1047_v33, %v6394_v26  ;;  %v2605_v60 = vor.u32 1.1754944e-38, %v2604_v21 }
 0x1ef   :  { %v2597_v2 = vadd.f32 %v3977_v37, %v2596_v29  ;;  %v1523_v32 = vand.u32 2147483647, %v6545_v34  ;;  %v1525_v27 = vand.u32 2147483648, %v6545_v34  ;;  %v3648_v62 = vmul.f32 -1.442695, %v6581_v61 }
 0x1f0   :  { %v3981_v47 = vpop.eup %3980  ;;  %3984 = vrcp.f32 %v6586_v45  ;;  %v6598_v12 = vadd.f32 %v6379_v20, %v364_v0  ;;  %1793 = vst.msk [vmem:[%s7762_s5 + $0x98] sm:$0xff] %vm1773_vm4, %v1728_v17  ;;  %vm2603_vm3 = vcmp.eq.f32.partialorder %v2602_v54, 8.507059e+37  ;;  %vm1519_vm8 = vweird.f32 %v6545_v34 }
 0x1f1   :  { %v2601_v26 = vsel %vm2600_vm14, %v3977_v37, %v2597_v2  ;;  %v1515_v55 = vmul.f32 %v3981_v47, %v6545_v34  ;;  %3986 = vpow2.f32 %v3616_v43  ;;  %v3983_v30 = vpop.eup %3982  ;;  %vm6607_vm0 = vcmp.eq.f32.partialorder %v1523_v32, 8.507059e+37 }
 0x1f2   :  { %v2606_v8 = vsel %vm2603_vm3, %v2605_v60, %v2601_v26  ;;  %3988 = vpow2.f32 %v3520_v41  ;;  %v6611_v56 = vadd.f32 1.0, %v3983_v30  ;;  %v1526_v25 = vor.u32 1.1754944e-38, %v1525_v27 }
 0x1f3   :  { %v3287_v38 = vmul.f32 %v2606_v8, %v6413_v13  ;;  %v1516_v42 = vsub.f32 1.0, %v1515_v55  ;;  %3990 = vpow2.f32 %v3648_v62  ;;  %v3489_v4 = vmul.f32 -1.442695, %v6598_v12 }
 0x1f4   :  { %v6615_v10 = vadd.f32 %v6362_v28, %v1923_v48  ;;  %vm1520_vm11 = vweird.f32 %v3981_v47  ;;  %3992 = vrcp.f32 %v6611_v56  ;;  %v6623_v59 = vadd.f32 %v6379_v20, %v460_v35 }
 0x1f5   :  { %3351 = vst.msk [vmem:[%s7763_s6 + $0x98] sm:$0xff] %vm1773_vm4, %v3287_v38  ;;  %v1517_v13 = vmul.f32 %v3981_v47, %v1516_v42  ;;  %v3082_v3 = vand.u32 2147483647, %v6586_v45  ;;  %v3084_v36 = vand.u32 2147483648, %v6586_v45  ;;  %3994 = vpow2.f32 %v3489_v4  ;;  %vm1521_vm2 = vmor %vm1519_vm8, %vm1520_vm11  ;;  %v1926_v34 = vpop.f32.mrf.mxu1 }
 0x1f6   :  { %v3985_v9 = vpop.eup %3984  ;;  %v3617_v1 = vmul.f32 -1.442695, %v6615_v10  ;;  %vm3078_vm12 = vweird.f32 %v6586_v45  ;;  %v6631_v37 = vadd.f32 %v6362_v28, %v2019_v16  ;;  %v1058_v18 = vand.u32 2147483647, %v6611_v56 }
 0x1f7   :  { %v3987_v51 = vpop.eup %3986  ;;  %v1518_v11 = vadd.f32 %v3981_v47, %v1517_v13  ;;  %v3074_v53 = vmul.f32 %v3985_v9, %v6586_v45  ;;  %v1060_v40 = vand.u32 2147483648, %v6611_v56  ;;  %v3521_v58 = vmul.f32 -1.442695, %v6623_v59 }
 0x1f8   :  { %v3989_v39 = vpop.eup %3988  ;;  %v6637_v7 = vadd.f32 1.0, %v3987_v51  ;;  %3996 = vpow2.f32 %v3617_v1  ;;  %vm6644_vm10 = vcmp.eq.f32.partialorder %v3082_v3, 8.507059e+37  ;;  %v3085_v50 = vor.u32 1.1754944e-38, %v3084_v36 }
 0x1f9   :  { %v1522_v5 = vsel %vm1521_vm2, %v3981_v47, %v1518_v11  ;;  %v3075_v24 = vsub.f32 1.0, %v3074_v53  ;;  %v6639_v46 = vadd.f32 1.0, %v3989_v39  ;;  %v3991_v14 = vpop.eup %3990  ;;  %vm3079_vm5 = vweird.f32 %v3985_v9 }
 0x1fa   :  { %v1527_v23 = vsel %vm6607_vm0, %v1526_v25, %v1522_v5  ;;  %3998 = vrcp.f32 %v6637_v7  ;;  %v3993_v22 = vpop.eup %3992  ;;  %vm1054_vm13 = vweird.f32 %v6611_v56  ;;  %vm6653_vm6 = vcmp.eq.f32.partialorder %v1058_v18, 8.507059e+37  ;;  %vm3080_vm7 = vmor %vm3078_vm12, %vm3079_vm5  ;;  %v367_v5 = vpop.f32.mrf.mxu0 }
 0x1fb   :  { %v1760_v44 = vmul.f32 %v1527_v23, %v6437_v6  ;;  %v3076_v21 = vmul.f32 %v3985_v9, %v3075_v24  ;;  %4000 = vrcp.f32 %v6639_v46  ;;  %v3995_v49 = vpop.eup %3994  ;;  %v1050_v52 = vmul.f32 %v3993_v22, %v6611_v56 }
 0x1fc   :  { %v1061_v54 = vor.u32 1.1754944e-38, %v1060_v40  ;;  %v2617_v0 = vand.u32 2147483647, %v6637_v7  ;;  %4002 = vpow2.f32 %v3521_v58  ;;  %v3649_v33 = vmul.f32 -1.442695, %v6631_v37 }
 0x1fd   :  { %1825 = vst.msk [vmem:[%s7762_s5 + $0x198] sm:$0xff] %vm1773_vm4, %v1760_v44  ;;  %v3077_v6 = vadd.f32 %v3985_v9, %v3076_v21  ;;  %v1051_v41 = vsub.f32 1.0, %v1050_v52  ;;  %vm2613_vm15 = vweird.f32 %v6637_v7  ;;  %v2619_v17 = vand.u32 2147483648, %v6637_v7 }
 0x1fe   :  { %v3997_v43 = vpop.eup %3996  ;;  %v6667_v2 = vadd.f32 1.0, %v3991_v14  ;;  %vm1055_vm1 = vweird.f32 %v3993_v22  ;;  %v1538_v32 = vand.u32 2147483647, %v6639_v46  ;;  %v6670_v47 = vadd.f32 1.0, %v3995_v49 }
 0x1ff   :  { %v3081_v60 = vsel %vm3080_vm7, %v3985_v9, %v3077_v6  ;;  %v1052_v26 = vmul.f32 %v3993_v22, %v1051_v41  ;;  %v1540_v45 = vand.u32 2147483648, %v6639_v46  ;;  %vm6678_vm9 = vcmp.eq.f32.partialorder %v2617_v0, 8.507059e+37  ;;  %vm1056_vm3 = vmor %vm1054_vm13, %vm1055_vm1 }
 0x200   :  { %v3999_v27 = vpop.eup %3998  ;;  %v3086_v62 = vsel %vm6644_vm10, %v3085_v50, %v3081_v60  ;;  %4004 = vrcp.f32 %v6667_v2  ;;  %vm1534_vm14 = vweird.f32 %v6639_v46  ;;  %v6683_v35 = vadd.f32 1.0, %v3997_v43  ;;  %v463_v43 = vpop.f32.mrf.mxu2 }
 0x201   :  { %v4001_v55 = vpop.eup %4000  ;;  %v3319_v48 = vmul.f32 %v3086_v62, %v6440_v19  ;;  %v2609_v30 = vmul.f32 %v3999_v27, %v6637_v7  ;;  %v1053_v38 = vadd.f32 %v3993_v22, %v1052_v26  ;;  %v2620_v42 = vor.u32 1.1754944e-38, %v2619_v17 }
 0x202   :  { %v1530_v15 = vmul.f32 %v4001_v55, %v6639_v46  ;;  %4006 = vpow2.f32 %v3649_v33  ;;  %v4003_v25 = vpop.eup %4002  ;;  %vm6693_vm8 = vcmp.eq.f32.partialorder %v1538_v32, 8.507059e+37  ;;  %v3097_v16 = vand.u32 2147483647, %v6667_v2  ;;  %v370_v4 = vpop.f32.mrf.mxu0 }
 0x203   :  { %3383 = vst.msk [vmem:[%s7763_s6 + $0x198] sm:$0xff] %vm1773_vm4, %v3319_v48  ;;  %v2610_v19 = vsub.f32 1.0, %v2609_v30  ;;  %4008 = vrcp.f32 %v6670_v47  ;;  %v1057_v13 = vsel %vm1056_vm3, %v3993_v22, %v1053_v38  ;;  %v1541_v3 = vor.u32 1.1754944e-38, %v1540_v45 }
 0x204   :  { %v1531_v9 = vsub.f32 1.0, %v1530_v15  ;;  %v3099_v36 = vand.u32 2147483648, %v6667_v2  ;;  %v1062_v1 = vsel %vm6653_vm6, %v1061_v54, %v1057_v13  ;;  %vm2614_vm0 = vweird.f32 %v3999_v27 }
 0x205   :  { %v2611_v51 = vmul.f32 %v3999_v27, %v2610_v19  ;;  %4010 = vrcp.f32 %v6683_v35  ;;  %v1729_v11 = vmul.f32 %v1062_v1, %v6445_v57  ;;  %vm1535_vm11 = vweird.f32 %v4001_v55  ;;  %vm2615_vm5 = vmor %vm2613_vm15, %vm2614_vm0 }
 0x206   :  { %v4005_v56 = vpop.eup %4004  ;;  %v1532_v53 = vmul.f32 %v4001_v55, %v1531_v9  ;;  %vm3093_vm12 = vweird.f32 %v6667_v2  ;;  %vm6706_vm2 = vcmp.eq.f32.partialorder %v3097_v16, 8.507059e+37  ;;  %vm1069_vm10 = vweird.f32 %v6670_v47  ;;  %vm1536_vm13 = vmor %vm1534_vm14, %vm1535_vm11 }
 0x207   :  { %v2612_v39 = vadd.f32 %v3999_v27, %v2611_v51  ;;  %v3089_v18 = vmul.f32 %v4005_v56, %v6667_v2  ;;  %1794 = vst.msk [vmem:[%s7762_s5 + $0xa0] sm:$0xff] %vm1773_vm4, %v1729_v11  ;;  %v3100_v58 = vor.u32 1.1754944e-38, %v3099_v36  ;;  %v1073_v14 = vand.u32 2147483647, %v6670_v47  ;;  %v1929_v36 = vpop.f32.mrf.mxu1 }
 0x208   :  { %v4007_v24 = vpop.eup %4006  ;;  %v1533_v57 = vadd.f32 %v4001_v55, %v1532_v53  ;;  %v1075_v23 = vand.u32 2147483648, %v6670_v47  ;;  %vm3094_vm6 = vweird.f32 %v4005_v56  ;;  %v6722_v21 = vadd.f32 1.0, %v4003_v25 }
 0x209   :  { %v4009_v50 = vpop.eup %4008  ;;  %v2616_v22 = vsel %vm2615_vm5, %v3999_v27, %v2612_v39  ;;  %v3090_v44 = vsub.f32 1.0, %v3089_v18  ;;  %v2632_v29 = vand.u32 2147483647, %v6683_v35  ;;  %v6731_v33 = vadd.f32 1.0, %v4007_v24  ;;  %v2022_v27 = vpop.f32.mrf.mxu3  ;;  %vm3095_vm1 = vmor %vm3093_vm12, %vm3094_vm6 }
 0x20a   :  { %v2621_v7 = vsel %vm6678_vm9, %v2620_v42, %v2616_v22  ;;  %v1537_v49 = vsel %vm1536_vm13, %v4001_v55, %v1533_v57  ;;  %v1065_v52 = vmul.f32 %v4009_v50, %v6670_v47  ;;  %vm6734_vm7 = vcmp.eq.f32.partialorder %v1073_v14, 8.507059e+37  ;;  %v466_v57 = vpop.f32.mrf.mxu2 }
 0x20b   :  { %v4011_v54 = vpop.eup %4010  ;;  %v3288_v6 = vmul.f32 %v2621_v7, %v6575_v31  ;;  %v1542_v0 = vsel %vm6693_vm8, %v1541_v3, %v1537_v49  ;;  %v3091_v46 = vmul.f32 %v4005_v56, %v3090_v44  ;;  %vm2628_vm15 = vweird.f32 %v6683_v35 }
 0x20c   :  { %v1761_v41 = vmul.f32 %v1542_v0, %v6578_v63  ;;  %v1066_v17 = vsub.f32 1.0, %v1065_v52  ;;  %v2624_v32 = vmul.f32 %v4011_v54, %v6683_v35  ;;  %v2634_v62 = vand.u32 2147483648, %v6683_v35 }
 0x20d   :  { %3352 = vst.msk [vmem:[%s7763_s6 + $0xa0] sm:$0xff] %vm1773_vm4, %v3288_v6  ;;  %v3092_v31 = vadd.f32 %v4005_v56, %v3091_v46  ;;  %4012 = vrcp.f32 %v6722_v21  ;;  %vm1070_vm9 = vweird.f32 %v4009_v50  ;;  %v6754_v45 = vadd.f32 %v6379_v20, %v367_v5 }
 0x20e   :  { %1826 = vst.msk [vmem:[%s7762_s5 + $0x1a0] sm:$0xff] %vm1773_vm4, %v1761_v41  ;;  %v1067_v63 = vmul.f32 %v4009_v50, %v1066_v17  ;;  %v2625_v26 = vsub.f32 1.0, %v2624_v32  ;;  %v1076_v48 = vor.u32 1.1754944e-38, %v1075_v23  ;;  %vm6756_vm14 = vcmp.eq.f32.partialorder %v2632_v29, 8.507059e+37  ;;  %vm1071_vm8 = vmor %vm1069_vm10, %vm1070_vm9  ;;  %v373_v41 = vpop.f32.mrf.mxu0 }
 0x20f   :  { %v3096_v55 = vsel %vm3095_vm1, %v4005_v56, %v3092_v31  ;;  %4014 = vrcp.f32 %v6731_v33  ;;  %vm2629_vm3 = vweird.f32 %v4011_v54  ;;  %v2635_v15 = vor.u32 1.1754944e-38, %v2634_v62  ;;  %v1932_v31 = vpop.f32.mrf.mxu1 }
 0x210   :  { %v3101_v8 = vsel %vm6706_vm2, %v3100_v58, %v3096_v55  ;;  %v1068_v38 = vadd.f32 %v4009_v50, %v1067_v63  ;;  %v2626_v2 = vmul.f32 %v4011_v54, %v2625_v26  ;;  %v1553_v25 = vand.u32 2147483647, %v6722_v21  ;;  %vm2630_vm11 = vmor %vm2628_vm15, %vm2629_vm3 }
 0x211   :  { %v3320_v42 = vmul.f32 %v3101_v8, %v6581_v61  ;;  %v1555_v19 = vand.u32 2147483648, %v6722_v21  ;;  %vm1549_vm0 = vweird.f32 %v6722_v21  ;;  %v3490_v9 = vmul.f32 -1.442695, %v6754_v45  ;;  %v2025_v23 = vpop.f32.mrf.mxu3 }
 0x212   :  { %v1072_v16 = vsel %vm1071_vm8, %v4009_v50, %v1068_v38  ;;  %v2627_v13 = vadd.f32 %v4011_v54, %v2626_v2  ;;  %v6771_v3 = vadd.f32 %v6362_v28, %v1926_v34  ;;  %v3112_v1 = vand.u32 2147483647, %v6731_v33 }
 0x213   :  { %v4013_v61 = vpop.eup %4012  ;;  %3384 = vst.msk [vmem:[%s7763_s6 + $0x1a0] sm:$0xff] %vm1773_vm4, %v3320_v42  ;;  %v1077_v47 = vsel %vm6734_vm7, %v1076_v48, %v1072_v16  ;;  %v6784_v51 = vadd.f32 %v6379_v20, %v463_v43  ;;  %v6787_v56 = vadd.f32 %v6362_v28, %v2022_v27  ;;  %v3114_v18 = vand.u32 2147483648, %v6731_v33 }
 0x214   :  { %v1730_v11 = vmul.f32 %v1077_v47, %v6598_v12  ;;  %v2631_v53 = vsel %vm2630_vm11, %v4011_v54, %v2627_v13  ;;  %v1545_v39 = vmul.f32 %v4013_v61, %v6722_v21  ;;  %4016 = vpow2.f32 %v3490_v9 }
 0x215   :  { %v4015_v40 = vpop.eup %4014  ;;  %v2636_v35 = vsel %vm6756_vm14, %v2635_v15, %v2631_v53  ;;  %v3618_v5 = vmul.f32 -1.442695, %v6771_v3  ;;  %v3522_v24 = vmul.f32 -1.442695, %v6784_v51  ;;  %vm1550_vm12 = vweird.f32 %v4013_v61 }
 0x216   :  { %1795 = vst.msk [vmem:[%s7762_s5 + $0xa8] sm:$0xff] %vm1773_vm4, %v1730_v11  ;;  %v3289_v12 = vmul.f32 %v2636_v35, %v6615_v10  ;;  %v1546_v58 = vsub.f32 1.0, %v1545_v39  ;;  %v3104_v14 = vmul.f32 %v4015_v40, %v6731_v33  ;;  %v3650_v34 = vmul.f32 -1.442695, %v6787_v56  ;;  %vm1551_vm5 = vmor %vm1549_vm0, %vm1550_vm12 }
 0x217   :  { %4018 = vpow2.f32 %v3618_v5  ;;  %v6804_v50 = vadd.f32 %v6379_v20, %v370_v4  ;;  %v6807_v22 = vadd.f32 %v6362_v28, %v1929_v36  ;;  %v6814_v7 = vadd.f32 %v6379_v20, %v466_v57 }
 0x218   :  { %3353 = vst.msk [vmem:[%s7763_s6 + $0xa8] sm:$0xff] %vm1773_vm4, %v3289_v12  ;;  %v1547_v10 = vmul.f32 %v4013_v61, %v1546_v58  ;;  %v3105_v44 = vsub.f32 1.0, %v3104_v14  ;;  %4020 = vpow2.f32 %v3522_v24  ;;  %v6819_v29 = vadd.f32 %v6362_v28, %v2025_v23 }
 0x219   :  { %4022 = vpow2.f32 %v3650_v34  ;;  %v3491_v49 = vmul.f32 -1.442695, %v6804_v50  ;;  %v3619_v52 = vmul.f32 -1.442695, %v6807_v22  ;;  %vm3108_vm2 = vweird.f32 %v6731_v33 }
 0x21a   :  { %v1548_v54 = vadd.f32 %v4013_v61, %v1547_v10  ;;  %v3106_v6 = vmul.f32 %v4015_v40, %v3105_v44  ;;  %vm3109_vm10 = vweird.f32 %v4015_v40  ;;  %v4017_v0 = vpop.eup %4016  ;;  %vm1554_vm13 = vcmp.eq.f32.partialorder %v1553_v25, 8.507059e+37  ;;  %v469_v25 = vpop.f32.mrf.mxu2 }
 0x21b   :  { %v1556_v46 = vor.u32 1.1754944e-38, %v1555_v19  ;;  %4024 = vpow2.f32 %v3491_v49  ;;  %v3523_v43 = vmul.f32 -1.442695, %v6814_v7  ;;  %v6826_v32 = vadd.f32 1.0, %v4017_v0  ;;  %vm3110_vm6 = vmor %vm3108_vm2, %vm3109_vm10 }
 0x21c   :  { %v1552_v17 = vsel %vm1551_vm5, %v4013_v61, %v1548_v54  ;;  %v3107_v60 = vadd.f32 %v4015_v40, %v3106_v6  ;;  %v3651_v27 = vmul.f32 -1.442695, %v6819_v29  ;;  %vm3113_vm7 = vcmp.eq.f32.partialorder %v3112_v1, 8.507059e+37 }
 0x21d   :  { %v4019_v62 = vpop.eup %4018  ;;  %v1557_v63 = vsel %vm1554_vm13, %v1556_v46, %v1552_v17  ;;  %v3115_v21 = vor.u32 1.1754944e-38, %v3114_v18  ;;  %4026 = vpow2.f32 %v3619_v52  ;;  %v6835_v30 = vadd.f32 %v6379_v20, %v373_v41 }
 0x21e   :  { %v4021_v26 = vpop.eup %4020  ;;  %v1762_v55 = vmul.f32 %v1557_v63, %v6623_v59  ;;  %v3111_v48 = vsel %vm3110_vm6, %v4015_v40, %v3107_v60  ;;  %4028 = vrcp.f32 %v6826_v32  ;;  %v6837_v2 = vadd.f32 1.0, %v4019_v62 }
 0x21f   :  { %v4023_v8 = vpop.eup %4022  ;;  %v3116_v38 = vsel %vm3113_vm7, %v3115_v21, %v3111_v48  ;;  %4030 = vpow2.f32 %v3523_v43  ;;  %v6840_v33 = vadd.f32 %v6362_v28, %v1932_v31  ;;  %v6847_v42 = vadd.f32 1.0, %v4021_v26 }
 0x220   :  { %1827 = vst.msk [vmem:[%s7762_s5 + $0x1a8] sm:$0xff] %vm1773_vm4, %v1762_v55  ;;  %v3321_v59 = vmul.f32 %v3116_v38, %v6631_v37  ;;  %v6849_v15 = vadd.f32 1.0, %v4023_v8  ;;  %4032 = vpow2.f32 %v3651_v27  ;;  %v1088_v28 = vand.u32 2147483647, %v6826_v32 }
 0x221   :  { %v4025_v19 = vpop.eup %4024  ;;  %4034 = vrcp.f32 %v6837_v2  ;;  %v1090_v4 = vand.u32 2147483648, %v6826_v32  ;;  %v3492_v16 = vmul.f32 -1.442695, %v6835_v30  ;;  %v6862_v13 = vadd.f32 %v6379_v20, %v469_v25 }
 0x222   :  { %3385 = vst.msk [vmem:[%s7763_s6 + $0x1a8] sm:$0xff] %vm1773_vm4, %v3321_v59  ;;  %4036 = vrcp.f32 %v6847_v42  ;;  %vm1084_vm15 = vweird.f32 %v6826_v32  ;;  %v2647_v36 = vand.u32 2147483647, %v6837_v2  ;;  %v2649_v61 = vand.u32 2147483648, %v6837_v2 }
 0x223   :  { %v4027_v37 = vpop.eup %4026  ;;  %4038 = vrcp.f32 %v6849_v15  ;;  %v6868_v47 = vmul.f32 -1.442695, %v6840_v33  ;;  %v1568_v53 = vand.u32 2147483647, %v6847_v42  ;;  %v1570_v39 = vand.u32 2147483648, %v6847_v42 }
 0x224   :  { %v4029_v9 = vpop.eup %4028  ;;  %v3129_v20 = vand.u32 2147483648, %v6849_v15  ;;  %vm6874_vm1 = vcmp.eq.f32.partialorder %v1088_v28, 8.507059e+37  ;;  %v1091_v35 = vor.u32 1.1754944e-38, %v1090_v4  ;;  %v3127_v5 = vand.u32 2147483647, %v6849_v15 }
 0x225   :  { %v4031_v1 = vpop.eup %4030  ;;  %v1080_v11 = vmul.f32 %v4029_v9, %v6826_v32  ;;  %v6879_v24 = vadd.f32 1.0, %v4025_v19  ;;  %vm2643_vm9 = vweird.f32 %v6837_v2  ;;  %vm1564_vm14 = vweird.f32 %v6847_v42 }
 0x226   :  { %v4033_v18 = vpop.eup %4032  ;;  %v6883_v58 = vadd.f32 1.0, %v4027_v37  ;;  %vm1085_vm3 = vweird.f32 %v4029_v9  ;;  %vm6886_vm8 = vcmp.eq.f32.partialorder %v2647_v36, 8.507059e+37  ;;  %v2650_v10 = vor.u32 1.1754944e-38, %v2649_v61 }
 0x227   :  { %v4035_v57 = vpop.eup %4034  ;;  %v1081_v12 = vsub.f32 1.0, %v1080_v11  ;;  %vm3123_vm0 = vweird.f32 %v6849_v15  ;;  %4040 = vrcp.f32 %v6879_v24  ;;  %vm6893_vm11 = vcmp.eq.f32.partialorder %v1568_v53, 8.507059e+37  ;;  %vm1086_vm2 = vmor %vm1084_vm15, %vm1085_vm3 }
 0x228   :  { %v4037_v14 = vpop.eup %4036  ;;  %v2639_v23 = vmul.f32 %v4035_v57, %v6837_v2  ;;  %v1571_v6 = vor.u32 1.1754944e-38, %v1570_v39  ;;  %v3130_v0 = vor.u32 1.1754944e-38, %v3129_v20  ;;  %vm6898_vm12 = vcmp.eq.f32.partialorder %v3127_v5, 8.507059e+37 }
 0x229   :  { %v4039_v44 = vpop.eup %4038  ;;  %v1082_v49 = vmul.f32 %v4029_v9, %v1081_v12  ;;  %v1560_v52 = vmul.f32 %v4037_v14, %v6847_v42  ;;  %v6902_v17 = vadd.f32 1.0, %v4031_v1  ;;  %4042 = vpow2.f32 %v3492_v16 }
 0x22a   :  { %v2640_v46 = vsub.f32 1.0, %v2639_v23  ;;  %v3119_v43 = vmul.f32 %v4039_v44, %v6849_v15  ;;  %4044 = vrcp.f32 %v6883_v58  ;;  %v6905_v31 = vadd.f32 1.0, %v4033_v18  ;;  %v2028_v15 = vpop.f32.mrf.mxu3 }
 0x22b   :  { %v1083_v60 = vadd.f32 %v4029_v9, %v1082_v49  ;;  %v1561_v27 = vsub.f32 1.0, %v1560_v52  ;;  %vm2644_vm10 = vweird.f32 %v4035_v57  ;;  %vm1099_vm5 = vweird.f32 %v6879_v24 }
 0x22c   :  { %v2641_v62 = vmul.f32 %v4035_v57, %v2640_v46  ;;  %v3120_v63 = vsub.f32 1.0, %v3119_v43  ;;  %vm1565_vm13 = vweird.f32 %v4037_v14  ;;  %vm3124_vm6 = vweird.f32 %v4039_v44  ;;  %vm2645_vm7 = vmor %vm2643_vm9, %vm2644_vm10 }
 0x22d   :  { %v1087_v21 = vsel %vm1086_vm2, %v4029_v9, %v1083_v60  ;;  %v1562_v26 = vmul.f32 %v4037_v14, %v1561_v27  ;;  %v4041_v55 = vpop.eup %4040  ;;  %4046 = vrcp.f32 %v6902_v17  ;;  %v1103_v19 = vand.u32 2147483647, %v6879_v24  ;;  %vm1566_vm15 = vmor %vm1564_vm14, %vm1565_vm13 }
 0x22e   :  { %v1092_v48 = vsel %vm6874_vm1, %v1091_v35, %v1087_v21  ;;  %v2642_v8 = vadd.f32 %v4035_v57, %v2641_v62  ;;  %v3121_v38 = vmul.f32 %v4039_v44, %v3120_v63  ;;  %v1095_v25 = vmul.f32 %v4041_v55, %v6879_v24  ;;  %vm3125_vm1 = vmor %vm3123_vm0, %vm3124_vm6 }
 0x22f   :  { %v1731_v32 = vmul.f32 %v1092_v48, %v6754_v45  ;;  %v1563_v59 = vadd.f32 %v4037_v14, %v1562_v26  ;;  %v4043_v28 = vpop.eup %4042  ;;  %v1105_v16 = vand.u32 2147483648, %v6879_v24  ;;  %v2662_v9 = vand.u32 2147483647, %v6883_v58  ;;  %v376_v24 = vpop.f32.mrf.mxu0 }
 0x230   :  { %v2646_v4 = vsel %vm2645_vm7, %v4035_v57, %v2642_v8  ;;  %v3122_v37 = vadd.f32 %v4039_v44, %v3121_v38  ;;  %v4045_v36 = vpop.eup %4044  ;;  %v1096_v42 = vsub.f32 1.0, %v1095_v25  ;;  %v2664_v61 = vand.u32 2147483648, %v6883_v58  ;;  %v472_v48 = vpop.f32.mrf.mxu2 }
 0x231   :  { %1796 = vst.msk [vmem:[%s7762_s5 + $0xb0] sm:$0xff] %vm1773_vm4, %v1731_v32  ;;  %v2651_v45 = vsel %vm6886_vm8, %v2650_v10, %v2646_v4  ;;  %v1567_v2 = vsel %vm1566_vm15, %v4037_v14, %v1563_v59  ;;  %v2654_v39 = vmul.f32 %v4045_v36, %v6883_v58  ;;  %vm1100_vm9 = vweird.f32 %v4041_v55  ;;  %v7001_v32 = vld [vmem:[%s7761_s4] ss:$0 sm:$0xff] }
 0x232   :  { %v3290_v1 = vmul.f32 %v2651_v45, %v6771_v3  ;;  %v1572_v11 = vsel %vm6893_vm11, %v1571_v6, %v1567_v2  ;;  %v3126_v53 = vsel %vm3125_vm1, %v4039_v44, %v3122_v37  ;;  %v1097_v40 = vmul.f32 %v4041_v55, %v1096_v42  ;;  %vm1101_vm8 = vmor %vm1099_vm5, %vm1100_vm9  ;;  %v2031_v59 = vpop.f32.mrf.mxu3  ;;  %v7015_v4 = vld [vmem:[%s7760_s3] ss:$0 sm:$0xff] }
 0x233   :  { %v1763_v20 = vmul.f32 %v1572_v11, %v6784_v51  ;;  %v3131_v18 = vsel %vm6898_vm12, %v3130_v0, %v3126_v53  ;;  %v4047_v35 = vpop.eup %4046  ;;  %vm6945_vm14 = vcmp.eq.f32.partialorder %v1103_v19, 8.507059e+37  ;;  %v1106_v57 = vor.u32 1.1754944e-38, %v1105_v16 }
 0x234   :  { %3354 = vst.msk [vmem:[%s7763_s6 + $0xb0] sm:$0xff] %vm1773_vm4, %v3290_v1  ;;  %v3322_v3 = vmul.f32 %v3131_v18, %v6787_v56  ;;  %v2655_v51 = vsub.f32 1.0, %v2654_v39  ;;  %v1098_v12 = vadd.f32 %v4041_v55, %v1097_v40  ;;  %vm2658_vm3 = vweird.f32 %v6883_v58 }
 0x235   :  { %1828 = vst.msk [vmem:[%s7762_s5 + $0x1b0] sm:$0xff] %vm1773_vm4, %v1763_v20  ;;  %v1575_v14 = vmul.f32 %v4047_v35, %v6902_v17  ;;  %4048 = vrcp.f32 %v6905_v31  ;;  %vm2659_vm0 = vweird.f32 %v4045_v36  ;;  %vm6962_vm11 = vcmp.eq.f32.partialorder %v2662_v9, 8.507059e+37 }
 0x236   :  { %3386 = vst.msk [vmem:[%s7763_s6 + $0x1b0] sm:$0xff] %vm1773_vm4, %v3322_v3  ;;  %v2656_v56 = vmul.f32 %v4045_v36, %v2655_v51  ;;  %v1583_v34 = vand.u32 2147483647, %v6902_v17  ;;  %v1102_v10 = vsel %vm1101_vm8, %v4041_v55, %v1098_v12  ;;  %v2665_v44 = vor.u32 1.1754944e-38, %v2664_v61  ;;  %vm2660_vm12 = vmor %vm2658_vm3, %vm2659_vm0 }
 0x237   :  { %v1576_v49 = vsub.f32 1.0, %v1575_v14  ;;  %v1585_v52 = vand.u32 2147483648, %v6902_v17  ;;  %v1107_v54 = vsel %vm6945_vm14, %v1106_v57, %v1102_v10  ;;  %v6970_v0 = vadd.f32 1.0, %v4043_v28  ;;  %v379_v40 = vpop.f32.mrf.mxu0 }
 0x238   :  { %v2657_v6 = vadd.f32 %v4045_v36, %v2656_v56  ;;  %4050 = vpow2.f32 %v6868_v47  ;;  %v1732_v46 = vmul.f32 %v1107_v54, %v6804_v50  ;;  %vm1580_vm2 = vweird.f32 %v4047_v35 }
 0x239   :  { %v1577_v43 = vmul.f32 %v4047_v35, %v1576_v49  ;;  %v3142_v41 = vand.u32 2147483647, %v6905_v31  ;;  %vm1579_vm10 = vweird.f32 %v6902_v17  ;;  %vm6978_vm5 = vcmp.eq.f32.partialorder %v1583_v34, 8.507059e+37  ;;  %v1935_v17 = vpop.f32.mrf.mxu1 }
 0x23a   :  { %v2661_v60 = vsel %vm2660_vm12, %v4045_v36, %v2657_v6  ;;  %4052 = vrcp.f32 %v6970_v0  ;;  %1797 = vst.msk [vmem:[%s7762_s5 + $0xb8] sm:$0xff] %vm1773_vm4, %v1732_v46  ;;  %v1586_v62 = vor.u32 1.1754944e-38, %v1585_v52  ;;  %v3524_v63 = vmul.f32 -1.442695, %v6862_v13  ;;  %vm1581_vm13 = vmor %vm1579_vm10, %vm1580_vm2 }
 0x23b   :  { %v4049_v47 = vpop.eup %4048  ;;  %v2666_v50 = vsel %vm6962_vm11, %v2665_v44, %v2661_v60  ;;  %v1578_v58 = vadd.f32 %v4047_v35, %v1577_v43  ;;  %vm3138_vm6 = vweird.f32 %v6905_v31  ;;  %v3144_v55 = vand.u32 2147483648, %v6905_v31 }
 0x23c   :  { %v3291_v21 = vmul.f32 %v2666_v50, %v6807_v22  ;;  %v3134_v26 = vmul.f32 %v4049_v47, %v6905_v31  ;;  %vm6994_vm7 = vcmp.eq.f32.partialorder %v3142_v41, 8.507059e+37  ;;  %4054 = vpow2.f32 %v3524_v63 }
 0x23d   :  { %v1582_v8 = vsel %vm1581_vm13, %v4047_v35, %v1578_v58  ;;  %v7004_v22 = vadd.f32 %v7001_v32, %v2028_v15  ;;  %v7018_v37 = vadd.f32 %v7015_v4, %v376_v24  ;;  %v7021_v16 = vadd.f32 %v7001_v32, %v1935_v17 }
 0x23e   :  { %v4051_v25 = vpop.eup %4050  ;;  %3355 = vst.msk [vmem:[%s7763_s6 + $0xb8] sm:$0xff] %vm1773_vm4, %v3291_v21  ;;  %v1587_v19 = vsel %vm6978_vm5, %v1586_v62, %v1582_v8  ;;  %v3135_v28 = vsub.f32 1.0, %v3134_v26  ;;  %v7028_v2 = vadd.f32 %v7015_v4, %v472_v48  ;;  %vm3139_vm15 = vweird.f32 %v4049_v47 }
 0x23f   :  { %v1764_v9 = vmul.f32 %v1587_v19, %v6814_v7  ;;  %v7024_v36 = vadd.f32 1.0, %v4051_v25  ;;  %v3652_v45 = vmul.f32 -1.442695, %v7004_v22  ;;  %v3493_v1 = vmul.f32 -1.442695, %v7018_v37  ;;  %vm3140_vm9 = vmor %vm3138_vm6, %vm3139_vm15 }
 0x240   :  { %v4053_v42 = vpop.eup %4052  ;;  %v3136_v61 = vmul.f32 %v4049_v47, %v3135_v28  ;;  %v7032_v11 = vadd.f32 %v7001_v32, %v2031_v59  ;;  %v3145_v7 = vor.u32 1.1754944e-38, %v3144_v55  ;;  %v3621_v39 = vmul.f32 -1.442695, %v7021_v16 }
 0x241   :  { %1829 = vst.msk [vmem:[%s7762_s5 + $0x1b8] sm:$0xff] %vm1773_vm4, %v1764_v9  ;;  %v1110_v53 = vmul.f32 %v4053_v42, %v6970_v0  ;;  %4056 = vrcp.f32 %v7024_v36  ;;  %vm1114_vm1 = vweird.f32 %v6970_v0  ;;  %v1118_v18 = vand.u32 2147483647, %v6970_v0  ;;  %v1938_v55 = vpop.f32.mrf.mxu1 }
 0x242   :  { %v3137_v20 = vadd.f32 %v4049_v47, %v3136_v61  ;;  %4058 = vpow2.f32 %v3652_v45  ;;  %v4055_v15 = vpop.eup %4054  ;;  %v1120_v3 = vand.u32 2147483648, %v6970_v0  ;;  %v3525_v5 = vmul.f32 -1.442695, %v7028_v2 }
 0x243   :  { %v1111_v35 = vsub.f32 1.0, %v1110_v53  ;;  %4060 = vpow2.f32 %v3493_v1  ;;  %vm1115_vm14 = vweird.f32 %v4053_v42  ;;  %v7047_v51 = vadd.f32 1.0, %v4055_v15 }
 0x244   :  { %v3141_v57 = vsel %vm3140_vm9, %v4049_v47, %v3137_v20  ;;  %v3653_v12 = vmul.f32 -1.442695, %v7032_v11  ;;  %4062 = vpow2.f32 %v3621_v39  ;;  %v7053_v31 = vadd.f32 %v7015_v4, %v379_v40  ;;  %vm1116_vm8 = vmor %vm1114_vm1, %vm1115_vm14 }
 0x245   :  { %v3146_v14 = vsel %vm6994_vm7, %v3145_v7, %v3141_v57  ;;  %v1112_v56 = vmul.f32 %v4053_v42, %v1111_v35  ;;  %vm7056_vm3 = vcmp.eq.f32.partialorder %v1118_v18, 8.507059e+37  ;;  %4064 = vrcp.f32 %v7047_v51 }
 0x246   :  { %v3323_v23 = vmul.f32 %v3146_v14, %v6819_v29  ;;  %v2677_v49 = vand.u32 2147483647, %v7024_v36  ;;  %v2679_v52 = vand.u32 2147483648, %v7024_v36  ;;  %4066 = vpow2.f32 %v3525_v5 }
 0x247   :  { %v4057_v10 = vpop.eup %4056  ;;  %v1113_v44 = vadd.f32 %v4053_v42, %v1112_v56  ;;  %v1121_v29 = vor.u32 1.1754944e-38, %v1120_v3  ;;  %v1598_v24 = vand.u32 2147483647, %v7047_v51  ;;  %4068 = vpow2.f32 %v3653_v12 }
 0x248   :  { %v4059_v54 = vpop.eup %4058  ;;  %3387 = vst.msk [vmem:[%s7763_s6 + $0x1b8] sm:$0xff] %vm1773_vm4, %v3323_v23  ;;  %v2669_v6 = vmul.f32 %v4057_v10, %v7024_v36  ;;  %v1600_v41 = vand.u32 2147483648, %v7047_v51  ;;  %v3494_v27 = vmul.f32 -1.442695, %v7053_v31  ;;  %vm2673_vm0 = vweird.f32 %v7024_v36 }
 0x249   :  { %v4061_v46 = vpop.eup %4060  ;;  %v1117_v43 = vsel %vm1116_vm8, %v4053_v42, %v1113_v44  ;;  %v7073_v60 = vadd.f32 1.0, %v4059_v54  ;;  %vm7082_vm11 = vcmp.eq.f32.partialorder %v2677_v49, 8.507059e+37  ;;  %v2680_v17 = vor.u32 1.1754944e-38, %v2679_v52  ;;  %v475_v54 = vpop.f32.mrf.mxu2 }
 0x24a   :  { %v1122_v47 = vsel %vm7056_vm3, %v1121_v29, %v1117_v43  ;;  %v2670_v50 = vsub.f32 1.0, %v2669_v6  ;;  %v7079_v0 = vadd.f32 1.0, %v4061_v46  ;;  %v4063_v58 = vpop.eup %4062  ;;  %vm2674_vm12 = vweird.f32 %v4057_v10 }
 0x24b   :  { %v1733_v62 = vmul.f32 %v1122_v47, %v6835_v30  ;;  %4070 = vrcp.f32 %v7073_v60  ;;  %v4065_v21 = vpop.eup %4064  ;;  %vm1594_vm2 = vweird.f32 %v7047_v51  ;;  %vm7094_vm10 = vcmp.eq.f32.partialorder %v1598_v24, 8.507059e+37  ;;  %vm2675_vm5 = vmor %vm2673_vm0, %vm2674_vm12 }
 0x24c   :  { %v2671_v26 = vmul.f32 %v4057_v10, %v2670_v50  ;;  %4072 = vrcp.f32 %v7079_v0  ;;  %v4067_v48 = vpop.eup %4066  ;;  %v1590_v30 = vmul.f32 %v4065_v21, %v7047_v51  ;;  %v1601_v38 = vor.u32 1.1754944e-38, %v1600_v41  ;;  %v2034_v51 = vpop.f32.mrf.mxu3 }
 0x24d   :  { %1798 = vst.msk [vmem:[%s7762_s5 + $0xc0] sm:$0xff] %vm1773_vm4, %v1733_v62  ;;  %4074 = vpow2.f32 %v3494_v27  ;;  %v4069_v59 = vpop.eup %4068  ;;  %v3157_v19 = vand.u32 2147483647, %v7073_v60  ;;  %v3159_v28 = vand.u32 2147483648, %v7073_v60  ;;  %v7100_v9 = vadd.f32 1.0, %v4063_v58 }
 0x24e   :  { %v2672_v25 = vadd.f32 %v4057_v10, %v2671_v26  ;;  %v1591_v45 = vsub.f32 1.0, %v1590_v30  ;;  %v1133_v42 = vand.u32 2147483647, %v7079_v0  ;;  %v7106_v61 = vadd.f32 1.0, %v4067_v48  ;;  %v382_v30 = vpop.f32.mrf.mxu0 }
 0x24f   :  { %v7109_v1 = vadd.f32 %v7001_v32, %v1938_v55  ;;  %vm3153_vm13 = vweird.f32 %v7073_v60  ;;  %vm1129_vm6 = vweird.f32 %v7079_v0  ;;  %v1135_v53 = vand.u32 2147483648, %v7079_v0 }
 0x250   :  { %v2676_v7 = vsel %vm2675_vm5, %v4057_v10, %v2672_v25  ;;  %4076 = vrcp.f32 %v7100_v9  ;;  %v1592_v20 = vmul.f32 %v4065_v21, %v1591_v45  ;;  %vm1595_vm7 = vweird.f32 %v4065_v21 }
 0x251   :  { %v4071_v39 = vpop.eup %4070  ;;  %v2681_v36 = vsel %vm7082_vm11, %v2680_v17, %v2676_v7  ;;  %v7117_v18 = vadd.f32 1.0, %v4069_v59  ;;  %vm7121_vm15 = vcmp.eq.f32.partialorder %v3157_v19, 8.507059e+37  ;;  %v3160_v5 = vor.u32 1.1754944e-38, %v3159_v28  ;;  %vm1596_vm9 = vmor %vm1594_vm2, %vm1595_vm7  ;;  %v1941_v28 = vpop.f32.mrf.mxu1 }
 0x252   :  { %v4073_v40 = vpop.eup %4072  ;;  %v3292_v15 = vmul.f32 %v2681_v36, %v6840_v33  ;;  %v3149_v35 = vmul.f32 %v4071_v39, %v7073_v60  ;;  %4078 = vrcp.f32 %v7106_v61  ;;  %v1593_v12 = vadd.f32 %v4065_v21, %v1592_v20 }
 0x253   :  { %v4075_v57 = vpop.eup %4074  ;;  %v1125_v14 = vmul.f32 %v4073_v40, %v7079_v0  ;;  %vm7127_vm1 = vcmp.eq.f32.partialorder %v1133_v42, 8.507059e+37  ;;  %v2692_v23 = vand.u32 2147483647, %v7100_v9  ;;  %v1136_v34 = vor.u32 1.1754944e-38, %v1135_v53 }
 0x254   :  { %3356 = vst.msk [vmem:[%s7763_s6 + $0xc0] sm:$0xff] %vm1773_vm4, %v3292_v15  ;;  %v3150_v33 = vsub.f32 1.0, %v3149_v35  ;;  %vm2688_vm14 = vweird.f32 %v7100_v9  ;;  %v2694_v10 = vand.u32 2147483648, %v7100_v9  ;;  %v1597_v44 = vsel %vm1596_vm9, %v4065_v21, %v1593_v12  ;;  %v2037_v12 = vpop.f32.mrf.mxu3 }
 0x255   :  { %v1126_v49 = vsub.f32 1.0, %v1125_v14  ;;  %v1613_v52 = vand.u32 2147483647, %v7106_v61  ;;  %4080 = vrcp.f32 %v7117_v18  ;;  %v1602_v6 = vsel %vm7094_vm10, %v1601_v38, %v1597_v44 }
 0x256   :  { %v4077_v29 = vpop.eup %4076  ;;  %v3151_v24 = vmul.f32 %v4071_v39, %v3150_v33  ;;  %vm3154_vm3 = vweird.f32 %v4071_v39  ;;  %vm1130_vm8 = vweird.f32 %v4073_v40  ;;  %v1765_v46 = vmul.f32 %v1602_v6, %v6862_v13 }
 0x257   :  { %v1127_v43 = vmul.f32 %v4073_v40, %v1126_v49  ;;  %v2684_v41 = vmul.f32 %v4077_v29, %v7100_v9  ;;  %vm7146_vm0 = vcmp.eq.f32.partialorder %v2692_v23, 8.507059e+37  ;;  %v2695_v58 = vor.u32 1.1754944e-38, %v2694_v10  ;;  %vm3155_vm12 = vmor %vm3153_vm13, %vm3154_vm3  ;;  %v478_v9 = vpop.f32.mrf.mxu2 }
 0x258   :  { %v4079_v47 = vpop.eup %4078  ;;  %v3152_v50 = vadd.f32 %v4071_v39, %v3151_v24  ;;  %vm1609_vm11 = vweird.f32 %v7106_v61  ;;  %v1615_v62 = vand.u32 2147483648, %v7106_v61  ;;  %1830 = vst.msk [vmem:[%s7762_s5 + $0x1c0] sm:$0xff] %vm1773_vm4, %v1765_v46  ;;  %vm2689_vm2 = vweird.f32 %v4077_v29  ;;  %vm1131_vm5 = vmor %vm1129_vm6, %vm1130_vm8 }
 0x259   :  { %v1128_v13 = vadd.f32 %v4073_v40, %v1127_v43  ;;  %v2685_v63 = vsub.f32 1.0, %v2684_v41  ;;  %v1605_v17 = vmul.f32 %v4079_v47, %v7106_v61  ;;  %vm7159_vm10 = vcmp.eq.f32.partialorder %v1613_v52, 8.507059e+37  ;;  %vm2690_vm6 = vmor %vm2688_vm14, %vm2689_vm2  ;;  %v1944_v41 = vpop.f32.mrf.mxu1 }
 0x25a   :  { %v3156_v26 = vsel %vm3155_vm12, %v4071_v39, %v3152_v50  ;;  %vm3168_vm7 = vweird.f32 %v7117_v18  ;;  %v3172_v55 = vand.u32 2147483647, %v7117_v18  ;;  %v3174_v60 = vand.u32 2147483648, %v7117_v18 }
 0x25b   :  { %v7169_v48 = vadd.f32 1.0, %v4075_v57  ;;  %v4081_v8 = vpop.eup %4080  ;;  %v3161_v38 = vsel %vm7121_vm15, %v3160_v5, %v3156_v26  ;;  %v1132_v59 = vsel %vm1131_vm5, %v4073_v40, %v1128_v13  ;;  %v2686_v25 = vmul.f32 %v4077_v29, %v2685_v63 }
 0x25c   :  { %v1606_v19 = vsub.f32 1.0, %v1605_v17  ;;  %v3324_v0 = vmul.f32 %v3161_v38, %v7004_v22  ;;  %v1137_v45 = vsel %vm7127_vm1, %v1136_v34, %v1132_v59  ;;  %vm1610_vm13 = vweird.f32 %v4079_v47 }
 0x25d   :  { %v3164_v42 = vmul.f32 %v4081_v8, %v7117_v18  ;;  %v1734_v7 = vmul.f32 %v1137_v45, %v7018_v37  ;;  %v2687_v53 = vadd.f32 %v4077_v29, %v2686_v25  ;;  %4082 = vrcp.f32 %v7169_v48  ;;  %vm1611_vm1 = vmor %vm1609_vm11, %vm1610_vm13 }
 0x25e   :  { %v1607_v39 = vmul.f32 %v4079_v47, %v1606_v19  ;;  %3388 = vst.msk [vmem:[%s7763_s6 + $0x1c0] sm:$0xff] %vm1773_vm4, %v3324_v0  ;;  %v1616_v22 = vor.u32 1.1754944e-38, %v1615_v62  ;;  %vm7186_vm15 = vcmp.eq.f32.partialorder %v3172_v55, 8.507059e+37  ;;  %v3175_v37 = vor.u32 1.1754944e-38, %v3174_v60 }
 0x25f   :  { %v3165_v36 = vsub.f32 1.0, %v3164_v42  ;;  %1799 = vst.msk [vmem:[%s7762_s5 + $0xc8] sm:$0xff] %vm1773_vm4, %v1734_v7  ;;  %v2691_v40 = vsel %vm2690_vm6, %v4077_v29, %v2687_v53  ;;  %v3622_v35 = vmul.f32 -1.442695, %v7109_v1  ;;  %v7196_v3 = vadd.f32 %v7015_v4, %v475_v54  ;;  %v481_v26 = vpop.f32.mrf.mxu2 }
 0x260   :  { %v1608_v15 = vadd.f32 %v4079_v47, %v1607_v39  ;;  %v2696_v5 = vsel %vm7146_vm0, %v2695_v58, %v2691_v40  ;;  %vm3169_vm9 = vweird.f32 %v4081_v8  ;;  %vm1144_vm14 = vweird.f32 %v7169_v48 }
 0x261   :  { %v3166_v57 = vmul.f32 %v4081_v8, %v3165_v36  ;;  %v3293_v14 = vmul.f32 %v2696_v5, %v7021_v16  ;;  %4084 = vpow2.f32 %v3622_v35  ;;  %v3526_v23 = vmul.f32 -1.442695, %v7196_v3  ;;  %vm3170_vm3 = vmor %vm3168_vm7, %vm3169_vm9 }
 0x262   :  { %v1612_v56 = vsel %vm1611_vm1, %v4079_v47, %v1608_v15  ;;  %v7209_v10 = vadd.f32 %v7001_v32, %v2034_v51  ;;  %v7212_v61 = vadd.f32 %v7015_v4, %v382_v30  ;;  %v7222_v49 = vadd.f32 %v7001_v32, %v1941_v28  ;;  %v385_v51 = vpop.f32.mrf.mxu0  ;;  %v2040_v30 = vpop.f32.mrf.mxu3 }
 0x263   :  { %v1617_v33 = vsel %vm7159_vm10, %v1616_v22, %v1612_v56  ;;  %v3167_v34 = vadd.f32 %v4081_v8, %v3166_v57  ;;  %v4083_v44 = vpop.eup %4082  ;;  %3357 = vst.msk [vmem:[%s7763_s6 + $0xc8] sm:$0xff] %vm1773_vm4, %v3293_v14  ;;  %4086 = vpow2.f32 %v3526_v23  ;;  %v7225_v52 = vadd.f32 %v7015_v4, %v478_v9 }
 0x264   :  { %v1766_v16 = vmul.f32 %v1617_v33, %v7028_v2  ;;  %v1140_v29 = vmul.f32 %v4083_v44, %v7169_v48  ;;  %v1148_v6 = vand.u32 2147483647, %v7169_v48  ;;  %v3654_v24 = vmul.f32 -1.442695, %v7209_v10 }
 0x265   :  { %v3171_v54 = vsel %vm3170_vm3, %v4081_v8, %v3167_v34  ;;  %v1150_v18 = vand.u32 2147483648, %v7169_v48  ;;  %v3495_v46 = vmul.f32 -1.442695, %v7212_v61  ;;  %v3623_v43 = vmul.f32 -1.442695, %v7222_v49 }
 0x266   :  { %1831 = vst.msk [vmem:[%s7762_s5 + $0x1c8] sm:$0xff] %vm1773_vm4, %v1766_v16  ;;  %v3176_v2 = vsel %vm7186_vm15, %v3175_v37, %v3171_v54  ;;  %v1141_v47 = vsub.f32 1.0, %v1140_v29  ;;  %4088 = vpow2.f32 %v3654_v24  ;;  %v7241_v50 = vadd.f32 %v7001_v32, %v2037_v12 }
 0x267   :  { %v3325_v27 = vmul.f32 %v3176_v2, %v7032_v11  ;;  %v4085_v58 = vpop.eup %4084  ;;  %vm1145_vm8 = vweird.f32 %v4083_v44  ;;  %4090 = vpow2.f32 %v3495_v46  ;;  %v3527_v62 = vmul.f32 -1.442695, %v7225_v52 }
 0x268   :  { %v7245_v13 = vadd.f32 %v7015_v4, %v385_v51  ;;  %v1142_v63 = vmul.f32 %v4083_v44, %v1141_v47  ;;  %v7251_v11 = vadd.f32 1.0, %v4085_v58  ;;  %4092 = vpow2.f32 %v3623_v43  ;;  %vm1146_vm0 = vmor %vm1144_vm14, %vm1145_vm8 }
 0x269   :  { %3389 = vst.msk [vmem:[%s7763_s6 + $0x1c8] sm:$0xff] %vm1773_vm4, %v3325_v27  ;;  %v7254_v17 = vadd.f32 %v7001_v32, %v1944_v41  ;;  %v4087_v21 = vpop.eup %4086  ;;  %v3655_v60 = vmul.f32 -1.442695, %v7241_v50  ;;  %vm1149_vm11 = vcmp.eq.f32.partialorder %v1148_v6, 8.507059e+37  ;;  %v1151_v8 = vor.u32 1.1754944e-38, %v1150_v18 }
 0x26a   :  { %v1143_v55 = vadd.f32 %v4083_v44, %v1142_v63  ;;  %4094 = vrcp.f32 %v7251_v11  ;;  %v7261_v38 = vadd.f32 1.0, %v4087_v21  ;;  %v3496_v59 = vmul.f32 -1.442695, %v7245_v13  ;;  %v388_v12 = vpop.f32.mrf.mxu0 }
 0x26b   :  { %4096 = vpow2.f32 %v3527_v62  ;;  %v3624_v28 = vmul.f32 -1.442695, %v7254_v17  ;;  %v7266_v0 = vadd.f32 %v7015_v4, %v481_v26  ;;  %v2707_v7 = vand.u32 2147483647, %v7251_v11 }
 0x26c   :  { %v4089_v25 = vpop.eup %4088  ;;  %v1147_v19 = vsel %vm1146_vm0, %v4083_v44, %v1143_v55  ;;  %4098 = vrcp.f32 %v7261_v38  ;;  %v7271_v48 = vadd.f32 %v7001_v32, %v2040_v30  ;;  %v2709_v22 = vand.u32 2147483648, %v7251_v11 }
 0x26d   :  { %v4091_v45 = vpop.eup %4090  ;;  %v1152_v42 = vsel %vm1149_vm11, %v1151_v8, %v1147_v19  ;;  %v7275_v36 = vadd.f32 1.0, %v4089_v25  ;;  %4100 = vpow2.f32 %v3655_v60  ;;  %vm2703_vm12 = vweird.f32 %v7251_v11 }
 0x26e   :  { %v4093_v53 = vpop.eup %4092  ;;  %v1735_v39 = vmul.f32 %v1152_v42, %v7053_v31  ;;  %v7278_v20 = vadd.f32 1.0, %v4091_v45  ;;  %4102 = vpow2.f32 %v3496_v59  ;;  %v1628_v31 = vand.u32 2147483647, %v7261_v38 }
 0x26f   :  { %v7280_v37 = vadd.f32 1.0, %v4093_v53  ;;  %v1630_v15 = vand.u32 2147483648, %v7261_v38  ;;  %4104 = vrcp.f32 %v7275_v36  ;;  %v7290_v35 = vmul.f32 -1.442695, %v7266_v0 }
 0x270   :  { %v4095_v40 = vpop.eup %4094  ;;  %1800 = vst.msk [vmem:[%s7762_s5 + $0xd0] sm:$0xff] %vm1773_vm4, %v1735_v39  ;;  %vm7293_vm2 = vcmp.eq.f32.partialorder %v2707_v7, 8.507059e+37  ;;  %4106 = vpow2.f32 %v3624_v28  ;;  %v7298_v57 = vmul.f32 -1.442695, %v7271_v48  ;;  %v2710_v56 = vor.u32 1.1754944e-38, %v2709_v22  ;;  %v484_v28 = vpop.f32.mrf.mxu2 }
 0x271   :  { %v2699_v9 = vmul.f32 %v4095_v40, %v7251_v11  ;;  %v4097_v14 = vpop.eup %4096  ;;  %vm1624_vm10 = vweird.f32 %v7261_v38  ;;  %v3189_v23 = vand.u32 2147483648, %v7275_v36  ;;  %4108 = vrcp.f32 %v7278_v20 }
 0x272   :  { %v4099_v33 = vpop.eup %4098  ;;  %v3187_v44 = vand.u32 2147483647, %v7275_v36  ;;  %v1165_v16 = vand.u32 2147483648, %v7278_v20  ;;  %4110 = vrcp.f32 %v7280_v37  ;;  %vm7307_vm5 = vcmp.eq.f32.partialorder %v1628_v31, 8.507059e+37 }
 0x273   :  { %v2700_v34 = vsub.f32 1.0, %v2699_v9  ;;  %v4101_v54 = vpop.eup %4100  ;;  %v1620_v29 = vmul.f32 %v4099_v33, %v7261_v38  ;;  %v1631_v24 = vor.u32 1.1754944e-38, %v1630_v15  ;;  %v7312_v51 = vadd.f32 %v7015_v4, %v388_v12 }
 0x274   :  { %v4103_v2 = vpop.eup %4102  ;;  %vm2704_vm7 = vweird.f32 %v4095_v40  ;;  %vm3183_vm13 = vweird.f32 %v7275_v36  ;;  %v1163_v46 = vand.u32 2147483647, %v7278_v20  ;;  %v3190_v27 = vor.u32 1.1754944e-38, %v3189_v23 }
 0x275   :  { %v2701_v18 = vmul.f32 %v4095_v40, %v2700_v34  ;;  %v4105_v43 = vpop.eup %4104  ;;  %v1621_v41 = vsub.f32 1.0, %v1620_v29  ;;  %vm1159_vm6 = vweird.f32 %v7278_v20  ;;  %v7317_v47 = vadd.f32 1.0, %v4097_v14  ;;  %vm2705_vm9 = vmor %vm2703_vm12, %vm2704_vm7 }
 0x276   :  { %v7319_v58 = vpop.eup %4106  ;;  %vm1625_vm15 = vweird.f32 %v4099_v33  ;;  %v3179_v63 = vmul.f32 %v4105_v43, %v7275_v36  ;;  %vm7322_vm1 = vcmp.eq.f32.partialorder %v3187_v44, 8.507059e+37  ;;  %v1166_v26 = vor.u32 1.1754944e-38, %v1165_v16 }
 0x277   :  { %v2702_v62 = vadd.f32 %v4095_v40, %v2701_v18  ;;  %v4109_v55 = vpop.eup %4108  ;;  %v1622_v60 = vmul.f32 %v4099_v33, %v1621_v41  ;;  %vm2718_vm14 = vweird.f32 %v7280_v37  ;;  %4112 = vrcp.f32 %v7317_v47  ;;  %vm1626_vm8 = vmor %vm1624_vm10, %vm1625_vm15 }
 0x278   :  { %v7331_v30 = vadd.f32 1.0, %v4101_v54  ;;  %v4111_v8 = vpop.eup %4110  ;;  %v3180_v25 = vsub.f32 1.0, %v3179_v63  ;;  %v1155_v19 = vmul.f32 %v4109_v55, %v7278_v20  ;;  %vm7334_vm3 = vcmp.eq.f32.partialorder %v1163_v46, 8.507059e+37 }
 0x279   :  { %v2706_v59 = vsel %vm2705_vm9, %v4095_v40, %v2702_v62  ;;  %v2722_v45 = vand.u32 2147483647, %v7280_v37  ;;  %v1623_v42 = vadd.f32 %v4099_v33, %v1622_v60  ;;  %v2714_v7 = vmul.f32 %v4111_v8, %v7280_v37 }
 0x27a   :  { %v2711_v11 = vsel %vm7293_vm2, %v2710_v56, %v2706_v59  ;;  %v2724_v53 = vand.u32 2147483648, %v7280_v37  ;;  %v3181_v22 = vmul.f32 %v4105_v43, %v3180_v25  ;;  %vm3184_vm0 = vweird.f32 %v4105_v43 }
 0x27b   :  { %v3294_v39 = vmul.f32 %v2711_v11, %v7109_v1  ;;  %v1156_v40 = vsub.f32 1.0, %v1155_v19  ;;  %v1627_v31 = vsel %vm1626_vm8, %v4099_v33, %v1623_v42  ;;  %v2715_v15 = vsub.f32 1.0, %v2714_v7  ;;  %vm3185_vm12 = vmor %vm3183_vm13, %vm3184_vm0 }
 0x27c   :  { %4114 = vrcp.f32 %v7331_v30  ;;  %v7348_v9 = vadd.f32 1.0, %v4103_v2  ;;  %v1632_v1 = vsel %vm7307_vm5, %v1631_v24, %v1627_v31  ;;  %v3182_v5 = vadd.f32 %v4105_v43, %v3181_v22 }
 0x27d   :  { %3358 = vst.msk [vmem:[%s7763_s6 + $0xd0] sm:$0xff] %vm1773_vm4, %v3294_v39  ;;  %v1157_v38 = vmul.f32 %v4109_v55, %v1156_v40  ;;  %vm1160_vm11 = vweird.f32 %v4109_v55  ;;  %v4113_v12 = vpop.eup %4112  ;;  %v1767_v14 = vmul.f32 %v1632_v1, %v7196_v3  ;;  %v2716_v56 = vmul.f32 %v4111_v8, %v2715_v15  ;;  %v2043_v15 = vpop.f32.mrf.mxu3 }
 0x27e   :  { %vm2719_vm2 = vweird.f32 %v4111_v8  ;;  %vm7359_vm10 = vcmp.eq.f32.partialorder %v2722_v45, 8.507059e+37  ;;  %v3186_v33 = vsel %vm3185_vm12, %v4105_v43, %v3182_v5  ;;  %v2725_v44 = vor.u32 1.1754944e-38, %v2724_v53  ;;  %vm1161_vm5 = vmor %vm1159_vm6, %vm1160_vm11 }
 0x27f   :  { %v1158_v34 = vadd.f32 %v4109_v55, %v1157_v38  ;;  %v1635_v16 = vmul.f32 %v4113_v12, %v7317_v47  ;;  %1832 = vst.msk [vmem:[%s7762_s5 + $0x1d0] sm:$0xff] %vm1773_vm4, %v1767_v14  ;;  %v3191_v3 = vsel %vm7322_vm1, %v3190_v27, %v3186_v33  ;;  %v2717_v36 = vadd.f32 %v4111_v8, %v2716_v56  ;;  %vm2720_vm7 = vmor %vm2718_vm14, %vm2719_vm2  ;;  %v1947_v27 = vpop.f32.mrf.mxu1  ;;  %v391_v38 = vpop.f32.mrf.mxu0 }
 0x280   :  { %v1643_v54 = vand.u32 2147483647, %v7317_v47  ;;  %v1645_v29 = vand.u32 2147483648, %v7317_v47  ;;  %v3326_v6 = vmul.f32 %v3191_v3, %v7209_v10  ;;  %4116 = vrcp.f32 %v7348_v9 }
 0x281   :  { %v1162_v24 = vsel %vm1161_vm5, %v4109_v55, %v1158_v34  ;;  %v1636_v2 = vsub.f32 1.0, %v1635_v16  ;;  %v2721_v20 = vsel %vm2720_vm7, %v4111_v8, %v2717_v36  ;;  %vm1639_vm13 = vweird.f32 %v7317_v47 }
 0x282   :  { %v4115_v18 = vpop.eup %4114  ;;  %v1167_v46 = vsel %vm7334_vm3, %v1166_v26, %v1162_v24  ;;  %vm1640_vm6 = vweird.f32 %v4113_v12  ;;  %3390 = vst.msk [vmem:[%s7763_s6 + $0x1d0] sm:$0xff] %vm1773_vm4, %v3326_v6  ;;  %v2726_v37 = vsel %vm7359_vm10, %v2725_v44, %v2721_v20  ;;  %vm7390_vm15 = vcmp.eq.f32.partialorder %v1643_v54, 8.507059e+37 }
 0x283   :  { %v1736_v10 = vmul.f32 %v1167_v46, %v7212_v61  ;;  %v1637_v43 = vmul.f32 %v4113_v12, %v1636_v2  ;;  %v3194_v41 = vmul.f32 %v4115_v18, %v7331_v30  ;;  %v3295_v62 = vmul.f32 %v2726_v37, %v7222_v49  ;;  %vm1641_vm1 = vmor %vm1639_vm13, %vm1640_vm6 }
 0x284   :  { %v3202_v21 = vand.u32 2147483647, %v7331_v30  ;;  %v3204_v26 = vand.u32 2147483648, %v7331_v30  ;;  %v1646_v55 = vor.u32 1.1754944e-38, %v1645_v29  ;;  %v7401_v8 = vadd.f32 1.0, %v7319_v58 }
 0x285   :  { %1801 = vst.msk [vmem:[%s7762_s5 + $0xd8] sm:$0xff] %vm1773_vm4, %v1736_v10  ;;  %v1638_v61 = vadd.f32 %v4113_v12, %v1637_v43  ;;  %v3195_v60 = vsub.f32 1.0, %v3194_v41  ;;  %vm3198_vm9 = vweird.f32 %v7331_v30  ;;  %vm3199_vm14 = vweird.f32 %v4115_v18 }
 0x286   :  { %3359 = vst.msk [vmem:[%s7763_s6 + $0xd8] sm:$0xff] %vm1773_vm4, %v3295_v62  ;;  %4118 = vpow2.f32 %v7290_v35  ;;  %v7413_v49 = vadd.f32 %v7001_v32, %v1947_v27  ;;  %v4117_v59 = vpop.eup %4116  ;;  %v3497_v19 = vmul.f32 -1.442695, %v7312_v51  ;;  %vm7419_vm3 = vcmp.eq.f32.partialorder %v3202_v21, 8.507059e+37  ;;  %vm3200_vm8 = vmor %vm3198_vm9, %vm3199_vm14 }
 0x287   :  { %v1642_v58 = vsel %vm1641_vm1, %v4113_v12, %v1638_v61  ;;  %v3196_v25 = vmul.f32 %v4115_v18, %v3195_v60  ;;  %4120 = vrcp.f32 %v7401_v8  ;;  %v3205_v11 = vor.u32 1.1754944e-38, %v3204_v26  ;;  %v2046_v60 = vpop.f32.mrf.mxu3 }
 0x288   :  { %v1647_v47 = vsel %vm7390_vm15, %v1646_v55, %v1642_v58  ;;  %v1170_v35 = vmul.f32 %v4117_v59, %v7348_v9  ;;  %v1178_v53 = vand.u32 2147483647, %v7348_v9  ;;  %v1180_v39 = vand.u32 2147483648, %v7348_v9 }
 0x289   :  { %v1768_v42 = vmul.f32 %v1647_v47, %v7225_v52  ;;  %v3197_v7 = vadd.f32 %v4115_v18, %v3196_v25  ;;  %4122 = vpow2.f32 %v7298_v57  ;;  %v3625_v40 = vmul.f32 -1.442695, %v7413_v49 }
 0x28a   :  { %v1171_v22 = vsub.f32 1.0, %v1170_v35  ;;  %v7433_v31 = vadd.f32 %v7015_v4, %v484_v28  ;;  %vm1174_vm0 = vweird.f32 %v7348_v9  ;;  %vm1175_vm11 = vweird.f32 %v4117_v59 }
 0x28b   :  { %1833 = vst.msk [vmem:[%s7762_s5 + $0x1d8] sm:$0xff] %vm1773_vm4, %v1768_v42  ;;  %v3201_v52 = vsel %vm3200_vm8, %v4115_v18, %v3197_v7  ;;  %4124 = vpow2.f32 %v3497_v19  ;;  %vm7444_vm12 = vcmp.eq.f32.partialorder %v1178_v53, 8.507059e+37  ;;  %v7451_v33 = vadd.f32 %v7001_v32, %v2043_v15  ;;  %vm1176_vm10 = vmor %vm1174_vm0, %vm1175_vm11  ;;  %v1950_v15 = vpop.f32.mrf.mxu1 }
 0x28c   :  { %v4119_v30 = vpop.eup %4118  ;;  %v3206_v57 = vsel %vm7419_vm3, %v3205_v11, %v3201_v52  ;;  %v1172_v1 = vmul.f32 %v4117_v59, %v1171_v22  ;;  %4126 = vpow2.f32 %v3625_v40  ;;  %v3529_v5 = vmul.f32 -1.442695, %v7433_v31 }
 0x28d   :  { %v4121_v12 = vpop.eup %4120  ;;  %v3327_v14 = vmul.f32 %v3206_v57, %v7241_v50  ;;  %v7448_v23 = vadd.f32 1.0, %v4119_v30  ;;  %v1181_v44 = vor.u32 1.1754944e-38, %v1180_v39  ;;  %vm2733_vm2 = vweird.f32 %v7401_v8 }
 0x28e   :  { %v1173_v34 = vadd.f32 %v4117_v59, %v1172_v1  ;;  %v2729_v16 = vmul.f32 %v4121_v12, %v7401_v8  ;;  %v2737_v50 = vand.u32 2147483647, %v7401_v8  ;;  %v2739_v3 = vand.u32 2147483648, %v7401_v8 }
 0x28f   :  { %3391 = vst.msk [vmem:[%s7763_s6 + $0x1d8] sm:$0xff] %vm1773_vm4, %v3327_v14  ;;  %4128 = vrcp.f32 %v7448_v23  ;;  %v7466_v36 = vadd.f32 %v7015_v4, %v391_v38  ;;  %v4123_v54 = vpop.eup %4122  ;;  %v3657_v24 = vmul.f32 -1.442695, %v7451_v33  ;;  %vm2734_vm5 = vweird.f32 %v4121_v12 }
 0x290   :  { %v1177_v29 = vsel %vm1176_vm10, %v4117_v59, %v1173_v34  ;;  %v2730_v6 = vsub.f32 1.0, %v2729_v16  ;;  %4130 = vpow2.f32 %v3529_v5  ;;  %v1658_v18 = vand.u32 2147483647, %v7448_v23  ;;  %vm2735_vm13 = vmor %vm2733_vm2, %vm2734_vm5  ;;  %v487_v34 = vpop.f32.mrf.mxu2 }
 0x291   :  { %v4125_v2 = vpop.eup %4124  ;;  %v1182_v9 = vsel %vm7444_vm12, %v1181_v44, %v1177_v29  ;;  %v7472_v46 = vadd.f32 1.0, %v4123_v54  ;;  %4132 = vpow2.f32 %v3657_v24  ;;  %v1660_v43 = vand.u32 2147483648, %v7448_v23 }
 0x292   :  { %v4127_v20 = vpop.eup %4126  ;;  %v1737_v10 = vmul.f32 %v1182_v9, %v7245_v13  ;;  %v2731_v4 = vmul.f32 %v4121_v12, %v2730_v6  ;;  %v7475_v37 = vadd.f32 1.0, %v4125_v2  ;;  %vm2738_vm7 = vcmp.eq.f32.partialorder %v2737_v50, 8.507059e+37 }
 0x293   :  { %4134 = vrcp.f32 %v7472_v46  ;;  %v2740_v27 = vor.u32 1.1754944e-38, %v2739_v3  ;;  %vm1654_vm6 = vweird.f32 %v7448_v23  ;;  %v3219_v13 = vand.u32 2147483648, %v7472_v46 }
 0x294   :  { %1802 = vst.msk [vmem:[%s7762_s5 + $0xe0] sm:$0xff] %vm1773_vm4, %v1737_v10  ;;  %v2732_v41 = vadd.f32 %v4121_v12, %v2731_v4  ;;  %4136 = vrcp.f32 %v7475_v37  ;;  %v7489_v63 = vadd.f32 1.0, %v4127_v20  ;;  %v3498_v21 = vmul.f32 -1.442695, %v7466_v36 }
 0x295   :  { %v4129_v62 = vpop.eup %4128  ;;  %vm7493_vm15 = vcmp.eq.f32.partialorder %v1658_v18, 8.507059e+37  ;;  %v3217_v59 = vand.u32 2147483647, %v7472_v46  ;;  %v1661_v58 = vor.u32 1.1754944e-38, %v1660_v43  ;;  %v1193_v25 = vand.u32 2147483647, %v7475_v37 }
 0x296   :  { %v4131_v26 = vpop.eup %4130  ;;  %v2736_v61 = vsel %vm2735_vm13, %v4121_v12, %v2732_v41  ;;  %v1650_v55 = vmul.f32 %v4129_v62, %v7448_v23  ;;  %4138 = vrcp.f32 %v7489_v63  ;;  %vm3213_vm1 = vweird.f32 %v7472_v46 }
 0x297   :  { %v2741_v8 = vsel %vm2738_vm7, %v2740_v27, %v2736_v61  ;;  %v4133_v19 = vpop.eup %4132  ;;  %vm1189_vm9 = vweird.f32 %v7475_v37  ;;  %v1195_v45 = vand.u32 2147483648, %v7475_v37  ;;  %v3220_v35 = vor.u32 1.1754944e-38, %v3219_v13 }
 0x298   :  { %v3296_v28 = vmul.f32 %v2741_v8, %v7254_v17  ;;  %v1651_v47 = vsub.f32 1.0, %v1650_v55  ;;  %v7504_v42 = vadd.f32 1.0, %v4131_v26  ;;  %v7506_v7 = vadd.f32 1.0, %v4133_v19 }
 0x299   :  { %v4135_v11 = vpop.eup %4134  ;;  %4140 = vpow2.f32 %v3498_v21  ;;  %vm1655_vm14 = vweird.f32 %v4129_v62  ;;  %vm7513_vm3 = vcmp.eq.f32.partialorder %v3217_v59, 8.507059e+37  ;;  %v2752_v40 = vand.u32 2147483647, %v7489_v63 }
 0x29a   :  { %v4137_v53 = vpop.eup %4136  ;;  %3360 = vst.msk [vmem:[%s7763_s6 + $0xe0] sm:$0xff] %vm1773_vm4, %v3296_v28  ;;  %v1652_v17 = vmul.f32 %v4129_v62, %v1651_v47  ;;  %v3209_v39 = vmul.f32 %v4135_v11, %v7472_v46  ;;  %vm7519_vm8 = vcmp.eq.f32.partialorder %v1193_v25, 8.507059e+37  ;;  %v2754_v57 = vand.u32 2147483648, %v7489_v63  ;;  %vm1656_vm11 = vmor %vm1654_vm6, %vm1655_vm14 }
 0x29b   :  { %v1185_v52 = vmul.f32 %v4137_v53, %v7475_v37  ;;  %4142 = vrcp.f32 %v7504_v42  ;;  %v1196_v38 = vor.u32 1.1754944e-38, %v1195_v45  ;;  %vm2748_vm0 = vweird.f32 %v7489_v63  ;;  %v1953_v45 = vpop.f32.mrf.mxu1 }
 0x29c   :  { %v1653_v1 = vadd.f32 %v4129_v62, %v1652_v17  ;;  %v3210_v5 = vsub.f32 1.0, %v3209_v39  ;;  %v4139_v12 = vpop.eup %4138  ;;  %vm3214_vm12 = vweird.f32 %v4135_v11  ;;  %4144 = vrcp.f32 %v7506_v7  ;;  %v4184_v39 = vld [vmem:[%s7760_s3] ss:$0 sm:$0xff] }
 0x29d   :  { %v1186_v14 = vsub.f32 1.0, %v1185_v52  ;;  %v7530_v56 = vadd.f32 %v7001_v32, %v1950_v15  ;;  %v2744_v50 = vmul.f32 %v4139_v12, %v7489_v63  ;;  %vm7533_vm2 = vcmp.eq.f32.partialorder %v2752_v40, 8.507059e+37  ;;  %vm3215_vm7 = vmor %vm3213_vm1, %vm3214_vm12  ;;  %v394_v63 = vpop.f32.mrf.mxu0 }
 0x29e   :  { %v1657_v44 = vsel %vm1656_vm11, %v4129_v62, %v1653_v1  ;;  %v3211_v16 = vmul.f32 %v4135_v11, %v3210_v5  ;;  %vm1190_vm10 = vweird.f32 %v4137_v53  ;;  %v2755_v6 = vor.u32 1.1754944e-38, %v2754_v57 }
 0x29f   :  { %v4141_v54 = vpop.eup %4140  ;;  %v1662_v23 = vsel %vm7493_vm15, %v1661_v58, %v1657_v44  ;;  %v1187_v29 = vmul.f32 %v4137_v53, %v1186_v14  ;;  %v2745_v2 = vsub.f32 1.0, %v2744_v50  ;;  %vm1669_vm5 = vweird.f32 %v7504_v42  ;;  %vm1191_vm13 = vmor %vm1189_vm9, %vm1190_vm10 }
 0x2a0   :  { %v1769_v24 = vmul.f32 %v1662_v23, %v7266_v0  ;;  %v3212_v32 = vadd.f32 %v4135_v11, %v3211_v16  ;;  %v1673_v20 = vand.u32 2147483647, %v7504_v42  ;;  %v1675_v10 = vand.u32 2147483648, %v7504_v42 }
 0x2a1   :  { %v4143_v9 = vpop.eup %4142  ;;  %v1188_v18 = vadd.f32 %v4137_v53, %v1187_v29  ;;  %v7546_v4 = vadd.f32 1.0, %v4141_v54  ;;  %v2746_v43 = vmul.f32 %v4139_v12, %v2745_v2  ;;  %vm2749_vm6 = vweird.f32 %v4139_v12 }
 0x2a2   :  { %1834 = vst.msk [vmem:[%s7762_s5 + $0x1e0] sm:$0xff] %vm1773_vm4, %v1769_v24  ;;  %v3216_v0 = vsel %vm3215_vm7, %v4135_v11, %v3212_v32  ;;  %v1665_v46 = vmul.f32 %v4143_v9, %v7504_v42  ;;  %v7555_v41 = vpop.eup %4144  ;;  %vm3228_vm15 = vweird.f32 %v7506_v7  ;;  %v3232_v13 = vand.u32 2147483647, %v7506_v7  ;;  %vm2750_vm1 = vmor %vm2748_vm0, %vm2749_vm6  ;;  %v490_v11 = vpop.f32.mrf.mxu2 }
 0x2a3   :  { %v3221_v27 = vsel %vm7513_vm3, %v3220_v35, %v3216_v0  ;;  %v1192_v62 = vsel %vm1191_vm13, %v4137_v53, %v1188_v18  ;;  %v3626_v21 = vmul.f32 -1.442695, %v7530_v56  ;;  %v2747_v61 = vadd.f32 %v4139_v12, %v2746_v43  ;;  %v2049_v24 = vpop.f32.mrf.mxu3 }
 0x2a4   :  { %v3328_v26 = vmul.f32 %v3221_v27, %v7271_v48  ;;  %v1197_v37 = vsel %vm7519_vm8, %v1196_v38, %v1192_v62  ;;  %v1666_v55 = vsub.f32 1.0, %v1665_v46  ;;  %vm7568_vm9 = vcmp.eq.f32.partialorder %v1673_v20, 8.507059e+37 }
 0x2a5   :  { %v1738_v59 = vmul.f32 %v1197_v37, %v7312_v51  ;;  %v3224_v58 = vmul.f32 %v7555_v41, %v7506_v7  ;;  %4146 = vrcp.f32 %v7546_v4  ;;  %v2751_v48 = vsel %vm2750_vm1, %v4139_v12, %v2747_v61 }
 0x2a6   :  { %3392 = vst.msk [vmem:[%s7763_s6 + $0x1e0] sm:$0xff] %vm1773_vm4, %v3328_v26  ;;  %v1667_v25 = vmul.f32 %v4143_v9, %v1666_v55  ;;  %vm1670_vm14 = vweird.f32 %v4143_v9  ;;  %v1676_v51 = vor.u32 1.1754944e-38, %v1675_v10  ;;  %v2756_v19 = vsel %vm7533_vm2, %v2755_v6, %v2751_v48 }
 0x2a7   :  { %1803 = vst.msk [vmem:[%s7762_s5 + $0xe8] sm:$0xff] %vm1773_vm4, %v1738_v59  ;;  %v3225_v28 = vsub.f32 1.0, %v3224_v58  ;;  %v3234_v47 = vand.u32 2147483648, %v7506_v7  ;;  %4148 = vpow2.f32 %v3626_v21  ;;  %v3297_v35 = vmul.f32 %v2756_v19, %v7413_v49  ;;  %vm1671_vm8 = vmor %vm1669_vm5, %vm1670_vm14  ;;  %v4185_v49 = vld [vmem:[%s7761_s4] ss:$0 sm:$0xff] }
 0x2a8   :  { %v1668_v53 = vadd.f32 %v4143_v9, %v1667_v25  ;;  %vm7587_vm3 = vcmp.eq.f32.partialorder %v3232_v13, 8.507059e+37  ;;  %v7594_v22 = vadd.f32 %v4184_v39, %v487_v34  ;;  %vm3229_vm0 = vweird.f32 %v7555_v41 }
 0x2a9   :  { %v3226_v40 = vmul.f32 %v7555_v41, %v3225_v28  ;;  %v7604_v15 = vadd.f32 %v4185_v49, %v2046_v60  ;;  %v7606_v52 = vadd.f32 %v4184_v39, %v394_v63  ;;  %3361 = vst.msk [vmem:[%s7763_s6 + $0xe8] sm:$0xff] %vm1773_vm4, %v3297_v35  ;;  %v7613_v57 = vadd.f32 %v4185_v49, %v1953_v45  ;;  %vm3230_vm11 = vmor %vm3228_vm15, %vm3229_vm0 }
 0x2aa   :  { %v1672_v30 = vsel %vm1671_vm8, %v4143_v9, %v1668_v53  ;;  %v3530_v42 = vmul.f32 -1.442695, %v7594_v22  ;;  %v7615_v1 = vadd.f32 %v4184_v39, %v490_v11  ;;  %v3235_v16 = vor.u32 1.1754944e-38, %v3234_v47 }
 0x2ab   :  { %v4147_v5 = vpop.eup %4146  ;;  %v1677_v38 = vsel %vm7568_vm9, %v1676_v51, %v1672_v30  ;;  %v3227_v12 = vadd.f32 %v7555_v41, %v3226_v40  ;;  %v3658_v14 = vmul.f32 -1.442695, %v7604_v15  ;;  %v3499_v34 = vmul.f32 -1.442695, %v7606_v52 }
 0x2ac   :  { %v1770_v44 = vmul.f32 %v1677_v38, %v7433_v31  ;;  %v1200_v50 = vmul.f32 %v4147_v5, %v7546_v4  ;;  %4150 = vpow2.f32 %v3530_v42  ;;  %v3627_v23 = vmul.f32 -1.442695, %v7613_v57 }
 0x2ad   :  { %v4149_v3 = vpop.eup %4148  ;;  %v3231_v54 = vsel %vm3230_vm11, %v7555_v41, %v3227_v12  ;;  %4152 = vpow2.f32 %v3658_v14  ;;  %v3531_v29 = vmul.f32 -1.442695, %v7615_v1  ;;  %vm1204_vm12 = vweird.f32 %v7546_v4 }
 0x2ae   :  { %1835 = vst.msk [vmem:[%s7762_s5 + $0x1e8] sm:$0xff] %vm1773_vm4, %v1770_v44  ;;  %v3236_v31 = vsel %vm7587_vm3, %v3235_v16, %v3231_v54  ;;  %v1201_v7 = vsub.f32 1.0, %v1200_v50  ;;  %v2274_v6 = vadd.f32 1.0, %v4149_v3  ;;  %4154 = vpow2.f32 %v3499_v34 }
 0x2af   :  { %v3329_v32 = vmul.f32 %v3236_v31, %v7451_v33  ;;  %v1210_v2 = vand.u32 2147483648, %v7546_v4  ;;  %4156 = vpow2.f32 %v3627_v23  ;;  %vm1205_vm2 = vweird.f32 %v4147_v5 }
 0x2b0   :  { %v1202_v9 = vmul.f32 %v4147_v5, %v1201_v7  ;;  %v1208_v18 = vand.u32 2147483647, %v7546_v4  ;;  %4158 = vrcp.f32 %v2274_v6  ;;  %v7645_v20 = vadd.f32 %v4185_v49, %v2049_v24  ;;  %vm1206_vm10 = vmor %vm1204_vm12, %vm1205_vm2 }
 0x2b1   :  { %3393 = vst.msk [vmem:[%s7763_s6 + $0x1e8] sm:$0xff] %vm1773_vm4, %v3329_v32  ;;  %4160 = vpow2.f32 %v3531_v29  ;;  %v1211_v43 = vor.u32 1.1754944e-38, %v1210_v2  ;;  %v2767_v61 = vand.u32 2147483647, %v2274_v6  ;;  %vm2763_vm7 = vweird.f32 %v2274_v6 }
 0x2b2   :  { %v4151_v10 = vpop.eup %4150  ;;  %v1203_v33 = vadd.f32 %v4147_v5, %v1202_v9  ;;  %vm1209_vm5 = vcmp.eq.f32.partialorder %v1208_v18, 8.507059e+37  ;;  %v3659_v21 = vmul.f32 -1.442695, %v7645_v20  ;;  %v2769_v59 = vand.u32 2147483648, %v2274_v6 }
 0x2b3   :  { %v4153_v0 = vpop.eup %4152  ;;  %v7647_v46 = vadd.f32 1.0, %v4151_v10  ;;  %vm7665_vm13 = vcmp.eq.f32.partialorder %v2767_v61, 8.507059e+37 }
 0x2b4   :  { %v4155_v41 = vpop.eup %4154  ;;  %v1207_v27 = vsel %vm1206_vm10, %v4147_v5, %v1203_v33  ;;  %v7649_v4 = vadd.f32 1.0, %v4153_v0  ;;  %v2770_v35 = vor.u32 1.1754944e-38, %v2769_v59 }
 0x2b5   :  { %v4157_v62 = vpop.eup %4156  ;;  %v1212_v13 = vsel %vm1209_vm5, %v1211_v43, %v1207_v27  ;;  %4162 = vrcp.f32 %v7647_v46  ;;  %v7659_v8 = vadd.f32 1.0, %v4155_v41  ;;  %v1688_v25 = vand.u32 2147483647, %v7647_v46 }
 0x2b6   :  { %v4159_v26 = vpop.eup %4158  ;;  %v1739_v37 = vmul.f32 %v1212_v13, %v7466_v36  ;;  %4164 = vrcp.f32 %v7649_v4  ;;  %v7661_v58 = vadd.f32 1.0, %v4157_v62  ;;  %v1690_v36 = vand.u32 2147483648, %v7647_v46 }
 0x2b7   :  { %v4161_v55 = vpop.eup %4160  ;;  %v2759_v60 = vmul.f32 %v4159_v26, %v2274_v6  ;;  %4166 = vpow2.f32 %v3659_v21  ;;  %v3247_v63 = vand.u32 2147483647, %v7649_v4  ;;  %vm2764_vm6 = vweird.f32 %v4159_v26 }
 0x2b8   :  { %1804 = vst.msk [vmem:[%s7762_s5 + $0xf0] sm:$0xff] %vm1773_vm4, %v1739_v37  ;;  %4168 = vrcp.f32 %v7659_v8  ;;  %v7671_v19 = vadd.f32 1.0, %v4161_v55  ;;  %v3249_v45 = vand.u32 2147483648, %v7649_v4  ;;  %vm1684_vm15 = vweird.f32 %v7647_v46  ;;  %vm2765_vm14 = vmor %vm2763_vm7, %vm2764_vm6 }
 0x2b9   :  { %v2760_v48 = vsub.f32 1.0, %v2759_v60  ;;  %4170 = vrcp.f32 %v7661_v58  ;;  %vm3243_vm1 = vweird.f32 %v7649_v4  ;;  %vm7678_vm9 = vcmp.eq.f32.partialorder %v1688_v25, 8.507059e+37 }
 0x2ba   :  { %v1691_v40 = vor.u32 1.1754944e-38, %v1690_v36  ;;  %vm7684_vm3 = vcmp.eq.f32.partialorder %v3247_v63, 8.507059e+37  ;;  %v1223_v5 = vand.u32 2147483647, %v7659_v8  ;;  %4172 = vrcp.f32 %v7671_v19 }
 0x2bb   :  { %v4163_v28 = vpop.eup %4162  ;;  %v2761_v47 = vmul.f32 %v4159_v26, %v2760_v48  ;;  %v3250_v34 = vor.u32 1.1754944e-38, %v3249_v45  ;;  %vm1219_vm8 = vweird.f32 %v7659_v8  ;;  %v1225_v3 = vand.u32 2147483648, %v7659_v8 }
 0x2bc   :  { %v4165_v11 = vpop.eup %4164  ;;  %v1680_v53 = vmul.f32 %v4163_v28, %v7647_v46  ;;  %vm1685_vm0 = vweird.f32 %v4163_v28  ;;  %vm7696_vm12 = vcmp.eq.f32.partialorder %v1223_v5, 8.507059e+37  ;;  %vm2778_vm2 = vweird.f32 %v7661_v58 }
 0x2bd   :  { %v2762_v17 = vadd.f32 %v4159_v26, %v2761_v47  ;;  %v3239_v49 = vmul.f32 %v4165_v11, %v7649_v4  ;;  %v4167_v38 = vpop.eup %4166  ;;  %vm3244_vm11 = vweird.f32 %v4165_v11  ;;  %vm1686_vm10 = vmor %vm1684_vm15, %vm1685_vm0  ;;  %v2782_v2 = vand.u32 2147483647, %v7661_v58 }
 0x2be   :  { %v1681_v30 = vsub.f32 1.0, %v1680_v53  ;;  %v4169_v44 = vpop.eup %4168  ;;  %v2307_v9 = vadd.f32 1.0, %v4167_v38  ;;  %vm3245_vm5 = vmor %vm3243_vm1, %vm3244_vm11  ;;  %v2784_v0 = vand.u32 2147483648, %v7661_v58  ;;  %v1703_v55 = vand.u32 2147483647, %v7671_v19 }
 0x2bf   :  { %v2766_v12 = vsel %vm2765_vm14, %v4159_v26, %v2762_v17  ;;  %v3240_v14 = vsub.f32 1.0, %v3239_v49  ;;  %v4171_v54 = vpop.eup %4170  ;;  %v1215_v31 = vmul.f32 %v4169_v44, %v7659_v8  ;;  %vm1220_vm7 = vweird.f32 %v4169_v44 }
 0x2c0   :  { %v2771_v16 = vsel %vm7665_vm13, %v2770_v35, %v2766_v12  ;;  %v1682_v50 = vmul.f32 %v4163_v28, %v1681_v30  ;;  %v2774_v24 = vmul.f32 %v4171_v54, %v7661_v58  ;;  %v4173_v18 = vpop.eup %4172  ;;  %vm2779_vm13 = vweird.f32 %v4171_v54  ;;  %vm1221_vm6 = vmor %vm1219_vm8, %vm1220_vm7 }
 0x2c1   :  { %v3298_v23 = vmul.f32 %v2771_v16, %v7530_v56  ;;  %v3241_v29 = vmul.f32 %v4165_v11, %v3240_v14  ;;  %v1216_v32 = vsub.f32 1.0, %v1215_v31  ;;  %v1695_v27 = vmul.f32 %v4173_v18, %v7671_v19  ;;  %vm2780_vm15 = vmor %vm2778_vm2, %vm2779_vm13 }
 0x2c2   :  { %v1683_v7 = vadd.f32 %v4163_v28, %v1682_v50  ;;  %v2775_v33 = vsub.f32 1.0, %v2774_v24  ;;  %4174 = vrcp.f32 %v2307_v9  ;;  %v1705_v60 = vand.u32 2147483648, %v7671_v19 }
 0x2c3   :  { %3362 = vst.msk [vmem:[%s7763_s6 + $0xf0] sm:$0xff] %vm1773_vm4, %v3298_v23  ;;  %v3242_v56 = vadd.f32 %v4165_v11, %v3241_v29  ;;  %v1217_v46 = vmul.f32 %v4169_v44, %v1216_v32  ;;  %v1696_v37 = vsub.f32 1.0, %v1695_v27  ;;  %v2785_v59 = vor.u32 1.1754944e-38, %v2784_v0 }
 0x2c4   :  { %v1687_v10 = vsel %vm1686_vm10, %v4163_v28, %v1683_v7  ;;  %v2776_v21 = vmul.f32 %v4171_v54, %v2775_v33  ;;  %vm1700_vm1 = vweird.f32 %v4173_v18  ;;  %vm1699_vm14 = vweird.f32 %v7671_v19 }
 0x2c5   :  { %v1692_v43 = vsel %vm7678_vm9, %v1691_v40, %v1687_v10  ;;  %v3246_v41 = vsel %vm3245_vm5, %v4165_v11, %v3242_v56  ;;  %v1218_v26 = vadd.f32 %v4169_v44, %v1217_v46  ;;  %v1697_v48 = vmul.f32 %v4173_v18, %v1696_v37 }
 0x2c6   :  { %v1771_v62 = vmul.f32 %v1692_v43, %v7594_v22  ;;  %v3251_v13 = vsel %vm7684_vm3, %v3250_v34, %v3246_v41  ;;  %v1226_v22 = vor.u32 1.1754944e-38, %v1225_v3  ;;  %v2777_v61 = vadd.f32 %v4171_v54, %v2776_v21  ;;  %vm1701_vm3 = vmor %vm1699_vm14, %vm1700_vm1 }
 0x2c7   :  { %v3330_v4 = vmul.f32 %v3251_v13, %v7604_v15  ;;  %v1222_v15 = vsel %vm1221_vm6, %v4169_v44, %v1218_v26  ;;  %vm2783_vm9 = vcmp.eq.f32.partialorder %v2782_v2, 8.507059e+37  ;;  %v1698_v63 = vadd.f32 %v4173_v18, %v1697_v48 }
 0x2c8   :  { %1836 = vst.msk [vmem:[%s7762_s5 + $0x1f0] sm:$0xff] %vm1773_vm4, %v1771_v62  ;;  %v1227_v8 = vsel %vm7696_vm12, %v1226_v22, %v1222_v15  ;;  %v2781_v25 = vsel %vm2780_vm15, %v4171_v54, %v2777_v61  ;;  %v1706_v47 = vor.u32 1.1754944e-38, %v1705_v60  ;;  %v4175_v58 = vpop.eup %4174  ;;  %vm1704_vm8 = vcmp.eq.f32.partialorder %v1703_v55, 8.507059e+37 }
 0x2c9   :  { %3394 = vst.msk [vmem:[%s7763_s6 + $0x1f0] sm:$0xff] %vm1773_vm4, %v3330_v4  ;;  %v1740_v36 = vmul.f32 %v1227_v8, %v7606_v52  ;;  %v2786_v51 = vsel %vm2783_vm9, %v2785_v59, %v2781_v25  ;;  %v1702_v45 = vsel %vm1701_vm3, %v4173_v18, %v1698_v63  ;;  %v3254_v11 = vmul.f32 %v4175_v58, %v2307_v9 }
 0x2ca   :  { %v3299_v28 = vmul.f32 %v2786_v51, %v7613_v57  ;;  %v1707_v52 = vsel %vm1704_vm8, %v1706_v47, %v1702_v45  ;;  %v3264_v35 = vand.u32 2147483648, %v2307_v9  ;;  %vm3259_vm0 = vweird.f32 %v4175_v58 }
 0x2cb   :  { %1805 = vst.msk [vmem:[%s7762_s5 + $0xf8] sm:$0xff] %vm1773_vm4, %v1740_v36  ;;  %v1772_v19 = vmul.f32 %v1707_v52, %v7615_v1  ;;  %v3255_v57 = vsub.f32 1.0, %v3254_v11  ;;  %v3262_v17 = vand.u32 2147483647, %v2307_v9  ;;  %vm3258_vm11 = vweird.f32 %v2307_v9 }
 0x2cc   :  { %3363 = vst.msk [vmem:[%s7763_s6 + $0xf8] sm:$0xff] %vm1773_vm4, %v3299_v28  ;;  %vm3260_vm12 = vmor %vm3258_vm11, %vm3259_vm0  ;;  %v3265_v40 = vor.u32 1.1754944e-38, %v3264_v35 }
 0x2cd   :  { %1837 = vst.msk [vmem:[%s7762_s5 + $0x1f8] sm:$0xff] %vm1773_vm4, %v1772_v19  ;;  %v3256_v53 = vmul.f32 %v4175_v58, %v3255_v57  ;;  %vm3263_vm2 = vcmp.eq.f32.partialorder %v3262_v17, 8.507059e+37 }
 0x2cf   :  { %v3257_v39 = vadd.f32 %v4175_v58, %v3256_v53 }
 0x2d1   :  { %v3261_v49 = vsel %vm3260_vm12, %v4175_v58, %v3257_v39 }
 0x2d2   :  { %v3266_v30 = vsel %vm3263_vm2, %v3265_v40, %v3261_v49 }
 0x2d3   :  { %v3331_v42 = vmul.f32 %v3266_v30, %v7645_v20 }
 0x2d5   :  { %3395 = vst.msk [vmem:[%s7763_s6 + $0x1f8] sm:$0xff] %vm1773_vm4, %v3331_v42 }

</bundles_post_ra>
